<compile_context>
chip_gen: v5e
topology: v5e:2x2
jax: 0.10.0
libtpu: 0.0.40
codegen_flags: <defaults>
</compile_context>

<pallas_src>
import functools

import jax
import jax.numpy as jnp
from jax.experimental import pallas as pl
from jax.experimental.pallas import tpu as pltpu

LANE = 128
SUBLANE = 8  # f32 sublane tile


def _round_up(n, m):
    return (n + m - 1) // m * m


# ----------------------------- fused LSTM kernel ------------------------------
def _lstm_fused_kernel(*refs, n_layers, T, Bp, Hp):
    n_in = 1 + 3 * n_layers + 2
    x_ref = refs[0]
    wout_ref = refs[1 + 3 * n_layers]
    bout_ref = refs[2 + 3 * n_layers]
    y_ref = refs[n_in]        # (T*Bp, Hp)  last layer's hidden sequence
    out_ref = refs[n_in + 1]  # (T*Bp, Op)  sigmoid(readout)
    gx_sc = refs[n_in + 2]    # (T*Bp, 4*Hp) f32 scratch, reused per layer

    for li in range(n_layers):
        wih_ref = refs[1 + 3 * li]   # (I or Hp, 4*Hp) bf16
        whh_ref = refs[2 + 3 * li]   # (Hp, 4*Hp)      bf16
        b_ref = refs[3 + 3 * li]     # (1, 4*Hp)       f32 (b_ih + b_hh)

        # Hoisted input projection: ONE big GEMM over the whole sequence,
        # bias folded in.  Layer 0 reads x; later layers read the previous
        # layer's hidden sequence back out of y_ref (still in VMEM).
        xin = (x_ref[...] if li == 0 else y_ref[...]).astype(jnp.bfloat16)
        gx_sc[...] = (
            jnp.dot(xin, wih_ref[...], preferred_element_type=jnp.float32)
            + b_ref[...])

        whh = whh_ref[...]                      # bf16, hoisted out of the loop
        h = jnp.zeros((Bp, Hp), jnp.float32)    # PyTorch h=None -> zeros
        c = jnp.zeros((Bp, Hp), jnp.float32)

        # Serial recurrence (T small & static -> fully unrolled). Per step:
        # one (Bp, Hp) x (Hp, 4*Hp) bf16 matmul + f32 VPU/EUP gate math.
        for t in range(T):
            r = t * Bp   # static, multiple of 8 -> full (8,128) slab accesses
            gates = gx_sc[r:r + Bp, :] + jnp.dot(
                h.astype(jnp.bfloat16), whh,
                preferred_element_type=jnp.float32)          # (Bp, 4*Hp) f32
            # Each gate is a whole lane-aligned 128-lane block.
            i_g = jax.nn.sigmoid(gates[:, 0 * Hp:1 * Hp])
            f_g = jax.nn.sigmoid(gates[:, 1 * Hp:2 * Hp])
            g_g = jnp.tanh(gates[:, 2 * Hp:3 * Hp])
            o_g = jax.nn.sigmoid(gates[:, 3 * Hp:4 * Hp])
            c = f_g * c + i_g * g_g
            h = o_g * jnp.tanh(c)
            y_ref[r:r + Bp, :] = h

    # Batched readout: single (T*Bp, Hp) x (Hp, Op) GEMM + bias + sigmoid,
    # completely off the serial time loop.
    out_ref[...] = jax.nn.sigmoid(
        jnp.dot(y_ref[...].astype(jnp.bfloat16), wout_ref[...],
                preferred_element_type=jnp.float32)
        + bout_ref[...])


def lstm_fused_call(x2d, params, *, T, Bp):
    """One fused pallas_call for all LSTM layers + readout.

    x2d: (T*Bp, I) rows ordered t-major (row = t*Bp + b), batch zero-padded.
    Returns (y2d (T*Bp, Hp) hidden sequence of the last layer,
             out2d (T*Bp, Op) sigmoid(readout)).
    """
    Np, I = x2d.shape
    Hp, Op = params["Hp"], params["Op"]
    G = 4 * Hp
    n_layers = len(params["layers"])
    assert Np == T * Bp

    in_arrays = [x2d]
    in_specs = [pl.BlockSpec((Np, I), lambda: (0, 0))]
    for layer in params["layers"]:
        wih, whh, b = layer["w_ih_p"], layer["w_hh_p"], layer["b_p"]
        in_arrays += [wih, whh, b]
        in_specs += [pl.BlockSpec(wih.shape, lambda: (0, 0)),
                     pl.BlockSpec(whh.shape, lambda: (0, 0)),
                     pl.BlockSpec(b.shape, lambda: (0, 0))]
    in_arrays += [params["w_out_p"], params["b_out_p"]]
    in_specs += [pl.BlockSpec((Hp, Op), lambda: (0, 0)),
                 pl.BlockSpec((1, Op), lambda: (0, 0))]

    kernel = functools.partial(_lstm_fused_kernel, n_layers=n_layers,
                               T=T, Bp=Bp, Hp=Hp)
    return pl.pallas_call(
        kernel,
        out_shape=(jax.ShapeDtypeStruct((Np, Hp), jnp.float32),
                   jax.ShapeDtypeStruct((Np, Op), jnp.float32)),
        in_specs=in_specs,
        out_specs=(pl.BlockSpec((Np, Hp), lambda: (0, 0)),
                   pl.BlockSpec((Np, Op), lambda: (0, 0))),
        scratch_shapes=[pltpu.VMEM((Np, G), jnp.float32)],
        compiler_params=pltpu.CompilerParams(
            vmem_limit_bytes=32 * 1024 * 1024),
    )(*in_arrays)


# --------------------------------- forward ------------------------------------
def lstm_forward(params, x):
    """x: (B, T, input_size) batch-first. Returns (out, hidden_state)."""
    B, T, I = x.shape
    H, O = params["hidden_size"], params["output_size"]
    Hp, Op, Bp = params["Hp"], params["Op"], params["Bp"]

    # Time-major, batch padded to the sublane tile (row = t*Bp + b).
    # (At real B,T sizes this transpose should be folded into the kernel's
    #  BlockSpec index_map of a time-chunked grid; negligible at toy size.)
    x_tm = jnp.transpose(x, (1, 0, 2))                       # (T, B, I)
    x_p = jnp.zeros((T, Bp, I), jnp.float32).at[:, :B, :].set(x_tm)
    x2d = x_p.reshape(T * Bp, I)

    y2d, out2d = lstm_fused_call(x2d, params, T=T, Bp=Bp)

    hidden = jnp.transpose(y2d.reshape(T, Bp, Hp)[:, :B, :H], (1, 0, 2))
    out = jnp.transpose(out2d.reshape(T, Bp, Op)[:, :B, :O], (1, 0, 2))
    return out, hidden


# --------------------------- parameter init / prep ----------------------------
def init_params(key, input_size, hidden_size, num_layers, output_size):
    """Raw PyTorch-layout parameters (used directly by the pure-JAX reference)."""
    bound = 1.0 / (hidden_size ** 0.5)
    keys = jax.random.split(key, num_layers * 4 + 2)
    idx = 0
    layers = []
    for l in range(num_layers):
        in_f = input_size if l == 0 else hidden_size
        w_ih = jax.random.uniform(keys[idx], (4 * hidden_size, in_f),
                                  minval=-bound, maxval=bound,
                                  dtype=jnp.float32); idx += 1
        w_hh = jax.random.uniform(keys[idx], (4 * hidden_size, hidden_size),
                                  minval=-bound, maxval=bound,
                                  dtype=jnp.float32); idx += 1
        b_ih = jax.random.uniform(keys[idx], (4 * hidden_size,),
                                  minval=-bound, maxval=bound,
                                  dtype=jnp.float32); idx += 1
        b_hh = jax.random.uniform(keys[idx], (4 * hidden_size,),
                                  minval=-bound, maxval=bound,
                                  dtype=jnp.float32); idx += 1
        layers.append({"w_ih": w_ih, "w_hh": w_hh, "b_ih": b_ih, "b_hh": b_hh})
    w_out = jax.random.uniform(keys[idx], (output_size, hidden_size),
                               minval=-bound, maxval=bound,
                               dtype=jnp.float32); idx += 1
    b_out = jax.random.uniform(keys[idx], (output_size,),
                               minval=-bound, maxval=bound, dtype=jnp.float32)
    return {"layers": layers, "w_out": w_out, "b_out": b_out,
            "input_size": input_size, "hidden_size": hidden_size,
            "output_size": output_size}


def _pad_gate_cols(w, H, Hp):
    """(in_dim, 4H) -> (in_dim, 4*Hp) with each gate at a 128-lane-aligned block;
    padded columns are zero (so padded c/h lanes stay exactly 0)."""
    in_dim = w.shape[0]
    out = jnp.zeros((in_dim, 4 * Hp), w.dtype)
    for k in range(4):
        out = out.at[:, k * Hp:k * Hp + H].set(w[:, k * H:(k + 1) * H])
    return out


def prepare_params(raw, batch_size):
    """Transpose, lane-pad and bf16-cast the raw params for the Pallas kernel.
    Weights bf16 (MXU operands, halves weight VMEM/HBM traffic); biases f32."""
    H, O = raw["hidden_size"], raw["output_size"]
    Hp, Op = _round_up(H, LANE), _round_up(O, LANE)
    Bp = _round_up(max(batch_size, SUBLANE), SUBLANE)
    layers = []
    for li, layer in enumerate(raw["layers"]):
        in_f = layer["w_ih"].shape[1]
        in_fp = in_f if li == 0 else Hp          # later layers consume padded h
        w_ih_p = jnp.zeros((in_fp, 4 * Hp), jnp.float32)
        w_ih_p = w_ih_p.at[:in_f, :].set(_pad_gate_cols(layer["w_ih"].T, H, Hp))
        w_hh_p = jnp.zeros((Hp, 4 * Hp), jnp.float32)
        w_hh_p = w_hh_p.at[:H, :].set(_pad_gate_cols(layer["w_hh"].T, H, Hp))
        b_p = _pad_gate_cols((layer["b_ih"] + layer["b_hh"])[None, :], H, Hp)
        layers.append({"w_ih_p": w_ih_p.astype(jnp.bfloat16),
                       "w_hh_p": w_hh_p.astype(jnp.bfloat16),
                       "b_p": b_p})
    w_out_p = (jnp.zeros((Hp, Op), jnp.float32)
               .at[:H, :O].set(raw["w_out"].T).astype(jnp.bfloat16))
    b_out_p = jnp.zeros((1, Op), jnp.float32).at[0, :O].set(raw["b_out"])
    return {"layers": layers, "w_out_p": w_out_p, "b_out_p": b_out_p,
            "hidden_size": H, "output_size": O,
            "Hp": Hp, "Op": Op, "Bp": Bp}


# ----------------------------- pure-JAX reference ------------------------------
def lstm_reference(raw, x):
    H = raw["hidden_size"]
    B = x.shape[0]
    h_seq = jnp.transpose(x, (1, 0, 2))          # (T, B, I)
    for layer in raw["layers"]:
        w_ih_t, w_hh_t = layer["w_ih"].T, layer["w_hh"].T
        b = (layer["b_ih"] + layer["b_hh"])[None, :]

        def step(carry, x_t, w_ih_t=w_ih_t, w_hh_t=w_hh_t, b=b):
            h, c = carry
            gates = x_t @ w_ih_t + h @ w_hh_t + b
            i = jax.nn.sigmoid(gates[:, :H])
            f = jax.nn.sigmoid(gates[:, H:2 * H])
            g = jnp.tanh(gates[:, 2 * H:3 * H])
            o = jax.nn.sigmoid(gates[:, 3 * H:])
            c = f * c + i * g
            h = o * jnp.tanh(c)
            return (h, c), h

        init = (jnp.zeros((B, H), jnp.float32), jnp.zeros((B, H), jnp.float32))
        _, h_seq = jax.lax.scan(step, init, h_seq)
    hidden = jnp.transpose(h_seq, (1, 0, 2))
    out = jax.nn.sigmoid(hidden @ raw["w_out"].T + raw["b_out"][None, :])
    return out, hidden


# ------------------------------------ main -------------------------------------
if __name__ == "__main__":
    batch, seq, input_size, hidden_size, num_layers, output_size = 2, 8, 16, 32, 2, 4

    key = jax.random.PRNGKey(0)
    pkey, xkey = jax.random.split(key)
    raw = init_params(pkey, input_size, hidden_size, num_layers, output_size)
    params = prepare_params(raw, batch)
    x = jax.random.normal(xkey, (batch, seq, input_size), dtype=jnp.float32)

    out, hidden_state = jax.block_until_ready(lstm_forward(params, x))
    out_ref, hidden_ref = jax.block_until_ready(lstm_reference(raw, x))

    assert out.shape == (batch, seq, output_size)
    assert hidden_state.shape == (batch, seq, hidden_size)
    err_h = float(jnp.max(jnp.abs(hidden_state - hidden_ref)))
    err_o = float(jnp.max(jnp.abs(out - out_ref)))
    # bf16 matmul operands with f32 accumulation vs. the f32 reference:
    # expected max-abs error ~1e-3; 1e-2 tolerance is intentional headroom.
    assert err_h < 1e-2, f"hidden mismatch: max abs err {err_h}"
    assert err_o < 1e-2, f"out mismatch: max abs err {err_o}"

    print("KERNEL_OK")
</pallas_src>

<mosaic_0001>
module attributes {stable_mosaic.version = 11 : i64} {
  func.func @_lstm_fused_kernel(%arg0: memref<64x16xf32, #tpu.memory_space<vmem>>, %arg1: memref<16x512xbf16, #tpu.memory_space<vmem>>, %arg2: memref<128x512xbf16, #tpu.memory_space<vmem>>, %arg3: memref<1x512xf32, #tpu.memory_space<vmem>>, %arg4: memref<128x512xbf16, #tpu.memory_space<vmem>>, %arg5: memref<128x512xbf16, #tpu.memory_space<vmem>>, %arg6: memref<1x512xf32, #tpu.memory_space<vmem>>, %arg7: memref<128x128xbf16, #tpu.memory_space<vmem>>, %arg8: memref<1x128xf32, #tpu.memory_space<vmem>>, %arg9: memref<64x128xf32, #tpu.memory_space<vmem>>, %arg10: memref<64x128xf32, #tpu.memory_space<vmem>>, %arg11: memref<64x512xf32, #tpu.memory_space<vmem>>) attributes {dimension_semantics = [], scalar_prefetch = 0 : i64, scratch_operands = 1 : i64, tpu.core_type = #tpu.core_type<tc>} {
    %c0 = arith.constant 0 : index
    %c0_0 = arith.constant 0 : index
    %0 = vector.load %arg0[%c0, %c0_0] : memref<64x16xf32, #tpu.memory_space<vmem>>, vector<64x16xf32>
    %1 = arith.truncf %0 : vector<64x16xf32> to vector<64x16xbf16>
    %c0_1 = arith.constant 0 : index
    %c0_2 = arith.constant 0 : index
    %2 = vector.load %arg1[%c0_1, %c0_2] : memref<16x512xbf16, #tpu.memory_space<vmem>>, vector<16x512xbf16>
    %cst = arith.constant dense<0.000000e+00> : vector<64x512xf32>
    %3 = tpu.matmul %1, %2, %cst {dimension_numbers = #tpu.dot_dimension_numbers<[1], [0], [0], [1], [0, 0, 1, 1], [], []>} : vector<64x16xbf16>, vector<16x512xbf16>, vector<64x512xf32> -> vector<64x512xf32>
    %c0_3 = arith.constant 0 : index
    %c0_4 = arith.constant 0 : index
    %4 = vector.load %arg3[%c0_3, %c0_4] : memref<1x512xf32, #tpu.memory_space<vmem>>, vector<1x512xf32>
    %5 = vector.broadcast %4 : vector<1x512xf32> to vector<64x512xf32>
    %6 = arith.addf %3, %5 : vector<64x512xf32>
    %c0_5 = arith.constant 0 : index
    %c0_6 = arith.constant 0 : index
    %7 = vector.load %arg11[%c0_5, %c0_6] : memref<64x512xf32, #tpu.memory_space<vmem>>, vector<64x512xf32>
    tpu.vector_store %arg11[%c0_5, %c0_6], %6 {strides = array<i32>} : memref<64x512xf32, #tpu.memory_space<vmem>>, vector<64x512xf32>,
    %c0_7 = arith.constant 0 : index
    %c0_8 = arith.constant 0 : index
    %8 = vector.load %arg2[%c0_7, %c0_8] : memref<128x512xbf16, #tpu.memory_space<vmem>>, vector<128x512xbf16>
    %cst_9 = arith.constant 0.000000e+00 : f32
    %9 = vector.broadcast %cst_9 : f32 to vector<8x128xf32>
    %cst_10 = arith.constant 0.000000e+00 : f32
    %10 = vector.broadcast %cst_10 : f32 to vector<8x128xf32>
    %c0_11 = arith.constant 0 : index
    %c0_12 = arith.constant 0 : index
    %11 = vector.load %arg11[%c0_11, %c0_12] : memref<64x512xf32, #tpu.memory_space<vmem>>, vector<8x512xf32>
    %12 = arith.truncf %9 : vector<8x128xf32> to vector<8x128xbf16>
    %cst_13 = arith.constant dense<0.000000e+00> : vector<8x512xf32>
    %13 = tpu.matmul %12, %8, %cst_13 {dimension_numbers = #tpu.dot_dimension_numbers<[1], [0], [0], [1], [0, 0, 1, 1], [], []>} : vector<8x128xbf16>, vector<128x512xbf16>, vector<8x512xf32> -> vector<8x512xf32>
    %14 = arith.addf %11, %13 : vector<8x512xf32>
    %15 = vector.extract_strided_slice %14 {offsets = [0, 0], sizes = [8, 128], strides = [1, 1]} : vector<8x512xf32> to vector<8x128xf32>
    %16 = arith.negf %15 : vector<8x128xf32>
    %17 = math.exp %16 : vector<8x128xf32>
    %cst_14 = arith.constant 1.000000e+00 : f32
    %18 = vector.broadcast %cst_14 : f32 to vector<8x128xf32>
    %19 = arith.addf %18, %17 : vector<8x128xf32>
    %20 = arith.divf %18, %19 : vector<8x128xf32>
    %21 = vector.extract_strided_slice %14 {offsets = [0, 128], sizes = [8, 128], strides = [1, 1]} : vector<8x512xf32> to vector<8x128xf32>
    %22 = arith.negf %21 : vector<8x128xf32>
    %23 = math.exp %22 : vector<8x128xf32>
    %cst_15 = arith.constant 1.000000e+00 : f32
    %24 = vector.broadcast %cst_15 : f32 to vector<8x128xf32>
    %25 = arith.addf %24, %23 : vector<8x128xf32>
    %26 = arith.divf %24, %25 : vector<8x128xf32>
    %27 = vector.extract_strided_slice %14 {offsets = [0, 256], sizes = [8, 128], strides = [1, 1]} : vector<8x512xf32> to vector<8x128xf32>
    %28 = math.tanh %27 : vector<8x128xf32>
    %29 = vector.extract_strided_slice %14 {offsets = [0, 384], sizes = [8, 128], strides = [1, 1]} : vector<8x512xf32> to vector<8x128xf32>
    %30 = arith.negf %29 : vector<8x128xf32>
    %31 = math.exp %30 : vector<8x128xf32>
    %cst_16 = arith.constant 1.000000e+00 : f32
    %32 = vector.broadcast %cst_16 : f32 to vector<8x128xf32>
    %33 = arith.addf %32, %31 : vector<8x128xf32>
    %34 = arith.divf %32, %33 : vector<8x128xf32>
    %35 = arith.mulf %26, %10 : vector<8x128xf32>
    %36 = arith.mulf %20, %28 : vector<8x128xf32>
    %37 = arith.addf %35, %36 : vector<8x128xf32>
    %38 = math.tanh %37 : vector<8x128xf32>
    %39 = arith.mulf %34, %38 : vector<8x128xf32>
    %c0_17 = arith.constant 0 : index
    %c0_18 = arith.constant 0 : index
    %40 = vector.load %arg9[%c0_17, %c0_18] : memref<64x128xf32, #tpu.memory_space<vmem>>, vector<8x128xf32>
    tpu.vector_store %arg9[%c0_17, %c0_18], %39 {strides = array<i32>} : memref<64x128xf32, #tpu.memory_space<vmem>>, vector<8x128xf32>,
    %c8 = arith.constant 8 : index
    %c0_19 = arith.constant 0 : index
    %41 = vector.load %arg11[%c8, %c0_19] : memref<64x512xf32, #tpu.memory_space<vmem>>, vector<8x512xf32>
    %42 = arith.truncf %39 : vector<8x128xf32> to vector<8x128xbf16>
    %cst_20 = arith.constant dense<0.000000e+00> : vector<8x512xf32>
    %43 = tpu.matmul %42, %8, %cst_20 {dimension_numbers = #tpu.dot_dimension_numbers<[1], [0], [0], [1], [0, 0, 1, 1], [], []>} : vector<8x128xbf16>, vector<128x512xbf16>, vector<8x512xf32> -> vector<8x512xf32>
    %44 = arith.addf %41, %43 : vector<8x512xf32>
    %45 = vector.extract_strided_slice %44 {offsets = [0, 0], sizes = [8, 128], strides = [1, 1]} : vector<8x512xf32> to vector<8x128xf32>
    %46 = arith.negf %45 : vector<8x128xf32>
    %47 = math.exp %46 : vector<8x128xf32>
    %cst_21 = arith.constant 1.000000e+00 : f32
    %48 = vector.broadcast %cst_21 : f32 to vector<8x128xf32>
    %49 = arith.addf %48, %47 : vector<8x128xf32>
    %50 = arith.divf %48, %49 : vector<8x128xf32>
    %51 = vector.extract_strided_slice %44 {offsets = [0, 128], sizes = [8, 128], strides = [1, 1]} : vector<8x512xf32> to vector<8x128xf32>
    %52 = arith.negf %51 : vector<8x128xf32>
    %53 = math.exp %52 : vector<8x128xf32>
    %cst_22 = arith.constant 1.000000e+00 : f32
    %54 = vector.broadcast %cst_22 : f32 to vector<8x128xf32>
    %55 = arith.addf %54, %53 : vector<8x128xf32>
    %56 = arith.divf %54, %55 : vector<8x128xf32>
    %57 = vector.extract_strided_slice %44 {offsets = [0, 256], sizes = [8, 128], strides = [1, 1]} : vector<8x512xf32> to vector<8x128xf32>
    %58 = math.tanh %57 : vector<8x128xf32>
    %59 = vector.extract_strided_slice %44 {offsets = [0, 384], sizes = [8, 128], strides = [1, 1]} : vector<8x512xf32> to vector<8x128xf32>
    %60 = arith.negf %59 : vector<8x128xf32>
    %61 = math.exp %60 : vector<8x128xf32>
    %cst_23 = arith.constant 1.000000e+00 : f32
    %62 = vector.broadcast %cst_23 : f32 to vector<8x128xf32>
    %63 = arith.addf %62, %61 : vector<8x128xf32>
    %64 = arith.divf %62, %63 : vector<8x128xf32>
    %65 = arith.mulf %56, %37 : vector<8x128xf32>
    %66 = arith.mulf %50, %58 : vector<8x128xf32>
    %67 = arith.addf %65, %66 : vector<8x128xf32>
    %68 = math.tanh %67 : vector<8x128xf32>
    %69 = arith.mulf %64, %68 : vector<8x128xf32>
    %c8_24 = arith.constant 8 : index
    %c0_25 = arith.constant 0 : index
    %70 = vector.load %arg9[%c8_24, %c0_25] : memref<64x128xf32, #tpu.memory_space<vmem>>, vector<8x128xf32>
    tpu.vector_store %arg9[%c8_24, %c0_25], %69 {strides = array<i32>} : memref<64x128xf32, #tpu.memory_space<vmem>>, vector<8x128xf32>,
    %c16 = arith.constant 16 : index
    %c0_26 = arith.constant 0 : index
    %71 = vector.load %arg11[%c16, %c0_26] : memref<64x512xf32, #tpu.memory_space<vmem>>, vector<8x512xf32>
    %72 = arith.truncf %69 : vector<8x128xf32> to vector<8x128xbf16>
    %cst_27 = arith.constant dense<0.000000e+00> : vector<8x512xf32>
    %73 = tpu.matmul %72, %8, %cst_27 {dimension_numbers = #tpu.dot_dimension_numbers<[1], [0], [0], [1], [0, 0, 1, 1], [], []>} : vector<8x128xbf16>, vector<128x512xbf16>, vector<8x512xf32> -> vector<8x512xf32>
    %74 = arith.addf %71, %73 : vector<8x512xf32>
    %75 = vector.extract_strided_slice %74 {offsets = [0, 0], sizes = [8, 128], strides = [1, 1]} : vector<8x512xf32> to vector<8x128xf32>
    %76 = arith.negf %75 : vector<8x128xf32>
    %77 = math.exp %76 : vector<8x128xf32>
    %cst_28 = arith.constant 1.000000e+00 : f32
    %78 = vector.broadcast %cst_28 : f32 to vector<8x128xf32>
    %79 = arith.addf %78, %77 : vector<8x128xf32>
    %80 = arith.divf %78, %79 : vector<8x128xf32>
    %81 = vector.extract_strided_slice %74 {offsets = [0, 128], sizes = [8, 128], strides = [1, 1]} : vector<8x512xf32> to vector<8x128xf32>
    %82 = arith.negf %81 : vector<8x128xf32>
    %83 = math.exp %82 : vector<8x128xf32>
    %cst_29 = arith.constant 1.000000e+00 : f32
    %84 = vector.broadcast %cst_29 : f32 to vector<8x128xf32>
    %85 = arith.addf %84, %83 : vector<8x128xf32>
    %86 = arith.divf %84, %85 : vector<8x128xf32>
    %87 = vector.extract_strided_slice %74 {offsets = [0, 256], sizes = [8, 128], strides = [1, 1]} : vector<8x512xf32> to vector<8x128xf32>
    %88 = math.tanh %87 : vector<8x128xf32>
    %89 = vector.extract_strided_slice %74 {offsets = [0, 384], sizes = [8, 128], strides = [1, 1]} : vector<8x512xf32> to vector<8x128xf32>
    %90 = arith.negf %89 : vector<8x128xf32>
    %91 = math.exp %90 : vector<8x128xf32>
    %cst_30 = arith.constant 1.000000e+00 : f32
    %92 = vector.broadcast %cst_30 : f32 to vector<8x128xf32>
    %93 = arith.addf %92, %91 : vector<8x128xf32>
    %94 = arith.divf %92, %93 : vector<8x128xf32>
    %95 = arith.mulf %86, %67 : vector<8x128xf32>
    %96 = arith.mulf %80, %88 : vector<8x128xf32>
    %97 = arith.addf %95, %96 : vector<8x128xf32>
    %98 = math.tanh %97 : vector<8x128xf32>
    %99 = arith.mulf %94, %98 : vector<8x128xf32>
    %c16_31 = arith.constant 16 : index
    %c0_32 = arith.constant 0 : index
    %100 = vector.load %arg9[%c16_31, %c0_32] : memref<64x128xf32, #tpu.memory_space<vmem>>, vector<8x128xf32>
    tpu.vector_store %arg9[%c16_31, %c0_32], %99 {strides = array<i32>} : memref<64x128xf32, #tpu.memory_space<vmem>>, vector<8x128xf32>,
    %c24 = arith.constant 24 : index
    %c0_33 = arith.constant 0 : index
    %101 = vector.load %arg11[%c24, %c0_33] : memref<64x512xf32, #tpu.memory_space<vmem>>, vector<8x512xf32>
    %102 = arith.truncf %99 : vector<8x128xf32> to vector<8x128xbf16>
    %cst_34 = arith.constant dense<0.000000e+00> : vector<8x512xf32>
    %103 = tpu.matmul %102, %8, %cst_34 {dimension_numbers = #tpu.dot_dimension_numbers<[1], [0], [0], [1], [0, 0, 1, 1], [], []>} : vector<8x128xbf16>, vector<128x512xbf16>, vector<8x512xf32> -> vector<8x512xf32>
    %104 = arith.addf %101, %103 : vector<8x512xf32>
    %105 = vector.extract_strided_slice %104 {offsets = [0, 0], sizes = [8, 128], strides = [1, 1]} : vector<8x512xf32> to vector<8x128xf32>
    %106 = arith.negf %105 : vector<8x128xf32>
    %107 = math.exp %106 : vector<8x128xf32>
    %cst_35 = arith.constant 1.000000e+00 : f32
    %108 = vector.broadcast %cst_35 : f32 to vector<8x128xf32>
    %109 = arith.addf %108, %107 : vector<8x128xf32>
    %110 = arith.divf %108, %109 : vector<8x128xf32>
    %111 = vector.extract_strided_slice %104 {offsets = [0, 128], sizes = [8, 128], strides = [1, 1]} : vector<8x512xf32> to vector<8x128xf32>
    %112 = arith.negf %111 : vector<8x128xf32>
    %113 = math.exp %112 : vector<8x128xf32>
    %cst_36 = arith.constant 1.000000e+00 : f32
    %114 = vector.broadcast %cst_36 : f32 to vector<8x128xf32>
    %115 = arith.addf %114, %113 : vector<8x128xf32>
    %116 = arith.divf %114, %115 : vector<8x128xf32>
    %117 = vector.extract_strided_slice %104 {offsets = [0, 256], sizes = [8, 128], strides = [1, 1]} : vector<8x512xf32> to vector<8x128xf32>
    %118 = math.tanh %117 : vector<8x128xf32>
    %119 = vector.extract_strided_slice %104 {offsets = [0, 384], sizes = [8, 128], strides = [1, 1]} : vector<8x512xf32> to vector<8x128xf32>
    %120 = arith.negf %119 : vector<8x128xf32>
    %121 = math.exp %120 : vector<8x128xf32>
    %cst_37 = arith.constant 1.000000e+00 : f32
    %122 = vector.broadcast %cst_37 : f32 to vector<8x128xf32>
    %123 = arith.addf %122, %121 : vector<8x128xf32>
    %124 = arith.divf %122, %123 : vector<8x128xf32>
    %125 = arith.mulf %116, %97 : vector<8x128xf32>
    %126 = arith.mulf %110, %118 : vector<8x128xf32>
    %127 = arith.addf %125, %126 : vector<8x128xf32>
    %128 = math.tanh %127 : vector<8x128xf32>
    %129 = arith.mulf %124, %128 : vector<8x128xf32>
    %c24_38 = arith.constant 24 : index
    %c0_39 = arith.constant 0 : index
    %130 = vector.load %arg9[%c24_38, %c0_39] : memref<64x128xf32, #tpu.memory_space<vmem>>, vector<8x128xf32>
    tpu.vector_store %arg9[%c24_38, %c0_39], %129 {strides = array<i32>} : memref<64x128xf32, #tpu.memory_space<vmem>>, vector<8x128xf32>,
    %c32 = arith.constant 32 : index
    %c0_40 = arith.constant 0 : index
    %131 = vector.load %arg11[%c32, %c0_40] : memref<64x512xf32, #tpu.memory_space<vmem>>, vector<8x512xf32>
    %132 = arith.truncf %129 : vector<8x128xf32> to vector<8x128xbf16>
    %cst_41 = arith.constant dense<0.000000e+00> : vector<8x512xf32>
    %133 = tpu.matmul %132, %8, %cst_41 {dimension_numbers = #tpu.dot_dimension_numbers<[1], [0], [0], [1], [0, 0, 1, 1], [], []>} : vector<8x128xbf16>, vector<128x512xbf16>, vector<8x512xf32> -> vector<8x512xf32>
    %134 = arith.addf %131, %133 : vector<8x512xf32>
    %135 = vector.extract_strided_slice %134 {offsets = [0, 0], sizes = [8, 128], strides = [1, 1]} : vector<8x512xf32> to vector<8x128xf32>
    %136 = arith.negf %135 : vector<8x128xf32>
    %137 = math.exp %136 : vector<8x128xf32>
    %cst_42 = arith.constant 1.000000e+00 : f32
    %138 = vector.broadcast %cst_42 : f32 to vector<8x128xf32>
    %139 = arith.addf %138, %137 : vector<8x128xf32>
    %140 = arith.divf %138, %139 : vector<8x128xf32>
    %141 = vector.extract_strided_slice %134 {offsets = [0, 128], sizes = [8, 128], strides = [1, 1]} : vector<8x512xf32> to vector<8x128xf32>
    %142 = arith.negf %141 : vector<8x128xf32>
    %143 = math.exp %142 : vector<8x128xf32>
    %cst_43 = arith.constant 1.000000e+00 : f32
    %144 = vector.broadcast %cst_43 : f32 to vector<8x128xf32>
    %145 = arith.addf %144, %143 : vector<8x128xf32>
    %146 = arith.divf %144, %145 : vector<8x128xf32>
    %147 = vector.extract_strided_slice %134 {offsets = [0, 256], sizes = [8, 128], strides = [1, 1]} : vector<8x512xf32> to vector<8x128xf32>
    %148 = math.tanh %147 : vector<8x128xf32>
    %149 = vector.extract_strided_slice %134 {offsets = [0, 384], sizes = [8, 128], strides = [1, 1]} : vector<8x512xf32> to vector<8x128xf32>
    %150 = arith.negf %149 : vector<8x128xf32>
    %151 = math.exp %150 : vector<8x128xf32>
    %cst_44 = arith.constant 1.000000e+00 : f32
    %152 = vector.broadcast %cst_44 : f32 to vector<8x128xf32>
    %153 = arith.addf %152, %151 : vector<8x128xf32>
    %154 = arith.divf %152, %153 : vector<8x128xf32>
    %155 = arith.mulf %146, %127 : vector<8x128xf32>
    %156 = arith.mulf %140, %148 : vector<8x128xf32>
    %157 = arith.addf %155, %156 : vector<8x128xf32>
    %158 = math.tanh %157 : vector<8x128xf32>
    %159 = arith.mulf %154, %158 : vector<8x128xf32>
    %c32_45 = arith.constant 32 : index
    %c0_46 = arith.constant 0 : index
    %160 = vector.load %arg9[%c32_45, %c0_46] : memref<64x128xf32, #tpu.memory_space<vmem>>, vector<8x128xf32>
    tpu.vector_store %arg9[%c32_45, %c0_46], %159 {strides = array<i32>} : memref<64x128xf32, #tpu.memory_space<vmem>>, vector<8x128xf32>,
    %c40 = arith.constant 40 : index
    %c0_47 = arith.constant 0 : index
    %161 = vector.load %arg11[%c40, %c0_47] : memref<64x512xf32, #tpu.memory_space<vmem>>, vector<8x512xf32>
    %162 = arith.truncf %159 : vector<8x128xf32> to vector<8x128xbf16>
    %cst_48 = arith.constant dense<0.000000e+00> : vector<8x512xf32>
    %163 = tpu.matmul %162, %8, %cst_48 {dimension_numbers = #tpu.dot_dimension_numbers<[1], [0], [0], [1], [0, 0, 1, 1], [], []>} : vector<8x128xbf16>, vector<128x512xbf16>, vector<8x512xf32> -> vector<8x512xf32>
    %164 = arith.addf %161, %163 : vector<8x512xf32>
    %165 = vector.extract_strided_slice %164 {offsets = [0, 0], sizes = [8, 128], strides = [1, 1]} : vector<8x512xf32> to vector<8x128xf32>
    %166 = arith.negf %165 : vector<8x128xf32>
    %167 = math.exp %166 : vector<8x128xf32>
    %cst_49 = arith.constant 1.000000e+00 : f32
    %168 = vector.broadcast %cst_49 : f32 to vector<8x128xf32>
    %169 = arith.addf %168, %167 : vector<8x128xf32>
    %170 = arith.divf %168, %169 : vector<8x128xf32>
    %171 = vector.extract_strided_slice %164 {offsets = [0, 128], sizes = [8, 128], strides = [1, 1]} : vector<8x512xf32> to vector<8x128xf32>
    %172 = arith.negf %171 : vector<8x128xf32>
    %173 = math.exp %172 : vector<8x128xf32>
    %cst_50 = arith.constant 1.000000e+00 : f32
    %174 = vector.broadcast %cst_50 : f32 to vector<8x128xf32>
    %175 = arith.addf %174, %173 : vector<8x128xf32>
    %176 = arith.divf %174, %175 : vector<8x128xf32>
    %177 = vector.extract_strided_slice %164 {offsets = [0, 256], sizes = [8, 128], strides = [1, 1]} : vector<8x512xf32> to vector<8x128xf32>
    %178 = math.tanh %177 : vector<8x128xf32>
    %179 = vector.extract_strided_slice %164 {offsets = [0, 384], sizes = [8, 128], strides = [1, 1]} : vector<8x512xf32> to vector<8x128xf32>
    %180 = arith.negf %179 : vector<8x128xf32>
    %181 = math.exp %180 : vector<8x128xf32>
    %cst_51 = arith.constant 1.000000e+00 : f32
    %182 = vector.broadcast %cst_51 : f32 to vector<8x128xf32>
    %183 = arith.addf %182, %181 : vector<8x128xf32>
    %184 = arith.divf %182, %183 : vector<8x128xf32>
    %185 = arith.mulf %176, %157 : vector<8x128xf32>
    %186 = arith.mulf %170, %178 : vector<8x128xf32>
    %187 = arith.addf %185, %186 : vector<8x128xf32>
    %188 = math.tanh %187 : vector<8x128xf32>
    %189 = arith.mulf %184, %188 : vector<8x128xf32>
    %c40_52 = arith.constant 40 : index
    %c0_53 = arith.constant 0 : index
    %190 = vector.load %arg9[%c40_52, %c0_53] : memref<64x128xf32, #tpu.memory_space<vmem>>, vector<8x128xf32>
    tpu.vector_store %arg9[%c40_52, %c0_53], %189 {strides = array<i32>} : memref<64x128xf32, #tpu.memory_space<vmem>>, vector<8x128xf32>,
    %c48 = arith.constant 48 : index
    %c0_54 = arith.constant 0 : index
    %191 = vector.load %arg11[%c48, %c0_54] : memref<64x512xf32, #tpu.memory_space<vmem>>, vector<8x512xf32>
    %192 = arith.truncf %189 : vector<8x128xf32> to vector<8x128xbf16>
    %cst_55 = arith.constant dense<0.000000e+00> : vector<8x512xf32>
    %193 = tpu.matmul %192, %8, %cst_55 {dimension_numbers = #tpu.dot_dimension_numbers<[1], [0], [0], [1], [0, 0, 1, 1], [], []>} : vector<8x128xbf16>, vector<128x512xbf16>, vector<8x512xf32> -> vector<8x512xf32>
    %194 = arith.addf %191, %193 : vector<8x512xf32>
    %195 = vector.extract_strided_slice %194 {offsets = [0, 0], sizes = [8, 128], strides = [1, 1]} : vector<8x512xf32> to vector<8x128xf32>
    %196 = arith.negf %195 : vector<8x128xf32>
    %197 = math.exp %196 : vector<8x128xf32>
    %cst_56 = arith.constant 1.000000e+00 : f32
    %198 = vector.broadcast %cst_56 : f32 to vector<8x128xf32>
    %199 = arith.addf %198, %197 : vector<8x128xf32>
    %200 = arith.divf %198, %199 : vector<8x128xf32>
    %201 = vector.extract_strided_slice %194 {offsets = [0, 128], sizes = [8, 128], strides = [1, 1]} : vector<8x512xf32> to vector<8x128xf32>
    %202 = arith.negf %201 : vector<8x128xf32>
    %203 = math.exp %202 : vector<8x128xf32>
    %cst_57 = arith.constant 1.000000e+00 : f32
    %204 = vector.broadcast %cst_57 : f32 to vector<8x128xf32>
    %205 = arith.addf %204, %203 : vector<8x128xf32>
    %206 = arith.divf %204, %205 : vector<8x128xf32>
    %207 = vector.extract_strided_slice %194 {offsets = [0, 256], sizes = [8, 128], strides = [1, 1]} : vector<8x512xf32> to vector<8x128xf32>
    %208 = math.tanh %207 : vector<8x128xf32>
    %209 = vector.extract_strided_slice %194 {offsets = [0, 384], sizes = [8, 128], strides = [1, 1]} : vector<8x512xf32> to vector<8x128xf32>
    %210 = arith.negf %209 : vector<8x128xf32>
    %211 = math.exp %210 : vector<8x128xf32>
    %cst_58 = arith.constant 1.000000e+00 : f32
    %212 = vector.broadcast %cst_58 : f32 to vector<8x128xf32>
    %213 = arith.addf %212, %211 : vector<8x128xf32>
    %214 = arith.divf %212, %213 : vector<8x128xf32>
    %215 = arith.mulf %206, %187 : vector<8x128xf32>
    %216 = arith.mulf %200, %208 : vector<8x128xf32>
    %217 = arith.addf %215, %216 : vector<8x128xf32>
    %218 = math.tanh %217 : vector<8x128xf32>
    %219 = arith.mulf %214, %218 : vector<8x128xf32>
    %c48_59 = arith.constant 48 : index
    %c0_60 = arith.constant 0 : index
    %220 = vector.load %arg9[%c48_59, %c0_60] : memref<64x128xf32, #tpu.memory_space<vmem>>, vector<8x128xf32>
    tpu.vector_store %arg9[%c48_59, %c0_60], %219 {strides = array<i32>} : memref<64x128xf32, #tpu.memory_space<vmem>>, vector<8x128xf32>,
    %c56 = arith.constant 56 : index
    %c0_61 = arith.constant 0 : index
    %221 = vector.load %arg11[%c56, %c0_61] : memref<64x512xf32, #tpu.memory_space<vmem>>, vector<8x512xf32>
    %222 = arith.truncf %219 : vector<8x128xf32> to vector<8x128xbf16>
    %cst_62 = arith.constant dense<0.000000e+00> : vector<8x512xf32>
    %223 = tpu.matmul %222, %8, %cst_62 {dimension_numbers = #tpu.dot_dimension_numbers<[1], [0], [0], [1], [0, 0, 1, 1], [], []>} : vector<8x128xbf16>, vector<128x512xbf16>, vector<8x512xf32> -> vector<8x512xf32>
    %224 = arith.addf %221, %223 : vector<8x512xf32>
    %225 = vector.extract_strided_slice %224 {offsets = [0, 0], sizes = [8, 128], strides = [1, 1]} : vector<8x512xf32> to vector<8x128xf32>
    %226 = arith.negf %225 : vector<8x128xf32>
    %227 = math.exp %226 : vector<8x128xf32>
    %cst_63 = arith.constant 1.000000e+00 : f32
    %228 = vector.broadcast %cst_63 : f32 to vector<8x128xf32>
    %229 = arith.addf %228, %227 : vector<8x128xf32>
    %230 = arith.divf %228, %229 : vector<8x128xf32>
    %231 = vector.extract_strided_slice %224 {offsets = [0, 128], sizes = [8, 128], strides = [1, 1]} : vector<8x512xf32> to vector<8x128xf32>
    %232 = arith.negf %231 : vector<8x128xf32>
    %233 = math.exp %232 : vector<8x128xf32>
    %cst_64 = arith.constant 1.000000e+00 : f32
    %234 = vector.broadcast %cst_64 : f32 to vector<8x128xf32>
    %235 = arith.addf %234, %233 : vector<8x128xf32>
    %236 = arith.divf %234, %235 : vector<8x128xf32>
    %237 = vector.extract_strided_slice %224 {offsets = [0, 256], sizes = [8, 128], strides = [1, 1]} : vector<8x512xf32> to vector<8x128xf32>
    %238 = math.tanh %237 : vector<8x128xf32>
    %239 = vector.extract_strided_slice %224 {offsets = [0, 384], sizes = [8, 128], strides = [1, 1]} : vector<8x512xf32> to vector<8x128xf32>
    %240 = arith.negf %239 : vector<8x128xf32>
    %241 = math.exp %240 : vector<8x128xf32>
    %cst_65 = arith.constant 1.000000e+00 : f32
    %242 = vector.broadcast %cst_65 : f32 to vector<8x128xf32>
    %243 = arith.addf %242, %241 : vector<8x128xf32>
    %244 = arith.divf %242, %243 : vector<8x128xf32>
    %245 = arith.mulf %236, %217 : vector<8x128xf32>
    %246 = arith.mulf %230, %238 : vector<8x128xf32>
    %247 = arith.addf %245, %246 : vector<8x128xf32>
    %248 = math.tanh %247 : vector<8x128xf32>
    %249 = arith.mulf %244, %248 : vector<8x128xf32>
    %c56_66 = arith.constant 56 : index
    %c0_67 = arith.constant 0 : index
    %250 = vector.load %arg9[%c56_66, %c0_67] : memref<64x128xf32, #tpu.memory_space<vmem>>, vector<8x128xf32>
    tpu.vector_store %arg9[%c56_66, %c0_67], %249 {strides = array<i32>} : memref<64x128xf32, #tpu.memory_space<vmem>>, vector<8x128xf32>,
    %c0_68 = arith.constant 0 : index
    %c0_69 = arith.constant 0 : index
    %251 = vector.load %arg9[%c0_68, %c0_69] : memref<64x128xf32, #tpu.memory_space<vmem>>, vector<64x128xf32>
    %252 = arith.truncf %251 : vector<64x128xf32> to vector<64x128xbf16>
    %c0_70 = arith.constant 0 : index
    %c0_71 = arith.constant 0 : index
    %253 = vector.load %arg4[%c0_70, %c0_71] : memref<128x512xbf16, #tpu.memory_space<vmem>>, vector<128x512xbf16>
    %cst_72 = arith.constant dense<0.000000e+00> : vector<64x512xf32>
    %254 = tpu.matmul %252, %253, %cst_72 {dimension_numbers = #tpu.dot_dimension_numbers<[1], [0], [0], [1], [0, 0, 1, 1], [], []>} : vector<64x128xbf16>, vector<128x512xbf16>, vector<64x512xf32> -> vector<64x512xf32>
    %c0_73 = arith.constant 0 : index
    %c0_74 = arith.constant 0 : index
    %255 = vector.load %arg6[%c0_73, %c0_74] : memref<1x512xf32, #tpu.memory_space<vmem>>, vector<1x512xf32>
    %256 = vector.broadcast %255 : vector<1x512xf32> to vector<64x512xf32>
    %257 = arith.addf %254, %256 : vector<64x512xf32>
    %c0_75 = arith.constant 0 : index
    %c0_76 = arith.constant 0 : index
    %258 = vector.load %arg11[%c0_75, %c0_76] : memref<64x512xf32, #tpu.memory_space<vmem>>, vector<64x512xf32>
    tpu.vector_store %arg11[%c0_75, %c0_76], %257 {strides = array<i32>} : memref<64x512xf32, #tpu.memory_space<vmem>>, vector<64x512xf32>,
    %c0_77 = arith.constant 0 : index
    %c0_78 = arith.constant 0 : index
    %259 = vector.load %arg5[%c0_77, %c0_78] : memref<128x512xbf16, #tpu.memory_space<vmem>>, vector<128x512xbf16>
    %cst_79 = arith.constant 0.000000e+00 : f32
    %260 = vector.broadcast %cst_79 : f32 to vector<8x128xf32>
    %cst_80 = arith.constant 0.000000e+00 : f32
    %261 = vector.broadcast %cst_80 : f32 to vector<8x128xf32>
    %c0_81 = arith.constant 0 : index
    %c0_82 = arith.constant 0 : index
    %262 = vector.load %arg11[%c0_81, %c0_82] : memref<64x512xf32, #tpu.memory_space<vmem>>, vector<8x512xf32>
    %263 = arith.truncf %260 : vector<8x128xf32> to vector<8x128xbf16>
    %cst_83 = arith.constant dense<0.000000e+00> : vector<8x512xf32>
    %264 = tpu.matmul %263, %259, %cst_83 {dimension_numbers = #tpu.dot_dimension_numbers<[1], [0], [0], [1], [0, 0, 1, 1], [], []>} : vector<8x128xbf16>, vector<128x512xbf16>, vector<8x512xf32> -> vector<8x512xf32>
    %265 = arith.addf %262, %264 : vector<8x512xf32>
    %266 = vector.extract_strided_slice %265 {offsets = [0, 0], sizes = [8, 128], strides = [1, 1]} : vector<8x512xf32> to vector<8x128xf32>
    %267 = arith.negf %266 : vector<8x128xf32>
    %268 = math.exp %267 : vector<8x128xf32>
    %cst_84 = arith.constant 1.000000e+00 : f32
    %269 = vector.broadcast %cst_84 : f32 to vector<8x128xf32>
    %270 = arith.addf %269, %268 : vector<8x128xf32>
    %271 = arith.divf %269, %270 : vector<8x128xf32>
    %272 = vector.extract_strided_slice %265 {offsets = [0, 128], sizes = [8, 128], strides = [1, 1]} : vector<8x512xf32> to vector<8x128xf32>
    %273 = arith.negf %272 : vector<8x128xf32>
    %274 = math.exp %273 : vector<8x128xf32>
    %cst_85 = arith.constant 1.000000e+00 : f32
    %275 = vector.broadcast %cst_85 : f32 to vector<8x128xf32>
    %276 = arith.addf %275, %274 : vector<8x128xf32>
    %277 = arith.divf %275, %276 : vector<8x128xf32>
    %278 = vector.extract_strided_slice %265 {offsets = [0, 256], sizes = [8, 128], strides = [1, 1]} : vector<8x512xf32> to vector<8x128xf32>
    %279 = math.tanh %278 : vector<8x128xf32>
    %280 = vector.extract_strided_slice %265 {offsets = [0, 384], sizes = [8, 128], strides = [1, 1]} : vector<8x512xf32> to vector<8x128xf32>
    %281 = arith.negf %280 : vector<8x128xf32>
    %282 = math.exp %281 : vector<8x128xf32>
    %cst_86 = arith.constant 1.000000e+00 : f32
    %283 = vector.broadcast %cst_86 : f32 to vector<8x128xf32>
    %284 = arith.addf %283, %282 : vector<8x128xf32>
    %285 = arith.divf %283, %284 : vector<8x128xf32>
    %286 = arith.mulf %277, %261 : vector<8x128xf32>
    %287 = arith.mulf %271, %279 : vector<8x128xf32>
    %288 = arith.addf %286, %287 : vector<8x128xf32>
    %289 = math.tanh %288 : vector<8x128xf32>
    %290 = arith.mulf %285, %289 : vector<8x128xf32>
    %c0_87 = arith.constant 0 : index
    %c0_88 = arith.constant 0 : index
    %291 = vector.load %arg9[%c0_87, %c0_88] : memref<64x128xf32, #tpu.memory_space<vmem>>, vector<8x128xf32>
    tpu.vector_store %arg9[%c0_87, %c0_88], %290 {strides = array<i32>} : memref<64x128xf32, #tpu.memory_space<vmem>>, vector<8x128xf32>,
    %c8_89 = arith.constant 8 : index
    %c0_90 = arith.constant 0 : index
    %292 = vector.load %arg11[%c8_89, %c0_90] : memref<64x512xf32, #tpu.memory_space<vmem>>, vector<8x512xf32>
    %293 = arith.truncf %290 : vector<8x128xf32> to vector<8x128xbf16>
    %cst_91 = arith.constant dense<0.000000e+00> : vector<8x512xf32>
    %294 = tpu.matmul %293, %259, %cst_91 {dimension_numbers = #tpu.dot_dimension_numbers<[1], [0], [0], [1], [0, 0, 1, 1], [], []>} : vector<8x128xbf16>, vector<128x512xbf16>, vector<8x512xf32> -> vector<8x512xf32>
    %295 = arith.addf %292, %294 : vector<8x512xf32>
    %296 = vector.extract_strided_slice %295 {offsets = [0, 0], sizes = [8, 128], strides = [1, 1]} : vector<8x512xf32> to vector<8x128xf32>
    %297 = arith.negf %296 : vector<8x128xf32>
    %298 = math.exp %297 : vector<8x128xf32>
    %cst_92 = arith.constant 1.000000e+00 : f32
    %299 = vector.broadcast %cst_92 : f32 to vector<8x128xf32>
    %300 = arith.addf %299, %298 : vector<8x128xf32>
    %301 = arith.divf %299, %300 : vector<8x128xf32>
    %302 = vector.extract_strided_slice %295 {offsets = [0, 128], sizes = [8, 128], strides = [1, 1]} : vector<8x512xf32> to vector<8x128xf32>
    %303 = arith.negf %302 : vector<8x128xf32>
    %304 = math.exp %303 : vector<8x128xf32>
    %cst_93 = arith.constant 1.000000e+00 : f32
    %305 = vector.broadcast %cst_93 : f32 to vector<8x128xf32>
    %306 = arith.addf %305, %304 : vector<8x128xf32>
    %307 = arith.divf %305, %306 : vector<8x128xf32>
    %308 = vector.extract_strided_slice %295 {offsets = [0, 256], sizes = [8, 128], strides = [1, 1]} : vector<8x512xf32> to vector<8x128xf32>
    %309 = math.tanh %308 : vector<8x128xf32>
    %310 = vector.extract_strided_slice %295 {offsets = [0, 384], sizes = [8, 128], strides = [1, 1]} : vector<8x512xf32> to vector<8x128xf32>
    %311 = arith.negf %310 : vector<8x128xf32>
    %312 = math.exp %311 : vector<8x128xf32>
    %cst_94 = arith.constant 1.000000e+00 : f32
    %313 = vector.broadcast %cst_94 : f32 to vector<8x128xf32>
    %314 = arith.addf %313, %312 : vector<8x128xf32>
    %315 = arith.divf %313, %314 : vector<8x128xf32>
    %316 = arith.mulf %307, %288 : vector<8x128xf32>
    %317 = arith.mulf %301, %309 : vector<8x128xf32>
    %318 = arith.addf %316, %317 : vector<8x128xf32>
    %319 = math.tanh %318 : vector<8x128xf32>
    %320 = arith.mulf %315, %319 : vector<8x128xf32>
    %c8_95 = arith.constant 8 : index
    %c0_96 = arith.constant 0 : index
    %321 = vector.load %arg9[%c8_95, %c0_96] : memref<64x128xf32, #tpu.memory_space<vmem>>, vector<8x128xf32>
    tpu.vector_store %arg9[%c8_95, %c0_96], %320 {strides = array<i32>} : memref<64x128xf32, #tpu.memory_space<vmem>>, vector<8x128xf32>,
    %c16_97 = arith.constant 16 : index
    %c0_98 = arith.constant 0 : index
    %322 = vector.load %arg11[%c16_97, %c0_98] : memref<64x512xf32, #tpu.memory_space<vmem>>, vector<8x512xf32>
    %323 = arith.truncf %320 : vector<8x128xf32> to vector<8x128xbf16>
    %cst_99 = arith.constant dense<0.000000e+00> : vector<8x512xf32>
    %324 = tpu.matmul %323, %259, %cst_99 {dimension_numbers = #tpu.dot_dimension_numbers<[1], [0], [0], [1], [0, 0, 1, 1], [], []>} : vector<8x128xbf16>, vector<128x512xbf16>, vector<8x512xf32> -> vector<8x512xf32>
    %325 = arith.addf %322, %324 : vector<8x512xf32>
    %326 = vector.extract_strided_slice %325 {offsets = [0, 0], sizes = [8, 128], strides = [1, 1]} : vector<8x512xf32> to vector<8x128xf32>
    %327 = arith.negf %326 : vector<8x128xf32>
    %328 = math.exp %327 : vector<8x128xf32>
    %cst_100 = arith.constant 1.000000e+00 : f32
    %329 = vector.broadcast %cst_100 : f32 to vector<8x128xf32>
    %330 = arith.addf %329, %328 : vector<8x128xf32>
    %331 = arith.divf %329, %330 : vector<8x128xf32>
    %332 = vector.extract_strided_slice %325 {offsets = [0, 128], sizes = [8, 128], strides = [1, 1]} : vector<8x512xf32> to vector<8x128xf32>
    %333 = arith.negf %332 : vector<8x128xf32>
    %334 = math.exp %333 : vector<8x128xf32>
    %cst_101 = arith.constant 1.000000e+00 : f32
    %335 = vector.broadcast %cst_101 : f32 to vector<8x128xf32>
    %336 = arith.addf %335, %334 : vector<8x128xf32>
    %337 = arith.divf %335, %336 : vector<8x128xf32>
    %338 = vector.extract_strided_slice %325 {offsets = [0, 256], sizes = [8, 128], strides = [1, 1]} : vector<8x512xf32> to vector<8x128xf32>
    %339 = math.tanh %338 : vector<8x128xf32>
    %340 = vector.extract_strided_slice %325 {offsets = [0, 384], sizes = [8, 128], strides = [1, 1]} : vector<8x512xf32> to vector<8x128xf32>
    %341 = arith.negf %340 : vector<8x128xf32>
    %342 = math.exp %341 : vector<8x128xf32>
    %cst_102 = arith.constant 1.000000e+00 : f32
    %343 = vector.broadcast %cst_102 : f32 to vector<8x128xf32>
    %344 = arith.addf %343, %342 : vector<8x128xf32>
    %345 = arith.divf %343, %344 : vector<8x128xf32>
    %346 = arith.mulf %337, %318 : vector<8x128xf32>
    %347 = arith.mulf %331, %339 : vector<8x128xf32>
    %348 = arith.addf %346, %347 : vector<8x128xf32>
    %349 = math.tanh %348 : vector<8x128xf32>
    %350 = arith.mulf %345, %349 : vector<8x128xf32>
    %c16_103 = arith.constant 16 : index
    %c0_104 = arith.constant 0 : index
    %351 = vector.load %arg9[%c16_103, %c0_104] : memref<64x128xf32, #tpu.memory_space<vmem>>, vector<8x128xf32>
    tpu.vector_store %arg9[%c16_103, %c0_104], %350 {strides = array<i32>} : memref<64x128xf32, #tpu.memory_space<vmem>>, vector<8x128xf32>,
    %c24_105 = arith.constant 24 : index
    %c0_106 = arith.constant 0 : index
    %352 = vector.load %arg11[%c24_105, %c0_106] : memref<64x512xf32, #tpu.memory_space<vmem>>, vector<8x512xf32>
    %353 = arith.truncf %350 : vector<8x128xf32> to vector<8x128xbf16>
    %cst_107 = arith.constant dense<0.000000e+00> : vector<8x512xf32>
    %354 = tpu.matmul %353, %259, %cst_107 {dimension_numbers = #tpu.dot_dimension_numbers<[1], [0], [0], [1], [0, 0, 1, 1], [], []>} : vector<8x128xbf16>, vector<128x512xbf16>, vector<8x512xf32> -> vector<8x512xf32>
    %355 = arith.addf %352, %354 : vector<8x512xf32>
    %356 = vector.extract_strided_slice %355 {offsets = [0, 0], sizes = [8, 128], strides = [1, 1]} : vector<8x512xf32> to vector<8x128xf32>
    %357 = arith.negf %356 : vector<8x128xf32>
    %358 = math.exp %357 : vector<8x128xf32>
    %cst_108 = arith.constant 1.000000e+00 : f32
    %359 = vector.broadcast %cst_108 : f32 to vector<8x128xf32>
    %360 = arith.addf %359, %358 : vector<8x128xf32>
    %361 = arith.divf %359, %360 : vector<8x128xf32>
    %362 = vector.extract_strided_slice %355 {offsets = [0, 128], sizes = [8, 128], strides = [1, 1]} : vector<8x512xf32> to vector<8x128xf32>
    %363 = arith.negf %362 : vector<8x128xf32>
    %364 = math.exp %363 : vector<8x128xf32>
    %cst_109 = arith.constant 1.000000e+00 : f32
    %365 = vector.broadcast %cst_109 : f32 to vector<8x128xf32>
    %366 = arith.addf %365, %364 : vector<8x128xf32>
    %367 = arith.divf %365, %366 : vector<8x128xf32>
    %368 = vector.extract_strided_slice %355 {offsets = [0, 256], sizes = [8, 128], strides = [1, 1]} : vector<8x512xf32> to vector<8x128xf32>
    %369 = math.tanh %368 : vector<8x128xf32>
    %370 = vector.extract_strided_slice %355 {offsets = [0, 384], sizes = [8, 128], strides = [1, 1]} : vector<8x512xf32> to vector<8x128xf32>
    %371 = arith.negf %370 : vector<8x128xf32>
    %372 = math.exp %371 : vector<8x128xf32>
    %cst_110 = arith.constant 1.000000e+00 : f32
    %373 = vector.broadcast %cst_110 : f32 to vector<8x128xf32>
    %374 = arith.addf %373, %372 : vector<8x128xf32>
    %375 = arith.divf %373, %374 : vector<8x128xf32>
    %376 = arith.mulf %367, %348 : vector<8x128xf32>
    %377 = arith.mulf %361, %369 : vector<8x128xf32>
    %378 = arith.addf %376, %377 : vector<8x128xf32>
    %379 = math.tanh %378 : vector<8x128xf32>
    %380 = arith.mulf %375, %379 : vector<8x128xf32>
    %c24_111 = arith.constant 24 : index
    %c0_112 = arith.constant 0 : index
    %381 = vector.load %arg9[%c24_111, %c0_112] : memref<64x128xf32, #tpu.memory_space<vmem>>, vector<8x128xf32>
    tpu.vector_store %arg9[%c24_111, %c0_112], %380 {strides = array<i32>} : memref<64x128xf32, #tpu.memory_space<vmem>>, vector<8x128xf32>,
    %c32_113 = arith.constant 32 : index
    %c0_114 = arith.constant 0 : index
    %382 = vector.load %arg11[%c32_113, %c0_114] : memref<64x512xf32, #tpu.memory_space<vmem>>, vector<8x512xf32>
    %383 = arith.truncf %380 : vector<8x128xf32> to vector<8x128xbf16>
    %cst_115 = arith.constant dense<0.000000e+00> : vector<8x512xf32>
    %384 = tpu.matmul %383, %259, %cst_115 {dimension_numbers = #tpu.dot_dimension_numbers<[1], [0], [0], [1], [0, 0, 1, 1], [], []>} : vector<8x128xbf16>, vector<128x512xbf16>, vector<8x512xf32> -> vector<8x512xf32>
    %385 = arith.addf %382, %384 : vector<8x512xf32>
    %386 = vector.extract_strided_slice %385 {offsets = [0, 0], sizes = [8, 128], strides = [1, 1]} : vector<8x512xf32> to vector<8x128xf32>
    %387 = arith.negf %386 : vector<8x128xf32>
    %388 = math.exp %387 : vector<8x128xf32>
    %cst_116 = arith.constant 1.000000e+00 : f32
    %389 = vector.broadcast %cst_116 : f32 to vector<8x128xf32>
    %390 = arith.addf %389, %388 : vector<8x128xf32>
    %391 = arith.divf %389, %390 : vector<8x128xf32>
    %392 = vector.extract_strided_slice %385 {offsets = [0, 128], sizes = [8, 128], strides = [1, 1]} : vector<8x512xf32> to vector<8x128xf32>
    %393 = arith.negf %392 : vector<8x128xf32>
    %394 = math.exp %393 : vector<8x128xf32>
    %cst_117 = arith.constant 1.000000e+00 : f32
    %395 = vector.broadcast %cst_117 : f32 to vector<8x128xf32>
    %396 = arith.addf %395, %394 : vector<8x128xf32>
    %397 = arith.divf %395, %396 : vector<8x128xf32>
    %398 = vector.extract_strided_slice %385 {offsets = [0, 256], sizes = [8, 128], strides = [1, 1]} : vector<8x512xf32> to vector<8x128xf32>
    %399 = math.tanh %398 : vector<8x128xf32>
    %400 = vector.extract_strided_slice %385 {offsets = [0, 384], sizes = [8, 128], strides = [1, 1]} : vector<8x512xf32> to vector<8x128xf32>
    %401 = arith.negf %400 : vector<8x128xf32>
    %402 = math.exp %401 : vector<8x128xf32>
    %cst_118 = arith.constant 1.000000e+00 : f32
    %403 = vector.broadcast %cst_118 : f32 to vector<8x128xf32>
    %404 = arith.addf %403, %402 : vector<8x128xf32>
    %405 = arith.divf %403, %404 : vector<8x128xf32>
    %406 = arith.mulf %397, %378 : vector<8x128xf32>
    %407 = arith.mulf %391, %399 : vector<8x128xf32>
    %408 = arith.addf %406, %407 : vector<8x128xf32>
    %409 = math.tanh %408 : vector<8x128xf32>
    %410 = arith.mulf %405, %409 : vector<8x128xf32>
    %c32_119 = arith.constant 32 : index
    %c0_120 = arith.constant 0 : index
    %411 = vector.load %arg9[%c32_119, %c0_120] : memref<64x128xf32, #tpu.memory_space<vmem>>, vector<8x128xf32>
    tpu.vector_store %arg9[%c32_119, %c0_120], %410 {strides = array<i32>} : memref<64x128xf32, #tpu.memory_space<vmem>>, vector<8x128xf32>,
    %c40_121 = arith.constant 40 : index
    %c0_122 = arith.constant 0 : index
    %412 = vector.load %arg11[%c40_121, %c0_122] : memref<64x512xf32, #tpu.memory_space<vmem>>, vector<8x512xf32>
    %413 = arith.truncf %410 : vector<8x128xf32> to vector<8x128xbf16>
    %cst_123 = arith.constant dense<0.000000e+00> : vector<8x512xf32>
    %414 = tpu.matmul %413, %259, %cst_123 {dimension_numbers = #tpu.dot_dimension_numbers<[1], [0], [0], [1], [0, 0, 1, 1], [], []>} : vector<8x128xbf16>, vector<128x512xbf16>, vector<8x512xf32> -> vector<8x512xf32>
    %415 = arith.addf %412, %414 : vector<8x512xf32>
    %416 = vector.extract_strided_slice %415 {offsets = [0, 0], sizes = [8, 128], strides = [1, 1]} : vector<8x512xf32> to vector<8x128xf32>
    %417 = arith.negf %416 : vector<8x128xf32>
    %418 = math.exp %417 : vector<8x128xf32>
    %cst_124 = arith.constant 1.000000e+00 : f32
    %419 = vector.broadcast %cst_124 : f32 to vector<8x128xf32>
    %420 = arith.addf %419, %418 : vector<8x128xf32>
    %421 = arith.divf %419, %420 : vector<8x128xf32>
    %422 = vector.extract_strided_slice %415 {offsets = [0, 128], sizes = [8, 128], strides = [1, 1]} : vector<8x512xf32> to vector<8x128xf32>
    %423 = arith.negf %422 : vector<8x128xf32>
    %424 = math.exp %423 : vector<8x128xf32>
    %cst_125 = arith.constant 1.000000e+00 : f32
    %425 = vector.broadcast %cst_125 : f32 to vector<8x128xf32>
    %426 = arith.addf %425, %424 : vector<8x128xf32>
    %427 = arith.divf %425, %426 : vector<8x128xf32>
    %428 = vector.extract_strided_slice %415 {offsets = [0, 256], sizes = [8, 128], strides = [1, 1]} : vector<8x512xf32> to vector<8x128xf32>
    %429 = math.tanh %428 : vector<8x128xf32>
    %430 = vector.extract_strided_slice %415 {offsets = [0, 384], sizes = [8, 128], strides = [1, 1]} : vector<8x512xf32> to vector<8x128xf32>
    %431 = arith.negf %430 : vector<8x128xf32>
    %432 = math.exp %431 : vector<8x128xf32>
    %cst_126 = arith.constant 1.000000e+00 : f32
    %433 = vector.broadcast %cst_126 : f32 to vector<8x128xf32>
    %434 = arith.addf %433, %432 : vector<8x128xf32>
    %435 = arith.divf %433, %434 : vector<8x128xf32>
    %436 = arith.mulf %427, %408 : vector<8x128xf32>
    %437 = arith.mulf %421, %429 : vector<8x128xf32>
    %438 = arith.addf %436, %437 : vector<8x128xf32>
    %439 = math.tanh %438 : vector<8x128xf32>
    %440 = arith.mulf %435, %439 : vector<8x128xf32>
    %c40_127 = arith.constant 40 : index
    %c0_128 = arith.constant 0 : index
    %441 = vector.load %arg9[%c40_127, %c0_128] : memref<64x128xf32, #tpu.memory_space<vmem>>, vector<8x128xf32>
    tpu.vector_store %arg9[%c40_127, %c0_128], %440 {strides = array<i32>} : memref<64x128xf32, #tpu.memory_space<vmem>>, vector<8x128xf32>,
    %c48_129 = arith.constant 48 : index
    %c0_130 = arith.constant 0 : index
    %442 = vector.load %arg11[%c48_129, %c0_130] : memref<64x512xf32, #tpu.memory_space<vmem>>, vector<8x512xf32>
    %443 = arith.truncf %440 : vector<8x128xf32> to vector<8x128xbf16>
    %cst_131 = arith.constant dense<0.000000e+00> : vector<8x512xf32>
    %444 = tpu.matmul %443, %259, %cst_131 {dimension_numbers = #tpu.dot_dimension_numbers<[1], [0], [0], [1], [0, 0, 1, 1], [], []>} : vector<8x128xbf16>, vector<128x512xbf16>, vector<8x512xf32> -> vector<8x512xf32>
    %445 = arith.addf %442, %444 : vector<8x512xf32>
    %446 = vector.extract_strided_slice %445 {offsets = [0, 0], sizes = [8, 128], strides = [1, 1]} : vector<8x512xf32> to vector<8x128xf32>
    %447 = arith.negf %446 : vector<8x128xf32>
    %448 = math.exp %447 : vector<8x128xf32>
    %cst_132 = arith.constant 1.000000e+00 : f32
    %449 = vector.broadcast %cst_132 : f32 to vector<8x128xf32>
    %450 = arith.addf %449, %448 : vector<8x128xf32>
    %451 = arith.divf %449, %450 : vector<8x128xf32>
    %452 = vector.extract_strided_slice %445 {offsets = [0, 128], sizes = [8, 128], strides = [1, 1]} : vector<8x512xf32> to vector<8x128xf32>
    %453 = arith.negf %452 : vector<8x128xf32>
    %454 = math.exp %453 : vector<8x128xf32>
    %cst_133 = arith.constant 1.000000e+00 : f32
    %455 = vector.broadcast %cst_133 : f32 to vector<8x128xf32>
    %456 = arith.addf %455, %454 : vector<8x128xf32>
    %457 = arith.divf %455, %456 : vector<8x128xf32>
    %458 = vector.extract_strided_slice %445 {offsets = [0, 256], sizes = [8, 128], strides = [1, 1]} : vector<8x512xf32> to vector<8x128xf32>
    %459 = math.tanh %458 : vector<8x128xf32>
    %460 = vector.extract_strided_slice %445 {offsets = [0, 384], sizes = [8, 128], strides = [1, 1]} : vector<8x512xf32> to vector<8x128xf32>
    %461 = arith.negf %460 : vector<8x128xf32>
    %462 = math.exp %461 : vector<8x128xf32>
    %cst_134 = arith.constant 1.000000e+00 : f32
    %463 = vector.broadcast %cst_134 : f32 to vector<8x128xf32>
    %464 = arith.addf %463, %462 : vector<8x128xf32>
    %465 = arith.divf %463, %464 : vector<8x128xf32>
    %466 = arith.mulf %457, %438 : vector<8x128xf32>
    %467 = arith.mulf %451, %459 : vector<8x128xf32>
    %468 = arith.addf %466, %467 : vector<8x128xf32>
    %469 = math.tanh %468 : vector<8x128xf32>
    %470 = arith.mulf %465, %469 : vector<8x128xf32>
    %c48_135 = arith.constant 48 : index
    %c0_136 = arith.constant 0 : index
    %471 = vector.load %arg9[%c48_135, %c0_136] : memref<64x128xf32, #tpu.memory_space<vmem>>, vector<8x128xf32>
    tpu.vector_store %arg9[%c48_135, %c0_136], %470 {strides = array<i32>} : memref<64x128xf32, #tpu.memory_space<vmem>>, vector<8x128xf32>,
    %c56_137 = arith.constant 56 : index
    %c0_138 = arith.constant 0 : index
    %472 = vector.load %arg11[%c56_137, %c0_138] : memref<64x512xf32, #tpu.memory_space<vmem>>, vector<8x512xf32>
    %473 = arith.truncf %470 : vector<8x128xf32> to vector<8x128xbf16>
    %cst_139 = arith.constant dense<0.000000e+00> : vector<8x512xf32>
    %474 = tpu.matmul %473, %259, %cst_139 {dimension_numbers = #tpu.dot_dimension_numbers<[1], [0], [0], [1], [0, 0, 1, 1], [], []>} : vector<8x128xbf16>, vector<128x512xbf16>, vector<8x512xf32> -> vector<8x512xf32>
    %475 = arith.addf %472, %474 : vector<8x512xf32>
    %476 = vector.extract_strided_slice %475 {offsets = [0, 0], sizes = [8, 128], strides = [1, 1]} : vector<8x512xf32> to vector<8x128xf32>
    %477 = arith.negf %476 : vector<8x128xf32>
    %478 = math.exp %477 : vector<8x128xf32>
    %cst_140 = arith.constant 1.000000e+00 : f32
    %479 = vector.broadcast %cst_140 : f32 to vector<8x128xf32>
    %480 = arith.addf %479, %478 : vector<8x128xf32>
    %481 = arith.divf %479, %480 : vector<8x128xf32>
    %482 = vector.extract_strided_slice %475 {offsets = [0, 128], sizes = [8, 128], strides = [1, 1]} : vector<8x512xf32> to vector<8x128xf32>
    %483 = arith.negf %482 : vector<8x128xf32>
    %484 = math.exp %483 : vector<8x128xf32>
    %cst_141 = arith.constant 1.000000e+00 : f32
    %485 = vector.broadcast %cst_141 : f32 to vector<8x128xf32>
    %486 = arith.addf %485, %484 : vector<8x128xf32>
    %487 = arith.divf %485, %486 : vector<8x128xf32>
    %488 = vector.extract_strided_slice %475 {offsets = [0, 256], sizes = [8, 128], strides = [1, 1]} : vector<8x512xf32> to vector<8x128xf32>
    %489 = math.tanh %488 : vector<8x128xf32>
    %490 = vector.extract_strided_slice %475 {offsets = [0, 384], sizes = [8, 128], strides = [1, 1]} : vector<8x512xf32> to vector<8x128xf32>
    %491 = arith.negf %490 : vector<8x128xf32>
    %492 = math.exp %491 : vector<8x128xf32>
    %cst_142 = arith.constant 1.000000e+00 : f32
    %493 = vector.broadcast %cst_142 : f32 to vector<8x128xf32>
    %494 = arith.addf %493, %492 : vector<8x128xf32>
    %495 = arith.divf %493, %494 : vector<8x128xf32>
    %496 = arith.mulf %487, %468 : vector<8x128xf32>
    %497 = arith.mulf %481, %489 : vector<8x128xf32>
    %498 = arith.addf %496, %497 : vector<8x128xf32>
    %499 = math.tanh %498 : vector<8x128xf32>
    %500 = arith.mulf %495, %499 : vector<8x128xf32>
    %c56_143 = arith.constant 56 : index
    %c0_144 = arith.constant 0 : index
    %501 = vector.load %arg9[%c56_143, %c0_144] : memref<64x128xf32, #tpu.memory_space<vmem>>, vector<8x128xf32>
    tpu.vector_store %arg9[%c56_143, %c0_144], %500 {strides = array<i32>} : memref<64x128xf32, #tpu.memory_space<vmem>>, vector<8x128xf32>,
    %c0_145 = arith.constant 0 : index
    %c0_146 = arith.constant 0 : index
    %502 = vector.load %arg9[%c0_145, %c0_146] : memref<64x128xf32, #tpu.memory_space<vmem>>, vector<64x128xf32>
    %503 = arith.truncf %502 : vector<64x128xf32> to vector<64x128xbf16>
    %c0_147 = arith.constant 0 : index
    %c0_148 = arith.constant 0 : index
    %504 = vector.load %arg7[%c0_147, %c0_148] : memref<128x128xbf16, #tpu.memory_space<vmem>>, vector<128x128xbf16>
    %cst_149 = arith.constant dense<0.000000e+00> : vector<64x128xf32>
    %505 = tpu.matmul %503, %504, %cst_149 {dimension_numbers = #tpu.dot_dimension_numbers<[1], [0], [0], [1], [0, 0, 1, 1], [], []>} : vector<64x128xbf16>, vector<128x128xbf16>, vector<64x128xf32> -> vector<64x128xf32>
    %c0_150 = arith.constant 0 : index
    %c0_151 = arith.constant 0 : index
    %506 = vector.load %arg8[%c0_150, %c0_151] : memref<1x128xf32, #tpu.memory_space<vmem>>, vector<1x128xf32>
    %507 = vector.broadcast %506 : vector<1x128xf32> to vector<64x128xf32>
    %508 = arith.addf %505, %507 : vector<64x128xf32>
    %509 = arith.negf %508 : vector<64x128xf32>
    %510 = math.exp %509 : vector<64x128xf32>
    %cst_152 = arith.constant 1.000000e+00 : f32
    %511 = vector.broadcast %cst_152 : f32 to vector<64x128xf32>
    %512 = arith.addf %511, %510 : vector<64x128xf32>
    %513 = arith.divf %511, %512 : vector<64x128xf32>
    %c0_153 = arith.constant 0 : index
    %c0_154 = arith.constant 0 : index
    %514 = vector.load %arg10[%c0_153, %c0_154] : memref<64x128xf32, #tpu.memory_space<vmem>>, vector<64x128xf32>
    tpu.vector_store %arg10[%c0_153, %c0_154], %513 {strides = array<i32>} : memref<64x128xf32, #tpu.memory_space<vmem>>, vector<64x128xf32>,
    return
  }
}

</mosaic_0001>

<bundles_post_ra>
// kernel: tpu_custom_call.1
= control target key start
LH: loop header
LB: loop body
LE: loop exit
PB: predicated region body
PF: predicated region fallthrough
CT: control target
= control target key end

     0   :  { %16 = vsyncpa [#allocation4], 0  ;;  %s5729_s0 = inlined_call_operand.vmem [shape: f32[64,16], index: 0, kind: input, shape index: {}]   ;;  %s5730_s1 = inlined_call_operand.hbm [shape: bf16[16,512], index: 1, kind: input, shape index: {}]   ;;  %s5731_s2 = inlined_call_operand.hbm [shape: bf16[128,512], index: 2, kind: input, shape index: {}]   ;;  %s5732_s3 = inlined_call_operand.vmem [shape: f32[1,512], index: 3, kind: input, shape index: {}]   ;;  %s5733_s4 = inlined_call_operand.hbm [shape: bf16[128,512], index: 4, kind: input, shape index: {}]   ;;  %s5734_s5 = inlined_call_operand.hbm [shape: bf16[128,512], index: 5, kind: input, shape index: {}]   ;;  %s5735_s6 = inlined_call_operand.vmem [shape: f32[1,512], index: 6, kind: input, shape index: {}]   ;;  %s5736_s7 = inlined_call_operand.vmem [shape: bf16[128,128], index: 7, kind: input, shape index: {}]   ;;  %s5737_s8 = inlined_call_operand.vmem [shape: f32[1,128], index: 8, kind: input, shape index: {}]   ;;  %s5738_s9 = inlined_call_operand.hbm [shape: f32[64,128], index: 9, kind: output, shape index: {0}]   ;;  %s5739_s10 = inlined_call_operand.hbm [shape: f32[64,128], index: 10, kind: output, shape index: {1}]  }
   0x1   :  { %17 = vsyncpa [#allocation7], 0 }
   0x2   :  { %18 = vsyncpa [#allocation10], 0 }
   0x3   :  { %19 = vsyncpa [#allocation5], 0 }
   0x4   :  { %20 = vsyncpa [#allocation13], 0  ;;  %s40_s15 = sshll.u32 %s5731_s2, 4  ;;  %s4427_s16 = smov [#allocation6]   ;;  %s41_s15 = int_to_ptr.hbm [resolvable:$true] %s40_s15 }
   0x5   :  { %s42_s17 = sshll.u32 %s4427_s16, 4  ;;  %s27_s20 = sshll.u32 %s5730_s1, 4  ;;  %s43_s17 = int_to_ptr.vmem [resolvable:$true] %s42_s17  ;;  %s28_s20 = int_to_ptr.hbm [resolvable:$true] %s27_s20 }
   0x6   :  { %s4428_s21 = smov 256   ;;  %s4429_s22 = smov 16  }
   0x7   :  { %48 = dma.hbm_to_vmem [thread:$0]  %s41_s15, 4096, %s43_s17, [#allocation7], %s4428_s21, %s4428_s21, %s4429_s22  }
   0x8   :  { %s4430_s23 = smov [#allocation3]   ;;  %s55_s27 = sshll.u32 %s5733_s4, 4  ;;  %s56_s27 = int_to_ptr.hbm [resolvable:$true] %s55_s27 }
   0x9   :  { %s29_s24 = sshll.u32 %s4430_s23, 4  ;;  %s68_s29 = sshll.u32 %s5734_s5, 4  ;;  %s30_s24 = int_to_ptr.vmem [resolvable:$true] %s29_s24  ;;  %s69_s29 = int_to_ptr.hbm [resolvable:$true] %s68_s29 }
   0xa   :  { %35 = dma.hbm_to_vmem [thread:$0]  %s28_s20, 512, %s30_s24, [#allocation4], %s4428_s21, %s4428_s21, %s4429_s22  }
   0xb   :  { %s4431_s30 = smov [#allocation8]   ;;  %s4432_s1 = smov [#allocation9]  }
   0xc   :  { %s57_s11 = sshll.u32 %s4431_s30, 4  ;;  %s70_s12 = sshll.u32 %s4432_s1, 4  ;;  %s58_s11 = int_to_ptr.vmem [resolvable:$true] %s57_s11  ;;  %s71_s12 = int_to_ptr.vmem [resolvable:$true] %s70_s12 }
   0xd   :  { %63 = dma.hbm_to_vmem [thread:$0]  %s56_s27, 4096, %s58_s11, [#allocation7], %s4428_s21, %s4428_s21, %s4429_s22  }
   0xe   :  { %76 = dma.hbm_to_vmem [thread:$0]  %s69_s29, 4096, %s71_s12, [#allocation10], %s4428_s21, %s4428_s21, %s4429_s22  }
   0xf   :  { %4417 = dma.done.wait [#allocation4], 512  }
  0x10   :  { %4418 = vsyncadd [#allocation4], 4294966784 }
  0x11   :  { %4419 = dma.done.wait [#allocation7], 8192  }
  0x12   :  { %4420 = vsyncadd [#allocation7], 4294959104 }
  0x13   :  { %4421 = dma.done.wait [#allocation10], 4096  }
  0x14   :  { %4422 = vsyncadd [#allocation10], 4294963200  ;;  %v3361_v0 = vld [vmem:[#allocation3] sm:$0xf]  ;;  %v3865_v1 = vld [vmem:[#allocation3 + $0xc] sm:$0xf0] }
  0x15   :  { %v3369_v2 = vld [vmem:[#allocation3 + $0x8] sm:$0xf]  ;;  %v3362_v3 = vor.u32 %v3865_v1, %v3361_v0  ;;  %v3866_v4 = vld [vmem:[#allocation3 + $0x14] sm:$0xf0]  ;;  %v104_v5 = vld [vmem:[%s5729_s0 + $0x20] sm:$0xff]  ;;  %vm146_vm0 = vcmask 130048  }
  0x16   :  { %v105_v6 = vld [vmem:[%s5729_s0 + $0x28] sm:$0xff]  ;;  %v3370_v7 = vor.u32 %v3866_v4, %v3369_v2  ;;  %v106_v9 = vld [vmem:[%s5729_s0 + $0x30] sm:$0xff]  ;;  %v107_v10 = vld [vmem:[%s5729_s0 + $0x38] sm:$0xff]  ;;  %s3326_s24 = sshll.u32 %s5738_s9, 4  ;;  %s4435_s25 = smov 128   ;;  %s3327_s24 = int_to_ptr.hbm [resolvable:$true] %s3326_s24 }
  0x17   :  { %v4511_v8 = vpack.c.bf16 %v105_v6, %v104_v5  ;;  %v3863_v11 = vld [vmem:[#allocation3 + $0x4] sm:$0xf]  ;;  %3971 = vmatpush.bf16.msra.mxu1 %v3362_v3  ;;  %3972 = vmatpush.bf16.msra.mxu3 %v3362_v3  ;;  %v4519_v12 = vpack.c.bf16 %v107_v10, %v106_v9  ;;  %v3363_v13 = vld [vmem:[#allocation3 + $0x10] sm:$0xf0]  ;;  %v101_v15 = vld [vmem:[%s5729_s0 + $0x8] sm:$0xff]  ;;  %s4436_s26 = smov 8  }
  0x18   :  { %v100_v14 = vld [vmem:[%s5729_s0] sm:$0xff]  ;;  %224 = vmatpush.bf16.msra.mxu2 %v3370_v7  ;;  %v3366_v16 = vor.u32 %v3863_v11, %v3363_v13  ;;  %v3864_v18 = vld [vmem:[#allocation3 + $0xc] sm:$0xf]  ;;  %v3371_v19 = vld [vmem:[#allocation3 + $0x18] sm:$0xf0]  ;;  %166 = vmatpush.bf16.msra.mxu0 %v3362_v3  ;;  %s4437_s9 = smov [#allocation12]  }
  0x19   :  { %v4527_v17 = vpack.c.bf16 %v101_v15, %v100_v14  ;;  %v3505_v20 = vld [vmem:[#allocation6 + $0xe0] sm:$0xf]  ;;  %v3374_v21 = vor.u32 %v3864_v18, %v3371_v19  ;;  %v3897_v22 = vld [vmem:[#allocation6 + $0xec] sm:$0xf0]  ;;  %v3895_v24 = vld [vmem:[#allocation6 + $0xe4] sm:$0xf] }
  0x1a   :  { %3377 = vmatmul.msk.bf16.vlgmr.msra.gmra.mxu1 %vm146_vm0, %v4511_v8  ;;  %3378 = vmatmul.msk.bf16.vlgmr.msra.gmra.mxu3 %vm146_vm0, %v4519_v12  ;;  %v4533_v23 = vor.u32 %v3897_v22, %v3505_v20  ;;  %v3507_v25 = vld [vmem:[#allocation6 + $0xf0] sm:$0xf0]  ;;  %v3489_v26 = vld [vmem:[#allocation6 + $0xc0] sm:$0xf]  ;;  %v3893_v28 = vld [vmem:[#allocation6 + $0xcc] sm:$0xf0] }
  0x1b   :  { %195 = vmatpush.bf16.msrb.mxu1 %v3366_v16  ;;  %3383 = vmatmul.msk.bf16.vlgmr.msra.gmra.mxu2 %vm146_vm0, %v4527_v17  ;;  %v4537_v27 = vor.u32 %v3895_v24, %v3507_v25  ;;  %v3896_v29 = vld [vmem:[#allocation6 + $0xec] sm:$0xf]  ;;  %v3515_v30 = vld [vmem:[#allocation6 + $0xf8] sm:$0xf0]  ;;  %v4540_v31 = vor.u32 %v3893_v28, %v3489_v26  ;;  %v3891_v33 = vld [vmem:[#allocation6 + $0xc4] sm:$0xf] }
  0x1c   :  { %253 = vmatpush.bf16.msrb.mxu3 %v3374_v21  ;;  %503 = vmatpush.bf16.msrb.mxu2 %v4533_v23  ;;  %v4542_v32 = vor.u32 %v3896_v29, %v3515_v30  ;;  %v3491_v34 = vld [vmem:[#allocation6 + $0xd0] sm:$0xf0]  ;;  %v3473_v35 = vld [vmem:[#allocation6 + $0xa0] sm:$0xf]  ;;  %v3889_v37 = vld [vmem:[#allocation6 + $0xac] sm:$0xf0] }
  0x1d   :  { %v4545_v36 = vor.u32 %v3891_v33, %v3491_v34  ;;  %v3892_v38 = vld [vmem:[#allocation6 + $0xcc] sm:$0xf]  ;;  %v3499_v39 = vld [vmem:[#allocation6 + $0xd8] sm:$0xf0]  ;;  %3375 = vmatmul.msk.bf16.vlgmr.msra.gmra.mxu0 %vm146_vm0, %v4527_v17  ;;  %v3887_v41 = vld [vmem:[#allocation6 + $0xa4] sm:$0xf]  ;;  %v4554_v43 = vor.u32 %v3889_v37, %v3473_v35 }
  0x1e   :  { %v4550_v40 = vor.u32 %v3892_v38, %v3499_v39  ;;  %628 = vmatpush.bf16.msrb.mxu0 %v4533_v23  ;;  %v3475_v42 = vld [vmem:[#allocation6 + $0xb0] sm:$0xf0]  ;;  %v3888_v44 = vld [vmem:[#allocation6 + $0xac] sm:$0xf]  ;;  %v3483_v45 = vld [vmem:[#allocation6 + $0xb8] sm:$0xf0] }
  0x1f   :  { %516 = vmatpush.bf16.msra.mxu1 %v4537_v27  ;;  %v3457_v46 = vld [vmem:[#allocation6 + $0x80] sm:$0xf]  ;;  %v3885_v47 = vld [vmem:[#allocation6 + $0x8c] sm:$0xf0]  ;;  %v4557_v48 = vor.u32 %v3887_v41, %v3475_v42  ;;  %v4560_v49 = vor.u32 %v3888_v44, %v3483_v45  ;;  %v3883_v50 = vld [vmem:[#allocation6 + $0x84] sm:$0xf] }
  0x20   :  { %542 = vmatpush.bf16.msra.mxu3 %v4542_v32  ;;  %504 = vmatpush.bf16.msrb.mxu2 %v4540_v31  ;;  %v3459_v51 = vld [vmem:[#allocation6 + $0x90] sm:$0xf0]  ;;  %v103_v53 = vld [vmem:[%s5729_s0 + $0x18] sm:$0xff]  ;;  %v4570_v54 = vor.u32 %v3885_v47, %v3457_v46  ;;  %v3884_v55 = vld [vmem:[#allocation6 + $0x8c] sm:$0xf]  ;;  %s3339_s2 = sshll.u32 %s5739_s10, 4  ;;  %s3340_s2 = int_to_ptr.hbm [resolvable:$true] %s3339_s2 }
  0x21   :  { %v102_v52 = vld [vmem:[%s5729_s0 + $0x10] sm:$0xff]  ;;  %v3467_v56 = vld [vmem:[#allocation6 + $0x98] sm:$0xf0]  ;;  %v3441_v57 = vld [vmem:[#allocation6 + $0x60] sm:$0xf]  ;;  %v4573_v59 = vor.u32 %v3883_v50, %v3459_v51  ;;  %s3337_s0 = sshll.u32 %s4437_s9, 4  ;;  %s3338_s0 = int_to_ptr.vmem [resolvable:$true] %s3337_s0 }
  0x22   :  { %629 = vmatpush.bf16.msrb.mxu0 %v4540_v31  ;;  %v3881_v58 = vld [vmem:[#allocation6 + $0x6c] sm:$0xf0]  ;;  %v109_v60 = vpack.c.bf16 %v103_v53, %v102_v52  ;;  %v4577_v61 = vor.u32 %v3884_v55, %v3467_v56  ;;  %v3425_v63 = vld [vmem:[#allocation6 + $0x40] sm:$0xf]  ;;  %v3879_v1 = vld [vmem:[#allocation6 + $0x64] sm:$0xf] }
  0x23   :  { %517 = vmatpush.bf16.msra.mxu1 %v4545_v36  ;;  %v4580_v62 = vor.u32 %v3881_v58, %v3441_v57  ;;  %v3877_v0 = vld [vmem:[#allocation6 + $0x4c] sm:$0xf0]  ;;  %v3443_v2 = vld [vmem:[#allocation6 + $0x70] sm:$0xf0]  ;;  %v3409_v4 = vld [vmem:[#allocation6 + $0x20] sm:$0xf] }
  0x24   :  { %543 = vmatpush.bf16.msra.mxu3 %v4550_v40  ;;  %505 = vmatpush.bf16.msrb.mxu2 %v4554_v43  ;;  %v4590_v3 = vor.u32 %v3877_v0, %v3425_v63  ;;  %v4592_v5 = vor.u32 %v3879_v1, %v3443_v2  ;;  %v3880_v6 = vld [vmem:[#allocation6 + $0x6c] sm:$0xf]  ;;  %v3451_v7 = vld [vmem:[#allocation6 + $0x78] sm:$0xf0]  ;;  %v3873_v9 = vld [vmem:[#allocation6 + $0x2c] sm:$0xf0] }
  0x25   :  { %v4595_v10 = vor.u32 %v3880_v6, %v3451_v7  ;;  %v3875_v11 = vld [vmem:[#allocation6 + $0x44] sm:$0xf]  ;;  %v3427_v13 = vld [vmem:[#allocation6 + $0x50] sm:$0xf0]  ;;  %v3876_v15 = vld [vmem:[#allocation6 + $0x4c] sm:$0xf] }
  0x26   :  { %630 = vmatpush.bf16.msrb.mxu0 %v4554_v43  ;;  %v4599_v14 = vor.u32 %v3875_v11, %v3427_v13  ;;  %v3435_v16 = vld [vmem:[#allocation6 + $0x58] sm:$0xf0]  ;;  %v3393_v19 = vld [vmem:[#allocation6] sm:$0xf]  ;;  %v3869_v20 = vld [vmem:[#allocation6 + $0xc] sm:$0xf0] }
  0x27   :  { %518 = vmatpush.bf16.msra.mxu1 %v4557_v48  ;;  %v4605_v18 = vor.u32 %v3876_v15, %v3435_v16  ;;  %v3513_v21 = vld [vmem:[#allocation6 + $0xe8] sm:$0xf]  ;;  %v3898_v22 = vld [vmem:[#allocation6 + $0xf4] sm:$0xf0]  ;;  %v4611_v24 = vor.u32 %v3869_v20, %v3393_v19  ;;  %v3871_v34 = vld [vmem:[#allocation6 + $0x24] sm:$0xf] }
  0x28   :  { %544 = vmatpush.bf16.msra.mxu3 %v4560_v49  ;;  %506 = vmatpush.bf16.msrb.mxu2 %v4570_v54  ;;  %v4614_v25 = vor.u32 %v3898_v22, %v3513_v21  ;;  %v3497_v26 = vld [vmem:[#allocation6 + $0xc8] sm:$0xf]  ;;  %v3894_v28 = vld [vmem:[#allocation6 + $0xd4] sm:$0xf0]  ;;  %v3411_v35 = vld [vmem:[#allocation6 + $0x30] sm:$0xf0] }
  0x29   :  { %v4619_v29 = vor.u32 %v3894_v28, %v3497_v26  ;;  %v3481_v30 = vld [vmem:[#allocation6 + $0xa8] sm:$0xf]  ;;  %v3890_v33 = vld [vmem:[#allocation6 + $0xb4] sm:$0xf0]  ;;  %v4625_v37 = vor.u32 %v3871_v34, %v3411_v35  ;;  %v3872_v38 = vld [vmem:[#allocation6 + $0x2c] sm:$0xf] }
  0x2a   :  { %3379 = vmatmul.msk.bf16.vlgmr.msrb.gmra.mxu1 %vm146_vm0, %v4527_v17  ;;  %3387 = vmatmul.msk.bf16.vlgmr.msrb.gmra.mxu3 %vm146_vm0, %v4527_v17  ;;  %v4603_v17 = vor.u32 %v3873_v9, %v3409_v4  ;;  %v3419_v39 = vld [vmem:[#allocation6 + $0x38] sm:$0xf0]  ;;  %v4629_v41 = vor.u32 %v3890_v33, %v3481_v30  ;;  %v3867_v44 = vld [vmem:[#allocation6 + $0x4] sm:$0xf]  ;;  %v3395_v45 = vld [vmem:[#allocation6 + $0x10] sm:$0xf0] }
  0x2b   :  { %519 = vmatpush.bf16.msra.mxu1 %v4573_v59  ;;  %3384 = vmatmul.msk.bf16.gmra.mxu2 %vm146_vm0, %v109_v60  ;;  %v4631_v42 = vor.u32 %v3872_v38, %v3419_v39  ;;  %v3465_v46 = vld [vmem:[#allocation6 + $0x88] sm:$0xf]  ;;  %v3886_v47 = vld [vmem:[#allocation6 + $0x94] sm:$0xf0]  ;;  %v4635_v50 = vor.u32 %v3867_v44, %v3395_v45  ;;  %v3868_v51 = vld [vmem:[#allocation6 + $0xc] sm:$0xf] }
  0x2c   :  { %545 = vmatpush.bf16.msra.mxu3 %v4577_v61  ;;  %507 = vmatpush.bf16.msrb.mxu2 %v4580_v62  ;;  %v3403_v52 = vld [vmem:[#allocation6 + $0x18] sm:$0xf0]  ;;  %v4641_v55 = vor.u32 %v3886_v47, %v3465_v46  ;;  %v3449_v56 = vld [vmem:[#allocation6 + $0x68] sm:$0xf]  ;;  %v3882_v57 = vld [vmem:[#allocation6 + $0x74] sm:$0xf0] }
  0x2d   :  { %631 = vmatpush.bf16.msrb.mxu0 %v4570_v54  ;;  %v4638_v53 = vor.u32 %v3868_v51, %v3403_v52  ;;  %v4649_v58 = vor.u32 %v3882_v57, %v3449_v56  ;;  %v3878_v63 = vld [vmem:[#allocation6 + $0x54] sm:$0xf0]  ;;  %v3417_v1 = vld [vmem:[#allocation6 + $0x28] sm:$0xf]  ;;  %v5740_v9 = vmov 0  }
  0x2e   :  { %3376 = vmatmul.msk.bf16.gmra.mxu0 %vm146_vm0, %v109_v60  ;;  %v3874_v2 = vld [vmem:[#allocation6 + $0x34] sm:$0xf0]  ;;  %v3401_v6 = vld [vmem:[#allocation6 + $0x8] sm:$0xf]  ;;  %v116_v21 = vld [vmem:[%s5732_s3] sm:$0xf] }
  0x2f   :  { %520 = vmatpush.bf16.msra.mxu1 %v4592_v5  ;;  %v4667_v4 = vor.u32 %v3874_v2, %v3417_v1  ;;  %v3870_v7 = vld [vmem:[#allocation6 + $0x14] sm:$0xf0]  ;;  %v4742_v22 = vperm.slane %v116_v21, 2  ;;  %v4751_v35 = vperm.slane %v116_v21, 1  ;;  %v4758_v45 = vperm.slane %v116_v21, 3 }
  0x30   :  { %546 = vmatpush.bf16.msra.mxu3 %v4595_v10  ;;  %508 = vmatpush.bf16.msrb.mxu2 %v4590_v3 }
  0x31   :  { %632 = vmatpush.bf16.msrb.mxu0 %v4580_v62 }
  0x33   :  { %521 = vmatpush.bf16.msra.mxu1 %v4599_v14 }
  0x34   :  { %547 = vmatpush.bf16.msra.mxu3 %v4605_v18  ;;  %509 = vmatpush.bf16.msrb.mxu2 %v4603_v17 }
  0x35   :  { %633 = vmatpush.bf16.msrb.mxu0 %v4590_v3 }
  0x37   :  { %522 = vmatpush.bf16.msra.mxu1 %v4625_v37 }
  0x38   :  { %510 = vmatpush.bf16.msrb.mxu2 %v4611_v24  ;;  %548 = vmatpush.bf16.msra.mxu3 %v4631_v42 }
  0x39   :  { %634 = vmatpush.bf16.msrb.mxu0 %v4603_v17 }
  0x3a   :  { %3380 = vmatmul.msk.bf16.gmra.mxu1 %vm146_vm0, %v109_v60  ;;  %3388 = vmatmul.msk.bf16.gmra.mxu3 %vm146_vm0, %v109_v60  ;;  %v3433_v60 = vld [vmem:[#allocation6 + $0x48] sm:$0xf] }
  0x3b   :  { %3385 = vmatmul.msk.bf16.gmra.mxu2 %vm146_vm0, %v4511_v8  ;;  %523 = vmatpush.bf16.msra.mxu1 %v4635_v50  ;;  %v4655_v0 = vor.u32 %v3878_v63, %v3433_v60 }
  0x3c   :  { %529 = vmatpush.bf16.msra.mxu2 %v4614_v25  ;;  %549 = vmatpush.bf16.msra.mxu3 %v4638_v53 }
  0x3d   :  { %635 = vmatpush.bf16.msrb.mxu0 %v4611_v24 }
  0x3f   :  { %641 = vmatpush.bf16.msrb.mxu1 %v4537_v27 }
  0x40   :  { %530 = vmatpush.bf16.msra.mxu2 %v4619_v29  ;;  %667 = vmatpush.bf16.msrb.mxu3 %v4542_v32 }
  0x41   :  { %753 = vmatpush.bf16.msra.mxu0 %v4533_v23 }
  0x43   :  { %642 = vmatpush.bf16.msrb.mxu1 %v4545_v36 }
  0x44   :  { %531 = vmatpush.bf16.msra.mxu2 %v4629_v41  ;;  %668 = vmatpush.bf16.msrb.mxu3 %v4550_v40 }
  0x45   :  { %754 = vmatpush.bf16.msra.mxu0 %v4540_v31 }
  0x47   :  { %643 = vmatpush.bf16.msrb.mxu1 %v4557_v48 }
  0x48   :  { %532 = vmatpush.bf16.msra.mxu2 %v4641_v55  ;;  %669 = vmatpush.bf16.msrb.mxu3 %v4560_v49 }
  0x49   :  { %755 = vmatpush.bf16.msra.mxu0 %v4554_v43 }
  0x4a   :  { %3381 = vmatmul.msk.bf16.gmra.mxu1 %vm146_vm0, %v4511_v8  ;;  %3389 = vmatmul.msk.bf16.gmra.mxu3 %vm146_vm0, %v4511_v8  ;;  %v4673_v8 = vor.u32 %v3870_v7, %v3401_v6 }
  0x4b   :  { %3386 = vmatmul.msk.bf16.gmra.mxu2 %vm146_vm0, %v4519_v12  ;;  %644 = vmatpush.bf16.msrb.mxu1 %v4573_v59 }
  0x4c   :  { %533 = vmatpush.bf16.msra.mxu2 %v4649_v58  ;;  %670 = vmatpush.bf16.msrb.mxu3 %v4577_v61 }
  0x4d   :  { %756 = vmatpush.bf16.msra.mxu0 %v4570_v54 }
  0x4f   :  { %645 = vmatpush.bf16.msrb.mxu1 %v4592_v5 }
  0x50   :  { %534 = vmatpush.bf16.msra.mxu2 %v4655_v0  ;;  %671 = vmatpush.bf16.msrb.mxu3 %v4595_v10 }
  0x51   :  { %757 = vmatpush.bf16.msra.mxu0 %v4580_v62 }
  0x53   :  { %646 = vmatpush.bf16.msrb.mxu1 %v4599_v14 }
  0x54   :  { %535 = vmatpush.bf16.msra.mxu2 %v4667_v4  ;;  %672 = vmatpush.bf16.msrb.mxu3 %v4605_v18 }
  0x55   :  { %758 = vmatpush.bf16.msra.mxu0 %v4590_v3 }
  0x57   :  { %647 = vmatpush.bf16.msrb.mxu1 %v4625_v37 }
  0x58   :  { %536 = vmatpush.bf16.msra.mxu2 %v4673_v8  ;;  %673 = vmatpush.bf16.msrb.mxu3 %v4631_v42 }
  0x59   :  { %759 = vmatpush.bf16.msra.mxu0 %v4603_v17 }
  0x5a   :  { %3382 = vmatmul.msk.bf16.gmra.mxu1 %vm146_vm0, %v4519_v12  ;;  %3390 = vmatmul.msk.bf16.gmra.mxu3 %vm146_vm0, %v4519_v12 }
  0x5b   :  { %511 = vmatmul.bf16.vlgmr.msrb.gmra.mxu2 %v5740_v9  ;;  %648 = vmatpush.bf16.msrb.mxu1 %v4635_v50 }
  0x5c   :  { %654 = vmatpush.bf16.msrb.mxu2 %v4614_v25  ;;  %674 = vmatpush.bf16.msrb.mxu3 %v4638_v53 }
  0x5d   :  { %760 = vmatpush.bf16.msra.mxu0 %v4611_v24 }
  0x60   :  { %655 = vmatpush.bf16.msrb.mxu2 %v4619_v29 }
  0x64   :  { %656 = vmatpush.bf16.msrb.mxu2 %v4629_v41 }
  0x68   :  { %657 = vmatpush.bf16.msrb.mxu2 %v4641_v55 }
  0x6a   :  { %524 = vmatmul.bf16.vlgmr.msra.gmra.mxu1 %v5740_v9  ;;  %550 = vmatmul.bf16.vlgmr.msra.gmra.mxu3 %v5740_v9 }
  0x6b   :  { %537 = vmatmul.bf16.vlgmr.msra.gmra.mxu2 %v5740_v9  ;;  %766 = vmatpush.bf16.msra.mxu1 %v4537_v27 }
  0x6c   :  { %658 = vmatpush.bf16.msrb.mxu2 %v4649_v58  ;;  %792 = vmatpush.bf16.msra.mxu3 %v4542_v32 }
  0x6f   :  { %767 = vmatpush.bf16.msra.mxu1 %v4545_v36 }
  0x70   :  { %659 = vmatpush.bf16.msrb.mxu2 %v4655_v0  ;;  %793 = vmatpush.bf16.msra.mxu3 %v4550_v40 }
  0x73   :  { %768 = vmatpush.bf16.msra.mxu1 %v4557_v48 }
  0x74   :  { %660 = vmatpush.bf16.msrb.mxu2 %v4667_v4  ;;  %794 = vmatpush.bf16.msra.mxu3 %v4560_v49 }
  0x77   :  { %769 = vmatpush.bf16.msra.mxu1 %v4573_v59 }
  0x78   :  { %661 = vmatpush.bf16.msrb.mxu2 %v4673_v8  ;;  %795 = vmatpush.bf16.msra.mxu3 %v4577_v61 }
  0x7b   :  { %770 = vmatpush.bf16.msra.mxu1 %v4592_v5 }
  0x7c   :  { %779 = vmatpush.bf16.msra.mxu2 %v4614_v25  ;;  %796 = vmatpush.bf16.msra.mxu3 %v4595_v10 }
  0x7f   :  { %771 = vmatpush.bf16.msra.mxu1 %v4599_v14 }
  0x80   :  { %780 = vmatpush.bf16.msra.mxu2 %v4619_v29  ;;  %797 = vmatpush.bf16.msra.mxu3 %v4605_v18 }
  0x83   :  { %772 = vmatpush.bf16.msra.mxu1 %v4625_v37 }
  0x84   :  { %781 = vmatpush.bf16.msra.mxu2 %v4629_v41  ;;  %798 = vmatpush.bf16.msra.mxu3 %v4631_v42 }
  0x87   :  { %773 = vmatpush.bf16.msra.mxu1 %v4635_v50 }
  0x88   :  { %782 = vmatpush.bf16.msra.mxu2 %v4641_v55  ;;  %799 = vmatpush.bf16.msra.mxu3 %v4638_v53 }
  0x8c   :  { %783 = vmatpush.bf16.msra.mxu2 %v4649_v58 }
  0x90   :  { %784 = vmatpush.bf16.msra.mxu2 %v4655_v0 }
  0x94   :  { %785 = vmatpush.bf16.msra.mxu2 %v4667_v4 }
  0x97   :  { %v4727_v12 = vpop.f32.mrf.mxu1 }
  0x98   :  { %786 = vmatpush.bf16.msra.mxu2 %v4673_v8  ;;  %5744 = vst [vmem:[#allocation19_spill] sm:$0xff] %v4727_v12 }
  0x9d   :  { %v4729_v11 = vpop.f32.mrf.mxu3 }
  0x9e   :  { %5745 = vst [vmem:[#allocation20_spill] sm:$0xff] %v4729_v11  ;;  %v4731_v13 = vpop.f32.mrf.mxu2  ;;  %v4790_v11 = vperm.slane %v116_v21, 0 }
  0x9f   :  { %v4733_v15 = vpop.f32.mrf.mxu1 }
  0xa0   :  { %5746 = vst [vmem:[#allocation21_spill] sm:$0xff] %v4733_v15 }
  0xa5   :  { %v4735_v16 = vpop.f32.mrf.mxu3 }
  0xa6   :  { %5747 = vst [vmem:[#allocation22_spill] sm:$0xff] %v4735_v16  ;;  %v4737_v19 = vpop.f32.mrf.mxu2 }
  0xa7   :  { %v197_v20 = vpop.f32.mrf.mxu1 }
  0xad   :  { %v255_v26 = vpop.f32.mrf.mxu3 }
  0xae   :  { %v231_v28 = vpop.f32.mrf.mxu2  ;;  %v256_v12 = vadd.f32 %v255_v26, %v4758_v45  ;;  %v227_v26 = vadd.f32 %v4731_v13, %v4742_v22 }
  0xaf   :  { %v4745_v30 = vadd.f32 %v231_v28, %v4742_v22  ;;  %v4747_v33 = vpop.f32.mrf.mxu1 }
  0xb1   :  { %5748 = vst [vmem:[#allocation23_spill] sm:$0xff] %v4745_v30 }
  0xb5   :  { %v4749_v34 = vpop.f32.mrf.mxu3 }
  0xb6   :  { %v4753_v38 = vpop.f32.mrf.mxu2 }
  0xb7   :  { %5749 = vst [vmem:[#allocation24_spill] sm:$0xff] %v4753_v38  ;;  %v202_v39 = vpop.f32.mrf.mxu1 }
  0xb8   :  { %v4756_v44 = vadd.f32 %v202_v39, %v4751_v35 }
  0xba   :  { %5750 = vst [vmem:[#allocation25_spill] sm:$0xff] %v4756_v44 }
  0xbd   :  { %v260_v46 = vpop.f32.mrf.mxu3 }
  0xbe   :  { %v236_v47 = vpop.f32.mrf.mxu2  ;;  %v4761_v51 = vadd.f32 %v260_v46, %v4758_v45 }
  0xbf   :  { %v4764_v52 = vadd.f32 %v236_v47, %v4742_v22  ;;  %v4766_v56 = vpop.f32.mrf.mxu1 }
  0xc0   :  { %5751 = vst [vmem:[#allocation26_spill] sm:$0xff] %v4761_v51 }
  0xc1   :  { %5752 = vst [vmem:[#allocation27_spill] sm:$0xff] %v4764_v52 }
  0xc2   :  { %5753 = vst [vmem:[#allocation28_spill] sm:$0xff] %v4766_v56 }
  0xc5   :  { %v4768_v57 = vpop.f32.mrf.mxu3 }
  0xc6   :  { %5754 = vst [vmem:[#allocation29_spill] sm:$0xff] %v4768_v57  ;;  %v4770_v60 = vpop.f32.mrf.mxu2 }
  0xc7   :  { %5755 = vst [vmem:[#allocation30_spill] sm:$0xff] %v4770_v60  ;;  %v207_v63 = vpop.f32.mrf.mxu1 }
  0xc8   :  { %v4773_v1 = vadd.f32 %v207_v63, %v4751_v35  ;;  %v168_v63 = vpop.f32.mrf.mxu0 }
  0xc9   :  { %v169_v60 = vadd.f32 %v168_v63, %v4790_v11 }
  0xca   :  { %5756 = vst [vmem:[#allocation31_spill] sm:$0xff] %v4773_v1 }
  0xcd   :  { %v265_v2 = vpop.f32.mrf.mxu3 }
  0xce   :  { %v241_v6 = vpop.f32.mrf.mxu2  ;;  %v4776_v7 = vadd.f32 %v265_v2, %v4758_v45 }
  0xcf   :  { %v4779_v28 = vadd.f32 %v241_v6, %v4742_v22  ;;  %v4781_v39 = vpop.f32.mrf.mxu1 }
  0xd0   :  { %5757 = vst [vmem:[#allocation32_spill] sm:$0xff] %v4776_v7 }
  0xd1   :  { %5758 = vst [vmem:[#allocation33_spill] sm:$0xff] %v4779_v28 }
  0xd2   :  { %5759 = vst [vmem:[#allocation34_spill] sm:$0xff] %v4781_v39 }
  0xd5   :  { %v4783_v46 = vpop.f32.mrf.mxu3 }
  0xd6   :  { %5760 = vst [vmem:[#allocation35_spill] sm:$0xff] %v4783_v46  ;;  %v4785_v47 = vpop.f32.mrf.mxu2 }
  0xd7   :  { %5761 = vst [vmem:[#allocation36_spill] sm:$0xff] %v4785_v47  ;;  %v212_v9 = vpop.f32.mrf.mxu1 }
  0xd8   :  { %v4788_v16 = vadd.f32 %v212_v9, %v4751_v35  ;;  %v198_v9 = vadd.f32 %v197_v20, %v4751_v35 }
  0xda   :  { %5762 = vst [vmem:[#allocation37_spill] sm:$0xff] %v4788_v16 }
  0xdd   :  { %v270_v2 = vpop.f32.mrf.mxu3 }
  0xde   :  { %v4794_v15 = vadd.f32 %v270_v2, %v4758_v45  ;;  %v512_v6 = vpop.f32.mrf.mxu2 }
  0xdf   :  { %v555_v28 = vadd.f32 %v512_v6, %v169_v60  ;;  %v4796_v39 = vpop.f32.mrf.mxu1 }
  0xe0   :  { %5763 = vst [vmem:[#allocation38_spill] sm:$0xff] %v4794_v15 }
  0xe1   :  { %5764 = vst [vmem:[#allocation39_spill] sm:$0xff] %v4796_v39  ;;  %v3519_v46 = vmul.f32 -1.442695, %v555_v28 }
  0xe3   :  { %3985 = vpow2.f32 %v3519_v46 }
  0xe5   :  { %v4798_v47 = vpop.f32.mrf.mxu3 }
  0xe6   :  { %5765 = vst [vmem:[#allocation40_spill] sm:$0xff] %v4798_v47  ;;  %v514_v16 = vpop.f32.mrf.mxu2 }
  0xe7   :  { %v525_v52 = vpop.f32.mrf.mxu1 }
  0xe8   :  { %v556_v21 = vadd.f32 %v525_v52, %v198_v9 }
  0xe9   :  { %v3986_v7 = vpop.eup %3985 }
  0xea   :  { %v562_v1 = vadd.f32 1.0, %v3986_v7  ;;  %v3520_v63 = vmul.f32 -1.442695, %v556_v21 }
  0xec   :  { %3987 = vrcp.f32 %v562_v1  ;;  %vm568_vm1 = vweird.f32 %v562_v1 }
  0xed   :  { %3989 = vpow2.f32 %v3520_v63  ;;  %v551_v2 = vpop.f32.mrf.mxu3 }
  0xee   :  { %v538_v60 = vpop.f32.mrf.mxu2  ;;  %v558_v6 = vadd.f32 %v551_v2, %v256_v12 }
  0xef   :  { %v527_v39 = vpop.f32.mrf.mxu1  ;;  %v557_v12 = vadd.f32 %v538_v60, %v227_v26 }
  0xf0   :  { %v3521_v28 = vmul.f32 -1.442695, %v558_v6  ;;  %v574_v6 = vand.u32 2147483648, %v562_v1 }
  0xf2   :  { %v3988_v46 = vpop.eup %3987  ;;  %3991 = vpow2.f32 %v3521_v28  ;;  %v575_v57 = vor.u32 1.1754944e-38, %v574_v6 }
  0xf3   :  { %v3990_v47 = vpop.eup %3989  ;;  %v564_v15 = vmul.f32 %v3988_v46, %v562_v1  ;;  %vm569_vm2 = vweird.f32 %v3988_v46 }
  0xf4   :  { %v581_v20 = vadd.f32 1.0, %v3990_v47  ;;  %v572_v47 = vand.u32 2147483647, %v562_v1  ;;  %vm570_vm3 = vmor %vm568_vm1, %vm569_vm2 }
  0xf5   :  { %v565_v16 = vsub.f32 1.0, %v564_v15  ;;  %v553_v38 = vpop.f32.mrf.mxu3 }
  0xf6   :  { %3993 = vrcp.f32 %v581_v20  ;;  %v540_v52 = vpop.f32.mrf.mxu2  ;;  %v593_v15 = vand.u32 2147483648, %v581_v20  ;;  %vm587_vm5 = vweird.f32 %v581_v20  ;;  %vm573_vm6 = vcmp.eq.f32.partialorder %v572_v47, 8.507059e+37 }
  0xf7   :  { %v566_v9 = vmul.f32 %v3988_v46, %v565_v16 }
  0xf8   :  { %v3992_v7 = vpop.eup %3991  ;;  %v594_v26 = vor.u32 1.1754944e-38, %v593_v15 }
  0xf9   :  { %v601_v21 = vadd.f32 1.0, %v3992_v7  ;;  %v567_v2 = vadd.f32 %v3988_v46, %v566_v9  ;;  %v591_v7 = vand.u32 2147483647, %v581_v20 }
  0xfb   :  { %3995 = vrcp.f32 %v601_v21  ;;  %v571_v16 = vsel %vm570_vm3, %v3988_v46, %v567_v2  ;;  %vm592_vm8 = vcmp.eq.f32.partialorder %v591_v7, 8.507059e+37  ;;  %vm607_vm10 = vweird.f32 %v601_v21 }
  0xfc   :  { %v3994_v63 = vpop.eup %3993  ;;  %3997 = vtanh.f32 %v557_v12  ;;  %v576_v9 = vsel %vm573_vm6, %v575_v57, %v571_v16  ;;  %v611_v2 = vand.u32 2147483647, %v601_v21 }
  0xfd   :  { %v583_v39 = vmul.f32 %v3994_v63, %v581_v20  ;;  %vm588_vm4 = vweird.f32 %v3994_v63  ;;  %v613_v20 = vand.u32 2147483648, %v601_v21 }
  0xfe   :  { %vm589_vm7 = vmor %vm587_vm5, %vm588_vm4  ;;  %vm612_vm12 = vcmp.eq.f32.partialorder %v611_v2, 8.507059e+37 }
  0xff   :  { %v584_v28 = vsub.f32 1.0, %v583_v39  ;;  %v614_v6 = vor.u32 1.1754944e-38, %v613_v20 }
 0x101   :  { %v3996_v38 = vpop.eup %3995  ;;  %v585_v52 = vmul.f32 %v3994_v63, %v584_v28 }
 0x102   :  { %v603_v13 = vmul.f32 %v3996_v38, %v601_v21  ;;  %v3998_v1 = vpop.eup %3997  ;;  %vm608_vm9 = vweird.f32 %v3996_v38  ;;  %v200_v21 = vadd.f32 %v4747_v33, %v4751_v35 }
 0x103   :  { %v586_v60 = vadd.f32 %v3994_v63, %v585_v52  ;;  %v618_v44 = vmul.f32 %v3998_v1, %v576_v9  ;;  %vm609_vm11 = vmor %vm607_vm10, %vm608_vm9  ;;  %v258_v9 = vadd.f32 %v4749_v34, %v4758_v45  ;;  %v229_v34 = vadd.f32 %v4737_v19, %v4742_v22 }
 0x104   :  { %v604_v56 = vsub.f32 1.0, %v603_v13 }
 0x105   :  { %v590_v30 = vsel %vm589_vm7, %v3994_v63, %v586_v60 }
 0x106   :  { %v595_v39 = vsel %vm592_vm8, %v594_v26, %v590_v30  ;;  %v605_v51 = vmul.f32 %v3996_v38, %v604_v56 }
 0x107   :  { %v617_v12 = vmul.f32 0.0, %v595_v39 }
 0x108   :  { %v606_v46 = vadd.f32 %v3996_v38, %v605_v51 }
 0x109   :  { %v4804_v28 = vadd.f32 %v618_v44, %v617_v12  ;;  %v170_v44 = vpop.f32.mrf.mxu0 }
 0x10a   :  { %v610_v57 = vsel %vm609_vm11, %v3996_v38, %v606_v46  ;;  %v171_v38 = vadd.f32 %v170_v44, %v4790_v11 }
 0x10b   :  { %3999 = vtanh.f32 %v4804_v28  ;;  %v615_v47 = vsel %vm612_vm12, %v614_v6, %v610_v57 }
 0x111   :  { %v4000_v63 = vpop.eup %3999  ;;  %v4839_v51 = vpop.f32.mrf.mxu0 }
 0x112   :  { %v621_v15 = vmul.f32 %v4000_v63, %v615_v47 }
 0x114   :  { %622 = vst [vmem:[#allocation11] sm:$0xff] %v621_v15  ;;  %v627_v30 = vpack.c.bf16 %v621_v15, %v621_v15 }
 0x116   :  { %636 = vmatmul.bf16.vlgmr.msrb.gmra.mxu0 %v627_v30  ;;  %649 = vmatmul.bf16.vlgmr.msrb.gmra.mxu1 %v627_v30 }
 0x117   :  { %662 = vmatmul.bf16.vlgmr.msrb.gmra.mxu2 %v627_v30  ;;  %675 = vmatmul.bf16.vlgmr.msrb.gmra.mxu3 %v627_v30 }
 0x118   :  { %878 = vmatpush.bf16.msrb.mxu0 %v4533_v23  ;;  %891 = vmatpush.bf16.msrb.mxu1 %v4537_v27 }
 0x119   :  { %904 = vmatpush.bf16.msrb.mxu2 %v4614_v25  ;;  %917 = vmatpush.bf16.msrb.mxu3 %v4542_v32  ;;  %v4841_v56 = vpop.f32.mrf.mxu0 }
 0x11c   :  { %879 = vmatpush.bf16.msrb.mxu0 %v4540_v31  ;;  %892 = vmatpush.bf16.msrb.mxu1 %v4545_v36 }
 0x11d   :  { %905 = vmatpush.bf16.msrb.mxu2 %v4619_v29  ;;  %918 = vmatpush.bf16.msrb.mxu3 %v4550_v40 }
 0x120   :  { %880 = vmatpush.bf16.msrb.mxu0 %v4554_v43  ;;  %893 = vmatpush.bf16.msrb.mxu1 %v4557_v48 }
 0x121   :  { %906 = vmatpush.bf16.msrb.mxu2 %v4629_v41  ;;  %919 = vmatpush.bf16.msrb.mxu3 %v4560_v49 }
 0x124   :  { %881 = vmatpush.bf16.msrb.mxu0 %v4570_v54  ;;  %894 = vmatpush.bf16.msrb.mxu1 %v4573_v59 }
 0x125   :  { %907 = vmatpush.bf16.msrb.mxu2 %v4641_v55  ;;  %920 = vmatpush.bf16.msrb.mxu3 %v4577_v61 }
 0x128   :  { %882 = vmatpush.bf16.msrb.mxu0 %v4580_v62  ;;  %895 = vmatpush.bf16.msrb.mxu1 %v4592_v5 }
 0x129   :  { %908 = vmatpush.bf16.msrb.mxu2 %v4649_v58  ;;  %921 = vmatpush.bf16.msrb.mxu3 %v4595_v10 }
 0x12c   :  { %883 = vmatpush.bf16.msrb.mxu0 %v4590_v3  ;;  %896 = vmatpush.bf16.msrb.mxu1 %v4599_v14 }
 0x12d   :  { %909 = vmatpush.bf16.msrb.mxu2 %v4655_v0  ;;  %922 = vmatpush.bf16.msrb.mxu3 %v4605_v18 }
 0x130   :  { %884 = vmatpush.bf16.msrb.mxu0 %v4603_v17  ;;  %897 = vmatpush.bf16.msrb.mxu1 %v4625_v37 }
 0x131   :  { %910 = vmatpush.bf16.msrb.mxu2 %v4667_v4  ;;  %923 = vmatpush.bf16.msrb.mxu3 %v4631_v42 }
 0x134   :  { %885 = vmatpush.bf16.msrb.mxu0 %v4611_v24  ;;  %898 = vmatpush.bf16.msrb.mxu1 %v4635_v50 }
 0x135   :  { %911 = vmatpush.bf16.msrb.mxu2 %v4673_v8  ;;  %924 = vmatpush.bf16.msrb.mxu3 %v4638_v53 }
 0x193   :  { %v637_v52 = vpop.f32.mrf.mxu0  ;;  %v650_v16 = vpop.f32.mrf.mxu1 }
 0x194   :  { %v680_v7 = vadd.f32 %v637_v52, %v171_v38  ;;  %v681_v13 = vadd.f32 %v650_v16, %v200_v21 }
 0x196   :  { %v3522_v60 = vmul.f32 -1.442695, %v680_v7  ;;  %v3523_v26 = vmul.f32 -1.442695, %v681_v13 }
 0x198   :  { %4001 = vpow2.f32 %v3522_v60 }
 0x199   :  { %4003 = vpow2.f32 %v3523_v26 }
 0x19a   :  { %v663_v1 = vpop.f32.mrf.mxu2  ;;  %v676_v39 = vpop.f32.mrf.mxu3 }
 0x19b   :  { %v683_v12 = vadd.f32 %v676_v39, %v258_v9  ;;  %v639_v46 = vpop.f32.mrf.mxu0  ;;  %v652_v20 = vpop.f32.mrf.mxu1  ;;  %v682_v38 = vadd.f32 %v663_v1, %v229_v34 }
 0x19d   :  { %v3524_v2 = vmul.f32 -1.442695, %v683_v12 }
 0x19e   :  { %v4002_v33 = vpop.eup %4001 }
 0x19f   :  { %v4004_v57 = vpop.eup %4003  ;;  %v687_v6 = vadd.f32 1.0, %v4002_v33  ;;  %4005 = vpow2.f32 %v3524_v2 }
 0x1a0   :  { %v706_v63 = vadd.f32 1.0, %v4004_v57 }
 0x1a1   :  { %4007 = vrcp.f32 %v687_v6  ;;  %v699_v26 = vand.u32 2147483648, %v687_v6  ;;  %v697_v12 = vand.u32 2147483647, %v687_v6  ;;  %vm693_vm15 = vweird.f32 %v687_v6 }
 0x1a2   :  { %4009 = vrcp.f32 %v706_v63  ;;  %v665_v47 = vpop.f32.mrf.mxu2  ;;  %v678_v15 = vpop.f32.mrf.mxu3  ;;  %v718_v9 = vand.u32 2147483648, %v706_v63  ;;  %v716_v20 = vand.u32 2147483647, %v706_v63  ;;  %vm712_vm0 = vweird.f32 %v706_v63 }
 0x1a3   :  { %v700_v1 = vor.u32 1.1754944e-38, %v699_v26  ;;  %vm698_vm3 = vcmp.eq.f32.partialorder %v697_v12, 8.507059e+37 }
 0x1a4   :  { %v719_v47 = vor.u32 1.1754944e-38, %v718_v9  ;;  %vm717_vm4 = vcmp.eq.f32.partialorder %v716_v20, 8.507059e+37 }
 0x1a5   :  { %v4006_v30 = vpop.eup %4005 }
 0x1a6   :  { %v726_v44 = vadd.f32 1.0, %v4006_v30 }
 0x1a7   :  { %v4008_v21 = vpop.eup %4007 }
 0x1a8   :  { %v4010_v52 = vpop.eup %4009  ;;  %v689_v16 = vmul.f32 %v4008_v21, %v687_v6  ;;  %4011 = vrcp.f32 %v726_v44  ;;  %vm694_vm13 = vweird.f32 %v4008_v21  ;;  %v738_v26 = vand.u32 2147483648, %v726_v44 }
 0x1a9   :  { %v708_v7 = vmul.f32 %v4010_v52, %v706_v63  ;;  %4013 = vtanh.f32 %v682_v38  ;;  %vm713_vm14 = vweird.f32 %v4010_v52  ;;  %vm695_vm1 = vmor %vm693_vm15, %vm694_vm13  ;;  %vm732_vm6 = vweird.f32 %v726_v44 }
 0x1aa   :  { %v690_v13 = vsub.f32 1.0, %v689_v16  ;;  %vm714_vm2 = vmor %vm712_vm0, %vm713_vm14  ;;  %v739_v12 = vor.u32 1.1754944e-38, %v738_v26 }
 0x1ab   :  { %v709_v60 = vsub.f32 1.0, %v708_v7 }
 0x1ac   :  { %v691_v39 = vmul.f32 %v4008_v21, %v690_v13 }
 0x1ad   :  { %v710_v46 = vmul.f32 %v4010_v52, %v709_v60 }
 0x1ae   :  { %v4012_v2 = vpop.eup %4011  ;;  %v692_v19 = vadd.f32 %v4008_v21, %v691_v39 }
 0x1af   :  { %v711_v33 = vadd.f32 %v4010_v52, %v710_v46  ;;  %v728_v57 = vmul.f32 %v4012_v2, %v726_v44  ;;  %v4014_v30 = vpop.eup %4013  ;;  %vm733_vm5 = vweird.f32 %v4012_v2 }
 0x1b0   :  { %v696_v15 = vsel %vm695_vm1, %v4008_v21, %v692_v19  ;;  %v736_v21 = vand.u32 2147483647, %v726_v44  ;;  %vm734_vm7 = vmor %vm732_vm6, %vm733_vm5 }
 0x1b1   :  { %v701_v34 = vsel %vm698_vm3, %v700_v1, %v696_v15  ;;  %v715_v38 = vsel %vm714_vm2, %v4010_v52, %v711_v33  ;;  %v729_v16 = vsub.f32 1.0, %v728_v57  ;;  %v5766_v33 = vld [vmem:[#allocation25_spill] sm:$0xff] }
 0x1b2   :  { %v720_v7 = vsel %vm717_vm4, %v719_v47, %v715_v38  ;;  %v743_v13 = vmul.f32 %v4014_v30, %v701_v34  ;;  %vm737_vm8 = vcmp.eq.f32.partialorder %v736_v21, 8.507059e+37  ;;  %v5767_v38 = vld [vmem:[#allocation26_spill] sm:$0xff] }
 0x1b3   :  { %v742_v60 = vmul.f32 %v720_v7, %v4804_v28  ;;  %v730_v39 = vmul.f32 %v4012_v2, %v729_v16  ;;  %v174_v28 = vadd.f32 %v4839_v51, %v4790_v11 }
 0x1b5   :  { %v4851_v6 = vadd.f32 %v743_v13, %v742_v60  ;;  %v731_v63 = vadd.f32 %v4012_v2, %v730_v39 }
 0x1b7   :  { %4015 = vtanh.f32 %v4851_v6  ;;  %v735_v9 = vsel %vm734_vm7, %v4012_v2, %v731_v63 }
 0x1b8   :  { %v740_v46 = vsel %vm737_vm8, %v739_v12, %v735_v9 }
 0x1bd   :  { %v4016_v52 = vpop.eup %4015 }
 0x1be   :  { %v746_v20 = vmul.f32 %v4016_v52, %v740_v46 }
 0x1c0   :  { %747 = vst [vmem:[#allocation11 + $0x8] sm:$0xff] %v746_v20  ;;  %v752_v19 = vpack.c.bf16 %v746_v20, %v746_v20  ;;  %v5768_v20 = vld [vmem:[#allocation23_spill] sm:$0xff] }
 0x1c2   :  { %761 = vmatmul.bf16.vlgmr.msra.gmra.mxu0 %v752_v19  ;;  %774 = vmatmul.bf16.vlgmr.msra.gmra.mxu1 %v752_v19 }
 0x1c3   :  { %787 = vmatmul.bf16.vlgmr.msra.gmra.mxu2 %v752_v19  ;;  %800 = vmatmul.bf16.vlgmr.msra.gmra.mxu3 %v752_v19 }
 0x1c4   :  { %1003 = vmatpush.bf16.msra.mxu0 %v4533_v23  ;;  %1016 = vmatpush.bf16.msra.mxu1 %v4537_v27 }
 0x1c5   :  { %1029 = vmatpush.bf16.msra.mxu2 %v4614_v25  ;;  %1042 = vmatpush.bf16.msra.mxu3 %v4542_v32 }
 0x1c8   :  { %1004 = vmatpush.bf16.msra.mxu0 %v4540_v31  ;;  %1017 = vmatpush.bf16.msra.mxu1 %v4545_v36 }
 0x1c9   :  { %1030 = vmatpush.bf16.msra.mxu2 %v4619_v29  ;;  %1043 = vmatpush.bf16.msra.mxu3 %v4550_v40 }
 0x1cc   :  { %1005 = vmatpush.bf16.msra.mxu0 %v4554_v43  ;;  %1018 = vmatpush.bf16.msra.mxu1 %v4557_v48 }
 0x1cd   :  { %1031 = vmatpush.bf16.msra.mxu2 %v4629_v41  ;;  %1044 = vmatpush.bf16.msra.mxu3 %v4560_v49 }
 0x1d0   :  { %1006 = vmatpush.bf16.msra.mxu0 %v4570_v54  ;;  %1019 = vmatpush.bf16.msra.mxu1 %v4573_v59 }
 0x1d1   :  { %1032 = vmatpush.bf16.msra.mxu2 %v4641_v55  ;;  %1045 = vmatpush.bf16.msra.mxu3 %v4577_v61 }
 0x1d4   :  { %1007 = vmatpush.bf16.msra.mxu0 %v4580_v62  ;;  %1020 = vmatpush.bf16.msra.mxu1 %v4592_v5 }
 0x1d5   :  { %1033 = vmatpush.bf16.msra.mxu2 %v4649_v58  ;;  %1046 = vmatpush.bf16.msra.mxu3 %v4595_v10 }
 0x1d8   :  { %1008 = vmatpush.bf16.msra.mxu0 %v4590_v3  ;;  %1021 = vmatpush.bf16.msra.mxu1 %v4599_v14 }
 0x1d9   :  { %1034 = vmatpush.bf16.msra.mxu2 %v4655_v0  ;;  %1047 = vmatpush.bf16.msra.mxu3 %v4605_v18 }
 0x1dc   :  { %1009 = vmatpush.bf16.msra.mxu0 %v4603_v17  ;;  %1022 = vmatpush.bf16.msra.mxu1 %v4625_v37 }
 0x1dd   :  { %1035 = vmatpush.bf16.msra.mxu2 %v4667_v4  ;;  %1048 = vmatpush.bf16.msra.mxu3 %v4631_v42 }
 0x1e0   :  { %1010 = vmatpush.bf16.msra.mxu0 %v4611_v24  ;;  %1023 = vmatpush.bf16.msra.mxu1 %v4635_v50 }
 0x1e1   :  { %1036 = vmatpush.bf16.msra.mxu2 %v4673_v8  ;;  %1049 = vmatpush.bf16.msra.mxu3 %v4638_v53 }
 0x23f   :  { %v762_v44 = vpop.f32.mrf.mxu0  ;;  %v775_v2 = vpop.f32.mrf.mxu1 }
 0x240   :  { %v805_v1 = vadd.f32 %v762_v44, %v174_v28  ;;  %v806_v57 = vadd.f32 %v775_v2, %v5766_v33 }
 0x242   :  { %v3525_v47 = vmul.f32 -1.442695, %v805_v1  ;;  %v3526_v15 = vmul.f32 -1.442695, %v806_v57 }
 0x244   :  { %4017 = vpow2.f32 %v3525_v47 }
 0x245   :  { %4019 = vpow2.f32 %v3526_v15 }
 0x246   :  { %v788_v30 = vpop.f32.mrf.mxu2  ;;  %v801_v34 = vpop.f32.mrf.mxu3 }
 0x247   :  { %v808_v16 = vadd.f32 %v801_v34, %v5767_v38  ;;  %v764_v7 = vpop.f32.mrf.mxu0  ;;  %v777_v13 = vpop.f32.mrf.mxu1  ;;  %v807_v19 = vadd.f32 %v788_v30, %v5768_v20 }
 0x249   :  { %v3527_v60 = vmul.f32 -1.442695, %v808_v16 }
 0x24a   :  { %v4018_v39 = vpop.eup %4017 }
 0x24b   :  { %v4020_v63 = vpop.eup %4019  ;;  %v812_v26 = vadd.f32 1.0, %v4018_v39  ;;  %4021 = vpow2.f32 %v3527_v60 }
 0x24c   :  { %v831_v51 = vadd.f32 1.0, %v4020_v63 }
 0x24d   :  { %4023 = vrcp.f32 %v812_v26  ;;  %v824_v57 = vand.u32 2147483648, %v812_v26  ;;  %v822_v34 = vand.u32 2147483647, %v812_v26  ;;  %vm818_vm11 = vweird.f32 %v812_v26 }
 0x24e   :  { %4025 = vrcp.f32 %v831_v51  ;;  %v790_v21 = vpop.f32.mrf.mxu2  ;;  %v803_v9 = vpop.f32.mrf.mxu3  ;;  %v843_v47 = vand.u32 2147483648, %v831_v51  ;;  %v841_v16 = vand.u32 2147483647, %v831_v51  ;;  %vm837_vm12 = vweird.f32 %v831_v51 }
 0x24f   :  { %v825_v30 = vor.u32 1.1754944e-38, %v824_v57  ;;  %vm823_vm15 = vcmp.eq.f32.partialorder %v822_v34, 8.507059e+37 }
 0x250   :  { %v844_v63 = vor.u32 1.1754944e-38, %v843_v47  ;;  %vm842_vm0 = vcmp.eq.f32.partialorder %v841_v16, 8.507059e+37 }
 0x251   :  { %v4022_v12 = vpop.eup %4021 }
 0x252   :  { %v851_v52 = vadd.f32 1.0, %v4022_v12 }
 0x253   :  { %v4024_v46 = vpop.eup %4023 }
 0x254   :  { %v4026_v28 = vpop.eup %4025  ;;  %v814_v44 = vmul.f32 %v4024_v46, %v812_v26  ;;  %4027 = vrcp.f32 %v851_v52  ;;  %vm819_vm9 = vweird.f32 %v4024_v46  ;;  %v863_v57 = vand.u32 2147483648, %v851_v52 }
 0x255   :  { %v833_v2 = vmul.f32 %v4026_v28, %v831_v51  ;;  %4029 = vtanh.f32 %v807_v19  ;;  %vm838_vm10 = vweird.f32 %v4026_v28  ;;  %vm820_vm13 = vmor %vm818_vm11, %vm819_vm9  ;;  %vm857_vm2 = vweird.f32 %v851_v52 }
 0x256   :  { %v815_v1 = vsub.f32 1.0, %v814_v44  ;;  %vm839_vm14 = vmor %vm837_vm12, %vm838_vm10 }
 0x257   :  { %v834_v33 = vsub.f32 1.0, %v833_v2 }
 0x258   :  { %v816_v15 = vmul.f32 %v4024_v46, %v815_v1 }
 0x259   :  { %v835_v38 = vmul.f32 %v4026_v28, %v834_v33 }
 0x25a   :  { %v4028_v7 = vpop.eup %4027  ;;  %v817_v13 = vadd.f32 %v4024_v46, %v816_v15  ;;  %v864_v15 = vor.u32 1.1754944e-38, %v863_v57 }
 0x25b   :  { %v836_v60 = vadd.f32 %v4026_v28, %v835_v38  ;;  %v853_v39 = vmul.f32 %v4028_v7, %v851_v52  ;;  %v4030_v9 = vpop.eup %4029  ;;  %vm858_vm1 = vweird.f32 %v4028_v7 }
 0x25c   :  { %v821_v21 = vsel %vm820_vm13, %v4024_v46, %v817_v13  ;;  %v861_v46 = vand.u32 2147483647, %v851_v52  ;;  %vm859_vm3 = vmor %vm857_vm2, %vm858_vm1 }
 0x25d   :  { %v826_v12 = vsel %vm823_vm15, %v825_v30, %v821_v21  ;;  %v840_v20 = vsel %vm839_vm14, %v4026_v28, %v836_v60  ;;  %v854_v19 = vsub.f32 1.0, %v853_v39 }
 0x25e   :  { %v845_v44 = vsel %vm842_vm0, %v844_v63, %v840_v20  ;;  %v868_v2 = vmul.f32 %v4030_v9, %v826_v12  ;;  %vm862_vm4 = vcmp.eq.f32.partialorder %v861_v46, 8.507059e+37  ;;  %v5770_v9 = vld [vmem:[#allocation29_spill] sm:$0xff] }
 0x25f   :  { %v867_v1 = vmul.f32 %v845_v44, %v4851_v6  ;;  %v855_v33 = vmul.f32 %v4028_v7, %v854_v19  ;;  %v5769_v6 = vld [vmem:[#allocation28_spill] sm:$0xff]  ;;  %v263_v12 = vadd.f32 %v5770_v9, %v4758_v45 }
 0x260   :  { %v205_v52 = vadd.f32 %v5769_v6, %v4751_v35 }
 0x261   :  { %v4892_v26 = vadd.f32 %v868_v2, %v867_v1  ;;  %v856_v51 = vadd.f32 %v4028_v7, %v855_v33 }
 0x263   :  { %4031 = vtanh.f32 %v4892_v26  ;;  %v860_v47 = vsel %vm859_vm3, %v4028_v7, %v856_v51  ;;  %v176_v7 = vadd.f32 %v4841_v56, %v4790_v11 }
 0x264   :  { %v865_v34 = vsel %vm862_vm4, %v864_v15, %v860_v47 }
 0x269   :  { %v4032_v28 = vpop.eup %4031 }
 0x26a   :  { %v871_v38 = vmul.f32 %v4032_v28, %v865_v34  ;;  %v5771_v34 = vld [vmem:[#allocation24_spill] sm:$0xff] }
 0x26c   :  { %872 = vst [vmem:[#allocation11 + $0x10] sm:$0xff] %v871_v38  ;;  %v877_v16 = vpack.c.bf16 %v871_v38, %v871_v38  ;;  %v234_v38 = vadd.f32 %v5771_v34, %v4742_v22 }
 0x26e   :  { %886 = vmatmul.bf16.vlgmr.msrb.gmra.mxu0 %v877_v16  ;;  %899 = vmatmul.bf16.vlgmr.msrb.gmra.mxu1 %v877_v16 }
 0x26f   :  { %912 = vmatmul.bf16.vlgmr.msrb.gmra.mxu2 %v877_v16  ;;  %925 = vmatmul.bf16.vlgmr.msrb.gmra.mxu3 %v877_v16 }
 0x270   :  { %1128 = vmatpush.bf16.msrb.mxu0 %v4533_v23  ;;  %1141 = vmatpush.bf16.msrb.mxu1 %v4537_v27 }
 0x271   :  { %1154 = vmatpush.bf16.msrb.mxu2 %v4614_v25  ;;  %1167 = vmatpush.bf16.msrb.mxu3 %v4542_v32 }
 0x274   :  { %1129 = vmatpush.bf16.msrb.mxu0 %v4540_v31  ;;  %1142 = vmatpush.bf16.msrb.mxu1 %v4545_v36 }
 0x275   :  { %1155 = vmatpush.bf16.msrb.mxu2 %v4619_v29  ;;  %1168 = vmatpush.bf16.msrb.mxu3 %v4550_v40 }
 0x278   :  { %1130 = vmatpush.bf16.msrb.mxu0 %v4554_v43  ;;  %1143 = vmatpush.bf16.msrb.mxu1 %v4557_v48 }
 0x279   :  { %1156 = vmatpush.bf16.msrb.mxu2 %v4629_v41  ;;  %1169 = vmatpush.bf16.msrb.mxu3 %v4560_v49 }
 0x27c   :  { %1131 = vmatpush.bf16.msrb.mxu0 %v4570_v54  ;;  %1144 = vmatpush.bf16.msrb.mxu1 %v4573_v59 }
 0x27d   :  { %1157 = vmatpush.bf16.msrb.mxu2 %v4641_v55  ;;  %1170 = vmatpush.bf16.msrb.mxu3 %v4577_v61 }
 0x280   :  { %1132 = vmatpush.bf16.msrb.mxu0 %v4580_v62  ;;  %1145 = vmatpush.bf16.msrb.mxu1 %v4592_v5 }
 0x281   :  { %1158 = vmatpush.bf16.msrb.mxu2 %v4649_v58  ;;  %1171 = vmatpush.bf16.msrb.mxu3 %v4595_v10 }
 0x284   :  { %1133 = vmatpush.bf16.msrb.mxu0 %v4590_v3  ;;  %1146 = vmatpush.bf16.msrb.mxu1 %v4599_v14 }
 0x285   :  { %1159 = vmatpush.bf16.msrb.mxu2 %v4655_v0  ;;  %1172 = vmatpush.bf16.msrb.mxu3 %v4605_v18 }
 0x288   :  { %1134 = vmatpush.bf16.msrb.mxu0 %v4603_v17  ;;  %1147 = vmatpush.bf16.msrb.mxu1 %v4625_v37 }
 0x289   :  { %1160 = vmatpush.bf16.msrb.mxu2 %v4667_v4  ;;  %1173 = vmatpush.bf16.msrb.mxu3 %v4631_v42 }
 0x28c   :  { %1135 = vmatpush.bf16.msrb.mxu0 %v4611_v24  ;;  %1148 = vmatpush.bf16.msrb.mxu1 %v4635_v50 }
 0x28d   :  { %1161 = vmatpush.bf16.msrb.mxu2 %v4673_v8  ;;  %1174 = vmatpush.bf16.msrb.mxu3 %v4638_v53 }
 0x2eb   :  { %v887_v13 = vpop.f32.mrf.mxu0  ;;  %v900_v30 = vpop.f32.mrf.mxu1 }
 0x2ec   :  { %v930_v60 = vadd.f32 %v887_v13, %v176_v7  ;;  %v931_v39 = vadd.f32 %v900_v30, %v205_v52 }
 0x2ee   :  { %v3528_v63 = vmul.f32 -1.442695, %v930_v60  ;;  %v3529_v21 = vmul.f32 -1.442695, %v931_v39 }
 0x2f0   :  { %4033 = vpow2.f32 %v3528_v63 }
 0x2f1   :  { %4035 = vpow2.f32 %v3529_v21 }
 0x2f2   :  { %v913_v20 = vpop.f32.mrf.mxu2  ;;  %v926_v19 = vpop.f32.mrf.mxu3 }
 0x2f3   :  { %v933_v44 = vadd.f32 %v926_v19, %v263_v12  ;;  %v889_v2 = vpop.f32.mrf.mxu0  ;;  %v902_v1 = vpop.f32.mrf.mxu1  ;;  %v932_v52 = vadd.f32 %v913_v20, %v234_v38 }
 0x2f5   :  { %v3530_v33 = vmul.f32 -1.442695, %v933_v44 }
 0x2f6   :  { %v4034_v51 = vpop.eup %4033 }
 0x2f7   :  { %v4036_v57 = vpop.eup %4035  ;;  %v937_v56 = vadd.f32 1.0, %v4034_v51  ;;  %4037 = vpow2.f32 %v3530_v33 }
 0x2f8   :  { %v956_v46 = vadd.f32 1.0, %v4036_v57 }
 0x2f9   :  { %4039 = vrcp.f32 %v937_v56  ;;  %v949_v63 = vand.u32 2147483648, %v937_v56  ;;  %v947_v12 = vand.u32 2147483647, %v937_v56  ;;  %vm943_vm7 = vweird.f32 %v937_v56 }
 0x2fa   :  { %4041 = vrcp.f32 %v956_v46  ;;  %v915_v47 = vpop.f32.mrf.mxu2  ;;  %v928_v15 = vpop.f32.mrf.mxu3  ;;  %v968_v21 = vand.u32 2147483648, %v956_v46  ;;  %v966_v44 = vand.u32 2147483647, %v956_v46  ;;  %vm962_vm8 = vweird.f32 %v956_v46 }
 0x2fb   :  { %v950_v20 = vor.u32 1.1754944e-38, %v949_v63  ;;  %vm948_vm11 = vcmp.eq.f32.partialorder %v947_v12, 8.507059e+37 }
 0x2fc   :  { %v969_v57 = vor.u32 1.1754944e-38, %v968_v21  ;;  %vm967_vm12 = vcmp.eq.f32.partialorder %v966_v44, 8.507059e+37 }
 0x2fd   :  { %v4038_v28 = vpop.eup %4037 }
 0x2fe   :  { %v976_v16 = vadd.f32 1.0, %v4038_v28 }
 0x2ff   :  { %v4040_v6 = vpop.eup %4039 }
 0x300   :  { %v4042_v7 = vpop.eup %4041  ;;  %v939_v13 = vmul.f32 %v4040_v6, %v937_v56  ;;  %4043 = vrcp.f32 %v976_v16  ;;  %vm944_vm5 = vweird.f32 %v4040_v6  ;;  %vm982_vm14 = vweird.f32 %v976_v16 }
 0x301   :  { %v958_v30 = vmul.f32 %v4042_v7, %v956_v46  ;;  %4045 = vtanh.f32 %v932_v52  ;;  %vm963_vm6 = vweird.f32 %v4042_v7  ;;  %vm945_vm9 = vmor %vm943_vm7, %vm944_vm5 }
 0x302   :  { %v940_v60 = vsub.f32 1.0, %v939_v13  ;;  %vm964_vm10 = vmor %vm962_vm8, %vm963_vm6 }
 0x303   :  { %v959_v39 = vsub.f32 1.0, %v958_v30 }
 0x304   :  { %v941_v9 = vmul.f32 %v4040_v6, %v940_v60 }
 0x305   :  { %v960_v19 = vmul.f32 %v4042_v7, %v959_v39  ;;  %v988_v39 = vand.u32 2147483648, %v976_v16 }
 0x306   :  { %v4044_v2 = vpop.eup %4043  ;;  %v942_v1 = vadd.f32 %v4040_v6, %v941_v9 }
 0x307   :  { %v961_v33 = vadd.f32 %v4042_v7, %v960_v19  ;;  %v978_v51 = vmul.f32 %v4044_v2, %v976_v16  ;;  %v4046_v15 = vpop.eup %4045  ;;  %vm983_vm13 = vweird.f32 %v4044_v2  ;;  %v989_v21 = vor.u32 1.1754944e-38, %v988_v39 }
 0x308   :  { %v946_v47 = vsel %vm945_vm9, %v4040_v6, %v942_v1  ;;  %v986_v6 = vand.u32 2147483647, %v976_v16  ;;  %vm984_vm15 = vmor %vm982_vm14, %vm983_vm13  ;;  %v5772_v16 = vld [vmem:[#allocation19_spill] sm:$0xff] }
 0x309   :  { %v951_v28 = vsel %vm948_vm11, %v950_v20, %v946_v47  ;;  %v965_v34 = vsel %vm964_vm10, %v4042_v7, %v961_v33  ;;  %v979_v38 = vsub.f32 1.0, %v978_v51  ;;  %v179_v19 = vadd.f32 %v5772_v16, %v4790_v11  ;;  %v5773_v20 = vld [vmem:[#allocation31_spill] sm:$0xff] }
 0x30a   :  { %v970_v52 = vsel %vm967_vm12, %v969_v57, %v965_v34  ;;  %v993_v13 = vmul.f32 %v4046_v15, %v951_v28  ;;  %vm987_vm0 = vcmp.eq.f32.partialorder %v986_v6, 8.507059e+37  ;;  %v5774_v28 = vld [vmem:[#allocation32_spill] sm:$0xff] }
 0x30b   :  { %v992_v30 = vmul.f32 %v970_v52, %v4892_v26  ;;  %v980_v60 = vmul.f32 %v4044_v2, %v979_v38 }
 0x30d   :  { %v4936_v56 = vadd.f32 %v993_v13, %v992_v30  ;;  %v981_v46 = vadd.f32 %v4044_v2, %v980_v60 }
 0x30f   :  { %4047 = vtanh.f32 %v4936_v56  ;;  %v985_v63 = vsel %vm984_vm15, %v4044_v2, %v981_v46 }
 0x310   :  { %v990_v9 = vsel %vm987_vm0, %v989_v21, %v985_v63 }
 0x315   :  { %v4048_v7 = vpop.eup %4047 }
 0x316   :  { %v4939_v12 = vmul.f32 %v4048_v7, %v990_v9 }
 0x318   :  { %v1002_v26 = vpack.c.bf16 %v4939_v12, %v4939_v12 }
 0x31a   :  { %1011 = vmatmul.bf16.vlgmr.msra.gmra.mxu0 %v1002_v26  ;;  %1024 = vmatmul.bf16.vlgmr.msra.gmra.mxu1 %v1002_v26 }
 0x31b   :  { %1037 = vmatmul.bf16.vlgmr.msra.gmra.mxu2 %v1002_v26  ;;  %1050 = vmatmul.bf16.vlgmr.msra.gmra.mxu3 %v1002_v26  ;;  %v5775_v26 = vld [vmem:[#allocation27_spill] sm:$0xff] }
 0x31c   :  { %1253 = vmatpush.bf16.msra.mxu0 %v4533_v23  ;;  %1266 = vmatpush.bf16.msra.mxu1 %v4537_v27 }
 0x31d   :  { %1279 = vmatpush.bf16.msra.mxu2 %v4614_v25  ;;  %1292 = vmatpush.bf16.msra.mxu3 %v4542_v32 }
 0x320   :  { %1254 = vmatpush.bf16.msra.mxu0 %v4540_v31  ;;  %1267 = vmatpush.bf16.msra.mxu1 %v4545_v36 }
 0x321   :  { %1280 = vmatpush.bf16.msra.mxu2 %v4619_v29  ;;  %1293 = vmatpush.bf16.msra.mxu3 %v4550_v40 }
 0x324   :  { %1255 = vmatpush.bf16.msra.mxu0 %v4554_v43  ;;  %1268 = vmatpush.bf16.msra.mxu1 %v4557_v48 }
 0x325   :  { %1281 = vmatpush.bf16.msra.mxu2 %v4629_v41  ;;  %1294 = vmatpush.bf16.msra.mxu3 %v4560_v49 }
 0x328   :  { %1256 = vmatpush.bf16.msra.mxu0 %v4570_v54  ;;  %1269 = vmatpush.bf16.msra.mxu1 %v4573_v59 }
 0x329   :  { %1282 = vmatpush.bf16.msra.mxu2 %v4641_v55  ;;  %1295 = vmatpush.bf16.msra.mxu3 %v4577_v61 }
 0x32c   :  { %1257 = vmatpush.bf16.msra.mxu0 %v4580_v62  ;;  %1270 = vmatpush.bf16.msra.mxu1 %v4592_v5 }
 0x32d   :  { %1283 = vmatpush.bf16.msra.mxu2 %v4649_v58  ;;  %1296 = vmatpush.bf16.msra.mxu3 %v4595_v10 }
 0x330   :  { %1258 = vmatpush.bf16.msra.mxu0 %v4590_v3  ;;  %1271 = vmatpush.bf16.msra.mxu1 %v4599_v14 }
 0x331   :  { %1284 = vmatpush.bf16.msra.mxu2 %v4655_v0  ;;  %1297 = vmatpush.bf16.msra.mxu3 %v4605_v18 }
 0x334   :  { %1259 = vmatpush.bf16.msra.mxu0 %v4603_v17  ;;  %1272 = vmatpush.bf16.msra.mxu1 %v4625_v37 }
 0x335   :  { %1285 = vmatpush.bf16.msra.mxu2 %v4667_v4  ;;  %1298 = vmatpush.bf16.msra.mxu3 %v4631_v42 }
 0x338   :  { %1260 = vmatpush.bf16.msra.mxu0 %v4611_v24  ;;  %1273 = vmatpush.bf16.msra.mxu1 %v4635_v50 }
 0x339   :  { %1286 = vmatpush.bf16.msra.mxu2 %v4673_v8  ;;  %1299 = vmatpush.bf16.msra.mxu3 %v4638_v53 }
 0x397   :  { %v1012_v44 = vpop.f32.mrf.mxu0  ;;  %v1025_v2 = vpop.f32.mrf.mxu1 }
 0x398   :  { %v1055_v1 = vadd.f32 %v1012_v44, %v179_v19  ;;  %v1056_v33 = vadd.f32 %v1025_v2, %v5773_v20 }
 0x39a   :  { %v3531_v51 = vmul.f32 -1.442695, %v1055_v1  ;;  %v3532_v57 = vmul.f32 -1.442695, %v1056_v33 }
 0x39c   :  { %4049 = vpow2.f32 %v3531_v51 }
 0x39d   :  { %4051 = vpow2.f32 %v3532_v57 }
 0x39e   :  { %v1038_v47 = vpop.f32.mrf.mxu2  ;;  %v1051_v15 = vpop.f32.mrf.mxu3 }
 0x39f   :  { %v1058_v34 = vadd.f32 %v1051_v15, %v5774_v28  ;;  %v1014_v38 = vpop.f32.mrf.mxu0  ;;  %v1027_v52 = vpop.f32.mrf.mxu1  ;;  %v1057_v16 = vadd.f32 %v1038_v47, %v5775_v26 }
 0x3a1   :  { %v3533_v13 = vmul.f32 -1.442695, %v1058_v34 }
 0x3a2   :  { %v4050_v30 = vpop.eup %4049 }
 0x3a3   :  { %v4052_v60 = vpop.eup %4051  ;;  %v1062_v46 = vadd.f32 1.0, %v4050_v30  ;;  %4053 = vpow2.f32 %v3533_v13 }
 0x3a4   :  { %v1081_v39 = vadd.f32 1.0, %v4052_v60 }
 0x3a5   :  { %4055 = vrcp.f32 %v1062_v46  ;;  %v1074_v33 = vand.u32 2147483648, %v1062_v46  ;;  %v1072_v15 = vand.u32 2147483647, %v1062_v46  ;;  %vm1068_vm3 = vweird.f32 %v1062_v46 }
 0x3a6   :  { %4057 = vrcp.f32 %v1081_v39  ;;  %v1040_v6 = vpop.f32.mrf.mxu2  ;;  %v1053_v63 = vpop.f32.mrf.mxu3  ;;  %v1093_v51 = vand.u32 2147483648, %v1081_v39  ;;  %v1091_v34 = vand.u32 2147483647, %v1081_v39  ;;  %vm1087_vm4 = vweird.f32 %v1081_v39 }
 0x3a7   :  { %v1075_v47 = vor.u32 1.1754944e-38, %v1074_v33  ;;  %vm1073_vm7 = vcmp.eq.f32.partialorder %v1072_v15, 8.507059e+37 }
 0x3a8   :  { %v1094_v60 = vor.u32 1.1754944e-38, %v1093_v51  ;;  %vm1092_vm8 = vcmp.eq.f32.partialorder %v1091_v34, 8.507059e+37 }
 0x3a9   :  { %v4054_v21 = vpop.eup %4053 }
 0x3aa   :  { %v1101_v7 = vadd.f32 1.0, %v4054_v21 }
 0x3ab   :  { %v4056_v9 = vpop.eup %4055 }
 0x3ac   :  { %v4058_v19 = vpop.eup %4057  ;;  %v1064_v44 = vmul.f32 %v4056_v9, %v1062_v46  ;;  %4059 = vrcp.f32 %v1101_v7  ;;  %vm1069_vm1 = vweird.f32 %v4056_v9  ;;  %v1113_v33 = vand.u32 2147483648, %v1101_v7 }
 0x3ad   :  { %v1083_v2 = vmul.f32 %v4058_v19, %v1081_v39  ;;  %4061 = vtanh.f32 %v1057_v16  ;;  %vm1088_vm2 = vweird.f32 %v4058_v19  ;;  %vm1070_vm5 = vmor %vm1068_vm3, %vm1069_vm1  ;;  %vm1107_vm10 = vweird.f32 %v1101_v7 }
 0x3ae   :  { %v1065_v1 = vsub.f32 1.0, %v1064_v44  ;;  %vm1089_vm6 = vmor %vm1087_vm4, %vm1088_vm2 }
 0x3af   :  { %v1084_v20 = vsub.f32 1.0, %v1083_v2 }
 0x3b0   :  { %v1066_v57 = vmul.f32 %v4056_v9, %v1065_v1 }
 0x3b1   :  { %v1085_v28 = vmul.f32 %v4058_v19, %v1084_v20 }
 0x3b2   :  { %v4060_v38 = vpop.eup %4059  ;;  %v1067_v52 = vadd.f32 %v4056_v9, %v1066_v57  ;;  %v1114_v57 = vor.u32 1.1754944e-38, %v1113_v33 }
 0x3b3   :  { %v1086_v13 = vadd.f32 %v4058_v19, %v1085_v28  ;;  %v1103_v30 = vmul.f32 %v4060_v38, %v1101_v7  ;;  %v4062_v63 = vpop.eup %4061  ;;  %vm1108_vm9 = vweird.f32 %v4060_v38 }
 0x3b4   :  { %v1071_v6 = vsel %vm1070_vm5, %v4056_v9, %v1067_v52  ;;  %v1111_v9 = vand.u32 2147483647, %v1101_v7  ;;  %vm1109_vm11 = vmor %vm1107_vm10, %vm1108_vm9 }
 0x3b5   :  { %v1076_v21 = vsel %vm1073_vm7, %v1075_v47, %v1071_v6  ;;  %v1090_v26 = vsel %vm1089_vm6, %v4058_v19, %v1086_v13  ;;  %v1104_v16 = vsub.f32 1.0, %v1103_v30 }
 0x3b6   :  { %v1095_v44 = vsel %vm1092_vm8, %v1094_v60, %v1090_v26  ;;  %v1118_v2 = vmul.f32 %v4062_v63, %v1076_v21  ;;  %vm1112_vm12 = vcmp.eq.f32.partialorder %v1111_v9, 8.507059e+37 }
 0x3b7   :  { %v1117_v1 = vmul.f32 %v1095_v44, %v4936_v56  ;;  %v1105_v20 = vmul.f32 %v4060_v38, %v1104_v16 }
 0x3b9   :  { %v4981_v46 = vadd.f32 %v1118_v2, %v1117_v1  ;;  %v1106_v39 = vadd.f32 %v4060_v38, %v1105_v20 }
 0x3bb   :  { %4063 = vtanh.f32 %v4981_v46  ;;  %v1110_v51 = vsel %vm1109_vm11, %v4060_v38, %v1106_v39 }
 0x3bc   :  { %v1115_v15 = vsel %vm1112_vm12, %v1114_v57, %v1110_v51 }
 0x3c1   :  { %v4064_v19 = vpop.eup %4063 }
 0x3c2   :  { %v4984_v28 = vmul.f32 %v4064_v19, %v1115_v15 }
 0x3c4   :  { %v1127_v56 = vpack.c.bf16 %v4984_v28, %v4984_v28 }
 0x3c6   :  { %1136 = vmatmul.bf16.vlgmr.msrb.gmra.mxu0 %v1127_v56  ;;  %1149 = vmatmul.bf16.vlgmr.msrb.gmra.mxu1 %v1127_v56 }
 0x3c7   :  { %1162 = vmatmul.bf16.vlgmr.msrb.gmra.mxu2 %v1127_v56  ;;  %1175 = vmatmul.bf16.vlgmr.msrb.gmra.mxu3 %v1127_v56 }
 0x3c8   :  { %1378 = vmatpush.bf16.msrb.mxu0 %v4533_v23  ;;  %1391 = vmatpush.bf16.msrb.mxu1 %v4537_v27  ;;  %v5776_v23 = vld [vmem:[#allocation21_spill] sm:$0xff] }
 0x3c9   :  { %1404 = vmatpush.bf16.msrb.mxu2 %v4614_v25  ;;  %1417 = vmatpush.bf16.msrb.mxu3 %v4542_v32  ;;  %v181_v27 = vadd.f32 %v5776_v23, %v4790_v11 }
 0x3cc   :  { %1379 = vmatpush.bf16.msrb.mxu0 %v4540_v31  ;;  %1392 = vmatpush.bf16.msrb.mxu1 %v4545_v36  ;;  %v5777_v31 = vld [vmem:[#allocation34_spill] sm:$0xff] }
 0x3cd   :  { %1405 = vmatpush.bf16.msrb.mxu2 %v4619_v29  ;;  %1418 = vmatpush.bf16.msrb.mxu3 %v4550_v40  ;;  %v210_v32 = vadd.f32 %v5777_v31, %v4751_v35 }
 0x3d0   :  { %1380 = vmatpush.bf16.msrb.mxu0 %v4554_v43  ;;  %1393 = vmatpush.bf16.msrb.mxu1 %v4557_v48 }
 0x3d1   :  { %1406 = vmatpush.bf16.msrb.mxu2 %v4629_v41  ;;  %1419 = vmatpush.bf16.msrb.mxu3 %v4560_v49 }
 0x3d4   :  { %1381 = vmatpush.bf16.msrb.mxu0 %v4570_v54  ;;  %1394 = vmatpush.bf16.msrb.mxu1 %v4573_v59  ;;  %v5778_v59 = vld [vmem:[#allocation35_spill] sm:$0xff] }
 0x3d5   :  { %1407 = vmatpush.bf16.msrb.mxu2 %v4641_v55  ;;  %1420 = vmatpush.bf16.msrb.mxu3 %v4577_v61  ;;  %v268_v61 = vadd.f32 %v5778_v59, %v4758_v45  ;;  %v3927_v59 = vld [vmem:[#allocation8 + $0xe4] sm:$0xf] }
 0x3d8   :  { %1382 = vmatpush.bf16.msrb.mxu0 %v4580_v62  ;;  %1395 = vmatpush.bf16.msrb.mxu1 %v4592_v5 }
 0x3d9   :  { %1408 = vmatpush.bf16.msrb.mxu2 %v4649_v58  ;;  %1421 = vmatpush.bf16.msrb.mxu3 %v4595_v10 }
 0x3dc   :  { %1383 = vmatpush.bf16.msrb.mxu0 %v4590_v3  ;;  %1396 = vmatpush.bf16.msrb.mxu1 %v4599_v14 }
 0x3dd   :  { %1409 = vmatpush.bf16.msrb.mxu2 %v4655_v0  ;;  %1422 = vmatpush.bf16.msrb.mxu3 %v4605_v18 }
 0x3e0   :  { %1384 = vmatpush.bf16.msrb.mxu0 %v4603_v17  ;;  %1397 = vmatpush.bf16.msrb.mxu1 %v4625_v37 }
 0x3e1   :  { %1410 = vmatpush.bf16.msrb.mxu2 %v4667_v4  ;;  %1423 = vmatpush.bf16.msrb.mxu3 %v4631_v42 }
 0x3e4   :  { %1385 = vmatpush.bf16.msrb.mxu0 %v4611_v24  ;;  %1398 = vmatpush.bf16.msrb.mxu1 %v4635_v50  ;;  %v5779_v50 = vld [vmem:[#allocation30_spill] sm:$0xff] }
 0x3e5   :  { %1411 = vmatpush.bf16.msrb.mxu2 %v4673_v8  ;;  %1424 = vmatpush.bf16.msrb.mxu3 %v4638_v53  ;;  %v239_v53 = vadd.f32 %v5779_v50, %v4742_v22  ;;  %v5781_v50 = vld [vmem:[#allocation37_spill] sm:$0xff] }
 0x443   :  { %v1137_v36 = vpop.f32.mrf.mxu0  ;;  %v1150_v40 = vpop.f32.mrf.mxu1 }
 0x444   :  { %v1180_v43 = vadd.f32 %v1137_v36, %v181_v27  ;;  %v1181_v48 = vadd.f32 %v1150_v40, %v210_v32 }
 0x446   :  { %v3534_v49 = vmul.f32 -1.442695, %v1180_v43  ;;  %v3535_v54 = vmul.f32 -1.442695, %v1181_v48 }
 0x448   :  { %4065 = vpow2.f32 %v3534_v49  ;;  %v3657_v49 = vld [vmem:[#allocation8 + $0xe0] sm:$0xf] }
 0x449   :  { %4067 = vpow2.f32 %v3535_v54  ;;  %v3929_v54 = vld [vmem:[#allocation8 + $0xec] sm:$0xf0] }
 0x44a   :  { %v1163_v62 = vpop.f32.mrf.mxu2  ;;  %v1176_v3 = vpop.f32.mrf.mxu3 }
 0x44b   :  { %v1183_v5 = vadd.f32 %v1176_v3, %v268_v61  ;;  %v1139_v10 = vpop.f32.mrf.mxu0  ;;  %v1152_v14 = vpop.f32.mrf.mxu1  ;;  %v1182_v0 = vadd.f32 %v1163_v62, %v239_v53  ;;  %v3658_v61 = vor.u32 %v3929_v54, %v3657_v49  ;;  %v3659_v62 = vld [vmem:[#allocation8 + $0xf0] sm:$0xf0]  ;;  %v3665_v3 = vld [vmem:[#allocation8 + $0xe8] sm:$0xf]  ;;  %v3918_v54 = vld [vmem:[#allocation8 + $0x94] sm:$0xf0] }
 0x44c   :  { %v5780_v10 = vld [vmem:[#allocation20_spill] sm:$0xff] }
 0x44d   :  { %v3536_v17 = vmul.f32 -1.442695, %v1183_v5  ;;  %v3930_v5 = vld [vmem:[#allocation8 + $0xf4] sm:$0xf0]  ;;  %v184_v14 = vadd.f32 %v5780_v10, %v4790_v11  ;;  %v3617_v49 = vld [vmem:[#allocation8 + $0x88] sm:$0xf] }
 0x44e   :  { %v4066_v18 = vpop.eup %4065 }
 0x44f   :  { %v4068_v24 = vpop.eup %4067  ;;  %v1187_v25 = vadd.f32 1.0, %v4066_v18  ;;  %4069 = vpow2.f32 %v3536_v17  ;;  %v3662_v17 = vor.u32 %v3927_v59, %v3659_v62  ;;  %v3666_v18 = vor.u32 %v3930_v5, %v3665_v3  ;;  %v3916_v62 = vld [vmem:[#allocation8 + $0x8c] sm:$0xf]  ;;  %v3619_v3 = vld [vmem:[#allocation8 + $0x98] sm:$0xf0] }
 0x450   :  { %v1206_v29 = vadd.f32 1.0, %v4068_v24  ;;  %v3928_v24 = vld [vmem:[#allocation8 + $0xec] sm:$0xf] }
 0x451   :  { %4071 = vrcp.f32 %v1187_v25  ;;  %v1199_v52 = vand.u32 2147483648, %v1187_v25  ;;  %v1197_v30 = vand.u32 2147483647, %v1187_v25  ;;  %vm1193_vm15 = vweird.f32 %v1187_v25 }
 0x452   :  { %4073 = vrcp.f32 %v1206_v29  ;;  %v1165_v37 = vpop.f32.mrf.mxu2  ;;  %v1178_v41 = vpop.f32.mrf.mxu3  ;;  %v1218_v47 = vand.u32 2147483648, %v1206_v29  ;;  %v1216_v6 = vand.u32 2147483647, %v1206_v29  ;;  %vm1212_vm0 = vweird.f32 %v1206_v29 }
 0x453   :  { %v1200_v26 = vor.u32 1.1754944e-38, %v1199_v52  ;;  %vm1198_vm3 = vcmp.eq.f32.partialorder %v1197_v30, 8.507059e+37  ;;  %v3924_v30 = vld [vmem:[#allocation8 + $0xcc] sm:$0xf] }
 0x454   :  { %v1219_v2 = vor.u32 1.1754944e-38, %v1218_v47  ;;  %vm1217_vm4 = vcmp.eq.f32.partialorder %v1216_v6, 8.507059e+37  ;;  %v3625_v6 = vld [vmem:[#allocation8 + $0xa0] sm:$0xf] }
 0x455   :  { %v4070_v42 = vpop.eup %4069 }
 0x456   :  { %v1226_v55 = vadd.f32 1.0, %v4070_v42 }
 0x457   :  { %v4072_v58 = vpop.eup %4071 }
 0x458   :  { %v4074_v4 = vpop.eup %4073  ;;  %v1189_v8 = vmul.f32 %v4072_v58, %v1187_v25  ;;  %4075 = vrcp.f32 %v1226_v55  ;;  %vm1194_vm13 = vweird.f32 %v4072_v58  ;;  %v1238_v27 = vand.u32 2147483648, %v1226_v55  ;;  %v3667_v25 = vld [vmem:[#allocation8 + $0xf8] sm:$0xf0] }
 0x459   :  { %v1208_v7 = vmul.f32 %v4074_v4, %v1206_v29  ;;  %4077 = vtanh.f32 %v1182_v0  ;;  %vm1213_vm14 = vweird.f32 %v4074_v4  ;;  %vm1195_vm1 = vmor %vm1193_vm15, %vm1194_vm13  ;;  %vm1232_vm6 = vweird.f32 %v1226_v55  ;;  %v3923_v0 = vld [vmem:[#allocation8 + $0xc4] sm:$0xf] }
 0x45a   :  { %v1190_v34 = vsub.f32 1.0, %v1189_v8  ;;  %vm1214_vm2 = vmor %vm1212_vm0, %vm1213_vm14  ;;  %v1236_v31 = vand.u32 2147483647, %v1226_v55  ;;  %v1239_v36 = vor.u32 1.1754944e-38, %v1238_v27  ;;  %v3670_v41 = vor.u32 %v3928_v24, %v3667_v25  ;;  %v3643_v8 = vld [vmem:[#allocation8 + $0xd0] sm:$0xf0] }
 0x45b   :  { %v1209_v38 = vsub.f32 1.0, %v1208_v7  ;;  %v3649_v7 = vld [vmem:[#allocation8 + $0xc8] sm:$0xf]  ;;  %v3646_v47 = vor.u32 %v3923_v0, %v3643_v8  ;;  %v3915_v27 = vld [vmem:[#allocation8 + $0x84] sm:$0xf] }
 0x45c   :  { %v1191_v13 = vmul.f32 %v4072_v58, %v1190_v34  ;;  %vm1237_vm8 = vcmp.eq.f32.partialorder %v1236_v31, 8.507059e+37  ;;  %v3926_v34 = vld [vmem:[#allocation8 + $0xd4] sm:$0xf0]  ;;  %v3593_v25 = vld [vmem:[#allocation8 + $0x60] sm:$0xf] }
 0x45d   :  { %v1210_v60 = vmul.f32 %v4074_v4, %v1209_v38  ;;  %v5782_v31 = vld [vmem:[#allocation38_spill] sm:$0xff]  ;;  %v3601_v0 = vld [vmem:[#allocation8 + $0x68] sm:$0xf] }
 0x45e   :  { %v4076_v63 = vpop.eup %4075  ;;  %v1192_v21 = vadd.f32 %v4072_v58, %v1191_v13  ;;  %v3650_v13 = vor.u32 %v3926_v34, %v3649_v7  ;;  %v5783_v7 = vld [vmem:[#allocation33_spill] sm:$0xff] }
 0x45f   :  { %v1211_v16 = vadd.f32 %v4074_v4, %v1210_v60  ;;  %v1228_v44 = vmul.f32 %v4076_v63, %v1226_v55  ;;  %v4078_v20 = vpop.eup %4077  ;;  %vm1233_vm5 = vweird.f32 %v4076_v63  ;;  %v3641_v55 = vld [vmem:[#allocation8 + $0xc0] sm:$0xf]  ;;  %v3651_v60 = vld [vmem:[#allocation8 + $0xd8] sm:$0xf0] }
 0x460   :  { %v1196_v1 = vsel %vm1195_vm1, %v4072_v58, %v1192_v21  ;;  %vm1234_vm7 = vmor %vm1232_vm6, %vm1233_vm5  ;;  %v3925_v58 = vld [vmem:[#allocation8 + $0xcc] sm:$0xf0]  ;;  %v3654_v21 = vor.u32 %v3924_v30, %v3651_v60 }
 0x461   :  { %v1201_v39 = vsel %vm1198_vm3, %v1200_v26, %v1196_v1  ;;  %v1215_v33 = vsel %vm1214_vm2, %v4074_v4, %v1211_v16  ;;  %v1229_v9 = vsub.f32 1.0, %v1228_v44  ;;  %v3642_v4 = vor.u32 %v3925_v58, %v3641_v55  ;;  %v3919_v16 = vld [vmem:[#allocation8 + $0xa4] sm:$0xf]  ;;  %v3627_v44 = vld [vmem:[#allocation8 + $0xb0] sm:$0xf0] }
 0x462   :  { %v1220_v51 = vsel %vm1217_vm4, %v1219_v2, %v1215_v33  ;;  %v1243_v57 = vmul.f32 %v4078_v20, %v1201_v39  ;;  %v3633_v2 = vld [vmem:[#allocation8 + $0xa8] sm:$0xf]  ;;  %v3630_v1 = vor.u32 %v3919_v16, %v3627_v44  ;;  %v3922_v20 = vld [vmem:[#allocation8 + $0xb4] sm:$0xf0]  ;;  %v3920_v39 = vld [vmem:[#allocation8 + $0xac] sm:$0xf] }
 0x463   :  { %v1242_v19 = vmul.f32 %v1220_v51, %v4981_v46  ;;  %v1230_v15 = vmul.f32 %v4076_v63, %v1229_v9  ;;  %v3635_v33 = vld [vmem:[#allocation8 + $0xb8] sm:$0xf0]  ;;  %v3579_v16 = vld [vmem:[#allocation8 + $0x50] sm:$0xf0]  ;;  %v3585_v44 = vld [vmem:[#allocation8 + $0x48] sm:$0xf] }
 0x465   :  { %v5029_v56 = vadd.f32 %v1243_v57, %v1242_v19  ;;  %v1231_v23 = vadd.f32 %v4076_v63, %v1230_v15  ;;  %v3634_v57 = vor.u32 %v3922_v20, %v3633_v2  ;;  %v3638_v19 = vor.u32 %v3920_v39, %v3635_v33  ;;  %v3609_v15 = vld [vmem:[#allocation8 + $0x80] sm:$0xf]  ;;  %v3910_v2 = vld [vmem:[#allocation8 + $0x54] sm:$0xf0]  ;;  %v3908_v39 = vld [vmem:[#allocation8 + $0x4c] sm:$0xf] }
 0x466   :  { %v3587_v33 = vld [vmem:[#allocation8 + $0x58] sm:$0xf0] }
 0x467   :  { %4079 = vtanh.f32 %v5029_v56  ;;  %v1235_v32 = vsel %vm1234_vm7, %v4076_v63, %v1231_v23  ;;  %v3921_v63 = vld [vmem:[#allocation8 + $0xac] sm:$0xf0] }
 0x468   :  { %v1240_v43 = vsel %vm1237_vm8, %v1239_v36, %v1235_v32  ;;  %v3626_v26 = vor.u32 %v3921_v63, %v3625_v6  ;;  %v3917_v23 = vld [vmem:[#allocation8 + $0x8c] sm:$0xf0]  ;;  %v3907_v63 = vld [vmem:[#allocation8 + $0x44] sm:$0xf] }
 0x469   :  { %v3909_v6 = vld [vmem:[#allocation8 + $0x4c] sm:$0xf0] }
 0x46d   :  { %v4080_v40 = vpop.eup %4079 }
 0x46e   :  { %v5032_v48 = vmul.f32 %v4080_v40, %v1240_v43  ;;  %v3610_v43 = vor.u32 %v3917_v23, %v3609_v15  ;;  %v3905_v15 = vld [vmem:[#allocation8 + $0x2c] sm:$0xf0] }
 0x470   :  { %v1252_v46 = vpack.c.bf16 %v5032_v48, %v5032_v48 }
 0x472   :  { %1261 = vmatmul.bf16.vlgmr.msra.gmra.mxu0 %v1252_v46  ;;  %1274 = vmatmul.bf16.vlgmr.msra.gmra.mxu1 %v1252_v46 }
 0x473   :  { %1287 = vmatmul.bf16.vlgmr.msra.gmra.mxu2 %v1252_v46  ;;  %1300 = vmatmul.bf16.vlgmr.msra.gmra.mxu3 %v1252_v46  ;;  %v3611_v46 = vld [vmem:[#allocation8 + $0x90] sm:$0xf0] }
 0x474   :  { %1712 = vmatpush.bf16.msra.mxu0 %v3658_v61  ;;  %1741 = vmatpush.bf16.msra.mxu1 %v3662_v17  ;;  %v3614_v59 = vor.u32 %v3915_v27, %v3611_v46  ;;  %v3618_v61 = vor.u32 %v3918_v54, %v3617_v49  ;;  %v3582_v27 = vor.u32 %v3907_v63, %v3579_v16  ;;  %v3959_v46 = vld [vmem:[#allocation9 + $0xe4] sm:$0xf] }
 0x475   :  { %1770 = vmatpush.bf16.msra.mxu2 %v3666_v18  ;;  %1799 = vmatpush.bf16.msra.mxu3 %v3670_v41  ;;  %v3913_v41 = vld [vmem:[#allocation8 + $0x6c] sm:$0xf0] }
 0x478   :  { %1713 = vmatpush.bf16.msra.mxu0 %v3642_v4  ;;  %1742 = vmatpush.bf16.msra.mxu1 %v3646_v47  ;;  %v3914_v4 = vld [vmem:[#allocation8 + $0x74] sm:$0xf0]  ;;  %v3603_v47 = vld [vmem:[#allocation8 + $0x78] sm:$0xf0] }
 0x479   :  { %1771 = vmatpush.bf16.msra.mxu2 %v3650_v13  ;;  %1800 = vmatpush.bf16.msra.mxu3 %v3654_v21  ;;  %v3577_v13 = vld [vmem:[#allocation8 + $0x40] sm:$0xf] }
 0x47c   :  { %1714 = vmatpush.bf16.msra.mxu0 %v3626_v26  ;;  %1743 = vmatpush.bf16.msra.mxu1 %v3630_v1  ;;  %v3578_v26 = vor.u32 %v3909_v6, %v3577_v13 }
 0x47d   :  { %1772 = vmatpush.bf16.msra.mxu2 %v3634_v57  ;;  %1801 = vmatpush.bf16.msra.mxu3 %v3638_v19 }
 0x480   :  { %1715 = vmatpush.bf16.msra.mxu0 %v3610_v43  ;;  %1744 = vmatpush.bf16.msra.mxu1 %v3614_v59  ;;  %v3569_v59 = vld [vmem:[#allocation8 + $0x28] sm:$0xf] }
 0x481   :  { %1773 = vmatpush.bf16.msra.mxu2 %v3618_v61 }
 0x4ef   :  { %v1262_v29 = vpop.f32.mrf.mxu0  ;;  %v1275_v37 = vpop.f32.mrf.mxu1 }
 0x4f0   :  { %v1305_v42 = vadd.f32 %v1262_v29, %v184_v14  ;;  %v1306_v53 = vadd.f32 %v1275_v37, %v5781_v50  ;;  %v3622_v14 = vor.u32 %v3916_v62, %v3619_v3  ;;  %v3911_v50 = vld [vmem:[#allocation8 + $0x64] sm:$0xf]  ;;  %v3906_v3 = vld [vmem:[#allocation8 + $0x34] sm:$0xf0] }
 0x4f2   :  { %v3537_v38 = vmul.f32 -1.442695, %v1305_v42  ;;  %v3538_v52 = vmul.f32 -1.442695, %v1306_v53  ;;  %1802 = vmatpush.bf16.msra.mxu3 %v3622_v14  ;;  %v3594_v42 = vor.u32 %v3913_v41, %v3593_v25  ;;  %v3595_v53 = vld [vmem:[#allocation8 + $0x70] sm:$0xf0] }
 0x4f3   :  { %v3598_v58 = vor.u32 %v3911_v50, %v3595_v53  ;;  %v3899_v41 = vld [vmem:[#allocation8 + $0x4] sm:$0xf] }
 0x4f4   :  { %4081 = vpow2.f32 %v3537_v38  ;;  %1716 = vmatpush.bf16.msra.mxu0 %v3594_v42  ;;  %v3602_v38 = vor.u32 %v3914_v4, %v3601_v0  ;;  %v3902_v0 = vld [vmem:[#allocation8 + $0x14] sm:$0xf0] }
 0x4f5   :  { %4083 = vpow2.f32 %v3538_v52  ;;  %v3912_v52 = vld [vmem:[#allocation8 + $0x6c] sm:$0xf]  ;;  %1745 = vmatpush.bf16.msra.mxu1 %v3598_v58  ;;  %v3553_v58 = vld [vmem:[#allocation8 + $0x8] sm:$0xf] }
 0x4f6   :  { %v1288_v9 = vpop.f32.mrf.mxu2  ;;  %v1301_v51 = vpop.f32.mrf.mxu3  ;;  %v3606_v60 = vor.u32 %v3912_v52, %v3603_v47  ;;  %1774 = vmatpush.bf16.msra.mxu2 %v3602_v38  ;;  %v3900_v52 = vld [vmem:[#allocation8 + $0xc] sm:$0xf]  ;;  %v3555_v47 = vld [vmem:[#allocation8 + $0x18] sm:$0xf0] }
 0x4f7   :  { %v1308_v32 = vadd.f32 %v1301_v51, %v5782_v31  ;;  %v1264_v36 = vpop.f32.mrf.mxu0  ;;  %v1277_v40 = vpop.f32.mrf.mxu1  ;;  %v1307_v34 = vadd.f32 %v1288_v9, %v5783_v7  ;;  %v3561_v9 = vld [vmem:[#allocation8 + $0x20] sm:$0xf]  ;;  %v3586_v31 = vor.u32 %v3910_v2, %v3585_v44  ;;  %v3558_v16 = vor.u32 %v3900_v52, %v3555_v47  ;;  %v5788_v52 = vld [vmem:[#allocation40_spill] sm:$0xff] }
 0x4f8   :  { %1803 = vmatpush.bf16.msra.mxu3 %v3606_v60  ;;  %1717 = vmatpush.bf16.msra.mxu0 %v3578_v26  ;;  %v3903_v36 = vld [vmem:[#allocation8 + $0x24] sm:$0xf]  ;;  %v3563_v40 = vld [vmem:[#allocation8 + $0x30] sm:$0xf0]  ;;  %v3562_v54 = vor.u32 %v3905_v15, %v3561_v9  ;;  %v3554_v60 = vor.u32 %v3902_v0, %v3553_v58  ;;  %v273_v47 = vadd.f32 %v5788_v52, %v4758_v45 }
 0x4f9   :  { %v3539_v5 = vmul.f32 -1.442695, %v1308_v32  ;;  %v3590_v32 = vor.u32 %v3908_v39, %v3587_v33  ;;  %1746 = vmatpush.bf16.msra.mxu1 %v3582_v27  ;;  %v3566_v62 = vor.u32 %v3903_v36, %v3563_v40  ;;  %v1498_v27 = vld [vmem:[#allocation11] sm:$0xff]  ;;  %v1508_v36 = vpack.c.bf16 %v5032_v48, %v4984_v28  ;;  %v3771_v58 = vld [vmem:[#allocation9 + $0xd0] sm:$0xf0] }
 0x4fa   :  { %v4082_v10 = vpop.eup %4081  ;;  %1775 = vmatpush.bf16.msra.mxu2 %v3586_v31  ;;  %v3785_v40 = vld [vmem:[#allocation9 + $0xe0] sm:$0xf]  ;;  %v3707_v52 = vld [vmem:[#allocation9 + $0x50] sm:$0xf0] }
 0x4fb   :  { %v4084_v17 = vpop.eup %4083  ;;  %v5040_v18 = vadd.f32 1.0, %v4082_v10  ;;  %4085 = vpow2.f32 %v3539_v5  ;;  %v3904_v5 = vld [vmem:[#allocation8 + $0x2c] sm:$0xf]  ;;  %v3571_v10 = vld [vmem:[#allocation8 + $0x38] sm:$0xf0] }
 0x4fc   :  { %v5042_v24 = vadd.f32 1.0, %v4084_v17  ;;  %1804 = vmatpush.bf16.msra.mxu3 %v3590_v32  ;;  %1718 = vmatpush.bf16.msra.mxu0 %v3562_v54  ;;  %v3570_v17 = vor.u32 %v3906_v3, %v3569_v59  ;;  %v3574_v25 = vor.u32 %v3904_v5, %v3571_v10  ;;  %v5787_v59 = vld [vmem:[#allocation39_spill] sm:$0xff]  ;;  %v3960_v3 = vld [vmem:[#allocation9 + $0xec] sm:$0xf]  ;;  %v3795_v5 = vld [vmem:[#allocation9 + $0xf8] sm:$0xf0] }
 0x4fd   :  { %4087 = vrcp.f32 %v5040_v18  ;;  %v1322_v55 = vand.u32 2147483647, %v5040_v18  ;;  %v1324_v19 = vand.u32 2147483648, %v5040_v18  ;;  %vm1318_vm13 = vweird.f32 %v5040_v18  ;;  %1747 = vmatpush.bf16.msra.mxu1 %v3566_v62  ;;  %v3787_v62 = vld [vmem:[#allocation9 + $0xf0] sm:$0xf0] }
 0x4fe   :  { %4089 = vrcp.f32 %v5042_v24  ;;  %v1290_v29 = vpop.f32.mrf.mxu2  ;;  %v1303_v37 = vpop.f32.mrf.mxu3  ;;  %v1343_v57 = vand.u32 2147483648, %v5042_v24  ;;  %v1341_v49 = vand.u32 2147483647, %v5042_v24  ;;  %vm1337_vm12 = vweird.f32 %v5042_v24  ;;  %1776 = vmatpush.bf16.msra.mxu2 %v3570_v17  ;;  %v3793_v17 = vld [vmem:[#allocation9 + $0xe8] sm:$0xf] }
 0x4ff   :  { %vm5061_vm9 = vcmp.eq.f32.partialorder %v1322_v55, 8.507059e+37  ;;  %v3545_v29 = vld [vmem:[#allocation8] sm:$0xf]  ;;  %v3901_v37 = vld [vmem:[#allocation8 + $0xc] sm:$0xf0]  ;;  %v1325_v7 = vor.u32 1.1754944e-38, %v1324_v19  ;;  %v5105_v48 = vor.u32 %v3959_v46, %v3787_v62 }
 0x500   :  { %v3546_v53 = vor.u32 %v3901_v37, %v3545_v29  ;;  %v3547_v55 = vld [vmem:[#allocation8 + $0x10] sm:$0xf0]  ;;  %vm1342_vm0 = vcmp.eq.f32.partialorder %v1341_v49, 8.507059e+37  ;;  %1805 = vmatpush.bf16.msra.mxu3 %v3574_v25  ;;  %v5786_v49 = vld [vmem:[#allocation22_spill] sm:$0xff]  ;;  %v3945_v62 = vld [vmem:[#allocation9 + $0x6c] sm:$0xf0] }
 0x501   :  { %v4086_v8 = vpop.eup %4085  ;;  %v3550_v13 = vor.u32 %v3899_v41, %v3547_v55  ;;  %v186_v54 = vadd.f32 %v5786_v49, %v4790_v11  ;;  %v3962_v25 = vld [vmem:[#allocation9 + $0xf4] sm:$0xf0]  ;;  %v3957_v41 = vld [vmem:[#allocation9 + $0xcc] sm:$0xf0]  ;;  %v3747_v49 = vld [vmem:[#allocation9 + $0x98] sm:$0xf0] }
 0x502   :  { %v5048_v30 = vadd.f32 1.0, %v4086_v8  ;;  %v1344_v8 = vor.u32 1.1754944e-38, %v1343_v57  ;;  %1719 = vmatpush.bf16.msra.mxu0 %v3546_v53  ;;  %1777 = vmatpush.bf16.msra.mxu2 %v3554_v60  ;;  %v5110_v11 = vor.u32 %v3962_v25, %v3793_v17  ;;  %v3951_v60 = vld [vmem:[#allocation9 + $0xa4] sm:$0xf]  ;;  %v3944_v17 = vld [vmem:[#allocation9 + $0x6c] sm:$0xf] }
 0x503   :  { %v5050_v21 = vpop.eup %4087  ;;  %1748 = vmatpush.bf16.msra.mxu1 %v3550_v13  ;;  %v3953_v13 = vld [vmem:[#allocation9 + $0xac] sm:$0xf0] }
 0x504   :  { %v5052_v1 = vpop.eup %4089  ;;  %v1314_v20 = vmul.f32 %v5050_v21, %v5040_v18  ;;  %4091 = vrcp.f32 %v5048_v30  ;;  %vm1319_vm10 = vweird.f32 %v5050_v21  ;;  %1806 = vmatpush.bf16.msra.mxu3 %v3558_v16  ;;  %vm1357_vm2 = vweird.f32 %v5048_v30 }
 0x505   :  { %v1333_v51 = vmul.f32 %v5052_v1, %v5042_v24  ;;  %4093 = vtanh.f32 %v1307_v34  ;;  %vm1338_vm11 = vweird.f32 %v5052_v1  ;;  %vm1320_vm14 = vmor %vm1318_vm13, %vm1319_vm10  ;;  %v1361_v33 = vand.u32 2147483647, %v5048_v30 }
 0x506   :  { %v1315_v23 = vsub.f32 1.0, %v1314_v20  ;;  %vm1339_vm15 = vmor %vm1337_vm12, %vm1338_vm11 }
 0x507   :  { %v1334_v43 = vsub.f32 1.0, %v1333_v51  ;;  %vm1362_vm4 = vcmp.eq.f32.partialorder %v1361_v33, 8.507059e+37 }
 0x508   :  { %v1316_v61 = vmul.f32 %v5050_v21, %v1315_v23  ;;  %v1499_v23 = vld [vmem:[#allocation11 + $0x8] sm:$0xff] }
 0x509   :  { %v1335_v14 = vmul.f32 %v5052_v1, %v1334_v43  ;;  %v1506_v31 = vpack.c.bf16 %v1499_v23, %v1498_v27  ;;  %v3961_v43 = vld [vmem:[#allocation9 + $0xec] sm:$0xf0] }
 0x50a   :  { %v4092_v42 = vpop.eup %4091  ;;  %v1317_v50 = vadd.f32 %v5050_v21, %v1316_v61  ;;  %v5103_v61 = vor.u32 %v3961_v43, %v3785_v40  ;;  %v3949_v23 = vld [vmem:[#allocation9 + $0x8c] sm:$0xf0] }
 0x50b   :  { %v4094_v4 = vpop.eup %4093  ;;  %v1336_v34 = vadd.f32 %v5052_v1, %v1335_v14  ;;  %v1353_v38 = vmul.f32 %v4092_v42, %v5048_v30  ;;  %vm1358_vm1 = vweird.f32 %v4092_v42  ;;  %v5107_v14 = vor.u32 %v3960_v3, %v3795_v5  ;;  %v3943_v3 = vld [vmem:[#allocation9 + $0x64] sm:$0xf]  ;;  %v3723_v5 = vld [vmem:[#allocation9 + $0x70] sm:$0xf0] }
 0x50c   :  { %v1321_v18 = vsel %vm1320_vm14, %v5050_v21, %v1317_v50  ;;  %vm1359_vm3 = vmor %vm1357_vm2, %vm1358_vm1 }
 0x50d   :  { %v1326_v6 = vsel %vm5061_vm9, %v1325_v7, %v1321_v18  ;;  %v1340_v63 = vsel %vm1339_vm15, %v5052_v1, %v1336_v34  ;;  %v1354_v26 = vsub.f32 1.0, %v1353_v38  ;;  %v1363_v1 = vand.u32 2147483648, %v5048_v30  ;;  %v1500_v30 = vld [vmem:[#allocation11 + $0x10] sm:$0xff]  ;;  %v3777_v7 = vld [vmem:[#allocation9 + $0xc8] sm:$0xf] }
 0x50e   :  { %v1345_v44 = vsel %vm1342_vm0, %v1344_v8, %v1340_v63  ;;  %v1368_v2 = vmul.f32 %v4094_v4, %v1326_v6  ;;  %v1507_v32 = vpack.c.bf16 %v4939_v12, %v1500_v30  ;;  %v215_v12 = vadd.f32 %v5787_v59, %v4751_v35  ;;  %v3769_v35 = vld [vmem:[#allocation9 + $0xc0] sm:$0xf]  ;;  %v3956_v4 = vld [vmem:[#allocation9 + $0xcc] sm:$0xf]  ;;  %v3779_v8 = vld [vmem:[#allocation9 + $0xd8] sm:$0xf0] }
 0x50f   :  { %v1367_v24 = vmul.f32 %v1345_v44, %v5029_v56  ;;  %v1355_v20 = vmul.f32 %v4092_v42, %v1354_v26  ;;  %v1364_v51 = vor.u32 1.1754944e-38, %v1363_v1  ;;  %v5114_v55 = vor.u32 %v3957_v41, %v3769_v35  ;;  %v3958_v38 = vld [vmem:[#allocation9 + $0xd4] sm:$0xf0]  ;;  %v3753_v18 = vld [vmem:[#allocation9 + $0xa0] sm:$0xf]  ;;  %v5789_v41 = vld [vmem:[#allocation36_spill] sm:$0xff] }
 0x510   :  { %v5120_v34 = vor.u32 %v3956_v4, %v3779_v8  ;;  %v5125_v6 = vor.u32 %v3958_v38, %v3777_v7  ;;  %v5128_v16 = vor.u32 %v3953_v13, %v3753_v18  ;;  %v3755_v44 = vld [vmem:[#allocation9 + $0xb0] sm:$0xf0]  ;;  %v3947_v30 = vld [vmem:[#allocation9 + $0x84] sm:$0xf]  ;;  %v3745_v35 = vld [vmem:[#allocation9 + $0x88] sm:$0xf] }
 0x511   :  { %v5086_v21 = vadd.f32 %v1368_v2, %v1367_v24  ;;  %v1356_v39 = vadd.f32 %v4092_v42, %v1355_v20  ;;  %v3952_v2 = vld [vmem:[#allocation9 + $0xac] sm:$0xf]  ;;  %v3763_v24 = vld [vmem:[#allocation9 + $0xb8] sm:$0xf0]  ;;  %v5130_v1 = vor.u32 %v3951_v60, %v3755_v44  ;;  %v3941_v7 = vld [vmem:[#allocation9 + $0x4c] sm:$0xf0] }
 0x512   :  { %v5132_v33 = vor.u32 %v3952_v2, %v3763_v24  ;;  %v3939_v38 = vld [vmem:[#allocation9 + $0x44] sm:$0xf]  ;;  %v3940_v60 = vld [vmem:[#allocation9 + $0x4c] sm:$0xf]  ;;  %v3729_v24 = vld [vmem:[#allocation9 + $0x68] sm:$0xf] }
 0x513   :  { %4095 = vtanh.f32 %v5086_v21  ;;  %v1360_v9 = vsel %vm1359_vm3, %v4092_v42, %v1356_v39  ;;  %v3955_v42 = vld [vmem:[#allocation9 + $0xc4] sm:$0xf] }
 0x514   :  { %v1365_v57 = vsel %vm1362_vm4, %v1364_v51, %v1360_v9  ;;  %v5117_v0 = vor.u32 %v3955_v42, %v3771_v58  ;;  %v3761_v9 = vld [vmem:[#allocation9 + $0xa8] sm:$0xf]  ;;  %v3954_v51 = vld [vmem:[#allocation9 + $0xb4] sm:$0xf0]  ;;  %v244_v42 = vadd.f32 %v5789_v41, %v4742_v22  ;;  %v5172_v22 = vor.u32 %v3939_v38, %v3707_v52 }
 0x519   :  { %v4096_v56 = vpop.eup %4095 }
 0x51a   :  { %v5092_v19 = vmul.f32 %v4096_v56, %v1365_v57  ;;  %v5136_v56 = vor.u32 %v3954_v51, %v3761_v9  ;;  %v3689_v51 = vld [vmem:[#allocation9 + $0x20] sm:$0xf] }
 0x51c   :  { %v1377_v15 = vpack.c.bf16 %v5092_v19, %v5092_v19 }
 0x51e   :  { %1386 = vmatmul.bf16.vlgmr.msrb.gmra.mxu0 %v1377_v15  ;;  %1399 = vmatmul.bf16.vlgmr.msrb.gmra.mxu1 %v1377_v15 }
 0x51f   :  { %1412 = vmatmul.bf16.vlgmr.msrb.gmra.mxu2 %v1377_v15  ;;  %1425 = vmatmul.bf16.vlgmr.msrb.gmra.mxu3 %v1377_v15  ;;  %v3737_v15 = vld [vmem:[#allocation9 + $0x80] sm:$0xf] }
 0x520   :  { %2056 = vmatpush.bf16.msrb.mxu0 %v5103_v61  ;;  %2069 = vmatpush.bf16.msrb.mxu1 %v5105_v48 }
 0x521   :  { %2095 = vmatpush.bf16.msrb.mxu3 %v5107_v14  ;;  %2082 = vmatpush.bf16.msrb.mxu2 %v5110_v11 }
 0x524   :  { %2057 = vmatpush.bf16.msrb.mxu0 %v5114_v55  ;;  %2070 = vmatpush.bf16.msrb.mxu1 %v5117_v0 }
 0x525   :  { %2096 = vmatpush.bf16.msrb.mxu3 %v5120_v34  ;;  %2083 = vmatpush.bf16.msrb.mxu2 %v5125_v6 }
 0x528   :  { %2058 = vmatpush.bf16.msrb.mxu0 %v5128_v16  ;;  %2071 = vmatpush.bf16.msrb.mxu1 %v5130_v1 }
 0x529   :  { %2097 = vmatpush.bf16.msrb.mxu3 %v5132_v33  ;;  %2084 = vmatpush.bf16.msrb.mxu2 %v5136_v56 }
 0x52e   :  { %1720 = vmatmul.bf16.vlgmr.msra.gmra.mxu0 %v1506_v31  ;;  %1749 = vmatmul.bf16.vlgmr.msra.gmra.mxu1 %v1506_v31 }
 0x52f   :  { %1778 = vmatmul.bf16.vlgmr.msra.gmra.mxu2 %v1506_v31  ;;  %1807 = vmatmul.bf16.vlgmr.msra.gmra.mxu3 %v1506_v31  ;;  %v5140_v31 = vor.u32 %v3949_v23, %v3737_v15  ;;  %v3942_v15 = vld [vmem:[#allocation9 + $0x54] sm:$0xf0] }
 0x531   :  { %2059 = vmatpush.bf16.msrb.mxu0 %v5140_v31 }
 0x53e   :  { %1725 = vmatmul.bf16.gmra.mxu0 %v1507_v32  ;;  %1754 = vmatmul.bf16.gmra.mxu1 %v1507_v32 }
 0x53f   :  { %1783 = vmatmul.bf16.gmra.mxu2 %v1507_v32  ;;  %1812 = vmatmul.bf16.gmra.mxu3 %v1507_v32  ;;  %v3739_v32 = vld [vmem:[#allocation9 + $0x90] sm:$0xf0] }
 0x540   :  { %v5144_v46 = vor.u32 %v3947_v30, %v3739_v32  ;;  %v3937_v32 = vld [vmem:[#allocation9 + $0x2c] sm:$0xf0] }
 0x542   :  { %2072 = vmatpush.bf16.msrb.mxu1 %v5144_v46 }
 0x54e   :  { %1730 = vmatmul.bf16.gmra.mxu0 %v1508_v36  ;;  %1759 = vmatmul.bf16.gmra.mxu1 %v1508_v36 }
 0x54f   :  { %1788 = vmatmul.bf16.gmra.mxu2 %v1508_v36  ;;  %1817 = vmatmul.bf16.gmra.mxu3 %v1508_v36  ;;  %v3948_v36 = vld [vmem:[#allocation9 + $0x8c] sm:$0xf] }
 0x59b   :  { %v1387_v10 = vpop.f32.mrf.mxu0  ;;  %v1400_v28 = vpop.f32.mrf.mxu1 }
 0x59c   :  { %v1430_v29 = vadd.f32 %v1387_v10, %v186_v54  ;;  %v1431_v37 = vadd.f32 %v1400_v28, %v215_v12  ;;  %v3721_v54 = vld [vmem:[#allocation9 + $0x60] sm:$0xf]  ;;  %v5150_v12 = vor.u32 %v3948_v36, %v3747_v49  ;;  %v3935_v36 = vld [vmem:[#allocation9 + $0x24] sm:$0xf] }
 0x59d   :  { %v5156_v25 = vor.u32 %v3945_v62, %v3721_v54  ;;  %v3691_v62 = vld [vmem:[#allocation9 + $0x30] sm:$0xf0] }
 0x59e   :  { %v3540_v50 = vmul.f32 -1.442695, %v1430_v29  ;;  %v3541_v53 = vmul.f32 -1.442695, %v1431_v37  ;;  %2098 = vmatpush.bf16.msrb.mxu3 %v5150_v12  ;;  %v5158_v29 = vor.u32 %v3943_v3, %v3723_v5  ;;  %v3731_v37 = vld [vmem:[#allocation9 + $0x78] sm:$0xf0]  ;;  %v5206_v41 = vor.u32 %v3935_v36, %v3691_v62 }
 0x59f   :  { %2060 = vmatpush.bf16.msrb.mxu0 %v5156_v25  ;;  %v5164_v4 = vor.u32 %v3944_v17, %v3731_v37  ;;  %v3697_v17 = vld [vmem:[#allocation9 + $0x28] sm:$0xf] }
 0x5a0   :  { %4097 = vpow2.f32 %v3540_v50  ;;  %v3950_v50 = vld [vmem:[#allocation9 + $0x94] sm:$0xf0]  ;;  %2073 = vmatpush.bf16.msrb.mxu1 %v5158_v29 }
 0x5a1   :  { %4099 = vpow2.f32 %v3541_v53  ;;  %v3705_v53 = vld [vmem:[#allocation9 + $0x40] sm:$0xf]  ;;  %v5166_v8 = vor.u32 %v3950_v50, %v3745_v35  ;;  %v5204_v35 = vor.u32 %v3937_v32, %v3689_v51  ;;  %v3932_v51 = vld [vmem:[#allocation9 + $0xc] sm:$0xf] }
 0x5a2   :  { %v1413_v63 = vpop.f32.mrf.mxu2  ;;  %v1426_v26 = vpop.f32.mrf.mxu3  ;;  %v5170_v13 = vor.u32 %v3941_v7, %v3705_v53  ;;  %2099 = vmatpush.bf16.msrb.mxu3 %v5164_v4  ;;  %v3673_v50 = vld [vmem:[#allocation9] sm:$0xf]  ;;  %v3933_v53 = vld [vmem:[#allocation9 + $0xc] sm:$0xf0] }
 0x5a3   :  { %v1433_v20 = vadd.f32 %v1426_v26, %v273_v47  ;;  %v1389_v39 = vpop.f32.mrf.mxu0  ;;  %v1402_v45 = vpop.f32.mrf.mxu1  ;;  %v1432_v47 = vadd.f32 %v1413_v63, %v244_v42  ;;  %v3715_v26 = vld [vmem:[#allocation9 + $0x58] sm:$0xf0]  ;;  %2085 = vmatpush.bf16.msrb.mxu2 %v5166_v8 }
 0x5a4   :  { %v5178_v2 = vor.u32 %v3940_v60, %v3715_v26  ;;  %2061 = vmatpush.bf16.msrb.mxu0 %v5170_v13  ;;  %2074 = vmatpush.bf16.msrb.mxu1 %v5172_v22  ;;  %v3675_v60 = vld [vmem:[#allocation9 + $0x10] sm:$0xf0]  ;;  %v3938_v26 = vld [vmem:[#allocation9 + $0x34] sm:$0xf0] }
 0x5a5   :  { %v3542_v57 = vmul.f32 -1.442695, %v1433_v20  ;;  %v3946_v20 = vld [vmem:[#allocation9 + $0x74] sm:$0xf0] }
 0x5a6   :  { %v4098_v27 = vpop.eup %4097  ;;  %v5191_v30 = vor.u32 %v3946_v20, %v3729_v24  ;;  %2100 = vmatpush.bf16.msrb.mxu3 %v5178_v2 }
 0x5a7   :  { %v4100_v40 = vpop.eup %4099  ;;  %v5142_v43 = vadd.f32 1.0, %v4098_v27  ;;  %4101 = vpow2.f32 %v3542_v57  ;;  %v3713_v57 = vld [vmem:[#allocation9 + $0x48] sm:$0xf] }
 0x5a8   :  { %v5147_v59 = vadd.f32 1.0, %v4100_v40  ;;  %2086 = vmatpush.bf16.msrb.mxu2 %v5191_v30  ;;  %v5201_v5 = vor.u32 %v3942_v15, %v3713_v57  ;;  %2062 = vmatpush.bf16.msrb.mxu0 %v5204_v35  ;;  %v3683_v57 = vld [vmem:[#allocation9 + $0x18] sm:$0xf0] }
 0x5a9   :  { %4103 = vrcp.f32 %v5142_v43  ;;  %v1447_v45 = vand.u32 2147483647, %v5142_v43  ;;  %v1449_v27 = vand.u32 2147483648, %v5142_v43  ;;  %vm1443_vm5 = vweird.f32 %v5142_v43  ;;  %2075 = vmatpush.bf16.msrb.mxu1 %v5206_v41 }
 0x5aa   :  { %4105 = vrcp.f32 %v5147_v59  ;;  %v1415_v10 = vpop.f32.mrf.mxu2  ;;  %v1428_v28 = vpop.f32.mrf.mxu3  ;;  %v1468_v49 = vand.u32 2147483648, %v5147_v59  ;;  %v1466_v54 = vand.u32 2147483647, %v5147_v59  ;;  %vm1462_vm8 = vweird.f32 %v5147_v59 }
 0x5ab   :  { %v3936_v10 = vld [vmem:[#allocation9 + $0x2c] sm:$0xf]  ;;  %v3699_v28 = vld [vmem:[#allocation9 + $0x38] sm:$0xf0]  ;;  %vm5212_vm9 = vcmp.eq.f32.partialorder %v1447_v45, 8.507059e+37  ;;  %v5228_v45 = vor.u32 %v3933_v53, %v3673_v50  ;;  %v5246_v62 = vor.u32 %v3932_v51, %v3683_v57 }
 0x5ac   :  { %v5208_v42 = vor.u32 %v3936_v10, %v3699_v28  ;;  %v1469_v24 = vor.u32 1.1754944e-38, %v1468_v49  ;;  %vm1467_vm12 = vcmp.eq.f32.partialorder %v1466_v54, 8.507059e+37  ;;  %2087 = vmatpush.bf16.msrb.mxu2 %v5201_v5  ;;  %v3934_v49 = vld [vmem:[#allocation9 + $0x14] sm:$0xf0] }
 0x5ad   :  { %v4102_v58 = vpop.eup %4101  ;;  %2063 = vmatpush.bf16.msrb.mxu0 %v5228_v45 }
 0x5ae   :  { %v5168_v18 = vadd.f32 1.0, %v4102_v58  ;;  %v3931_v58 = vld [vmem:[#allocation9 + $0x4] sm:$0xf]  ;;  %2101 = vmatpush.bf16.msrb.mxu3 %v5208_v42 }
 0x5af   :  { %v5174_v44 = vpop.eup %4103 }
 0x5b0   :  { %v5180_v39 = vpop.eup %4105  ;;  %v1439_v63 = vmul.f32 %v5174_v44, %v5142_v43  ;;  %4107 = vrcp.f32 %v5168_v18  ;;  %vm1444_vm7 = vweird.f32 %v5174_v44  ;;  %vm1482_vm14 = vweird.f32 %v5168_v18 }
 0x5b1   :  { %v1458_v9 = vmul.f32 %v5180_v39, %v5147_v59  ;;  %4109 = vtanh.f32 %v1432_v47  ;;  %vm1463_vm6 = vweird.f32 %v5180_v39  ;;  %v1450_v47 = vor.u32 1.1754944e-38, %v1449_v27  ;;  %vm5220_vm10 = vmor %vm1443_vm5, %vm1444_vm7  ;;  %2181 = vmatpush.bf16.msra.mxu0 %v5103_v61 }
 0x5b2   :  { %v1440_v23 = vsub.f32 1.0, %v1439_v63  ;;  %vm1464_vm11 = vmor %vm1462_vm8, %vm1463_vm6  ;;  %v5241_v27 = vor.u32 %v3938_v26, %v3697_v17  ;;  %2102 = vmatpush.bf16.msrb.mxu3 %v5246_v62  ;;  %v1808_v26 = vpop.f32.mrf.mxu3 }
 0x5b3   :  { %v1459_v40 = vsub.f32 1.0, %v1458_v9 }
 0x5b4   :  { %v1441_v3 = vmul.f32 %v5174_v44, %v1440_v23  ;;  %v5239_v23 = vor.u32 %v3931_v58, %v3675_v60  ;;  %2088 = vmatpush.bf16.msrb.mxu2 %v5241_v27  ;;  %v1779_v60 = vpop.f32.mrf.mxu2 }
 0x5b5   :  { %v1460_v37 = vmul.f32 %v5180_v39, %v1459_v40  ;;  %v3681_v40 = vld [vmem:[#allocation9 + $0x8] sm:$0xf]  ;;  %2182 = vmatpush.bf16.msra.mxu0 %v5114_v55 }
 0x5b6   :  { %v4108_v7 = vpop.eup %4107  ;;  %v1442_v38 = vadd.f32 %v5174_v44, %v1441_v3  ;;  %2076 = vmatpush.bf16.msrb.mxu1 %v5239_v23  ;;  %v5252_v28 = vor.u32 %v3934_v49, %v3681_v40  ;;  %2220 = vmatpush.bf16.msra.mxu3 %v5107_v14 }
 0x5b7   :  { %v1461_v63 = vadd.f32 %v5180_v39, %v1460_v37  ;;  %v1478_v9 = vmul.f32 %v4108_v7, %v5168_v18  ;;  %v4110_v15 = vpop.eup %4109  ;;  %vm1483_vm13 = vweird.f32 %v4108_v7  ;;  %v1486_v37 = vand.u32 2147483647, %v5168_v18 }
 0x5b8   :  { %v1446_v43 = vsel %vm5220_vm10, %v5174_v44, %v1442_v38  ;;  %2089 = vmatpush.bf16.msrb.mxu2 %v5252_v28  ;;  %vm1484_vm15 = vmor %vm1482_vm14, %vm1483_vm13 }
 0x5b9   :  { %v1451_v32 = vsel %vm5212_vm9, %v1450_v47, %v1446_v43  ;;  %v1465_v36 = vsel %vm1464_vm11, %v5180_v39, %v1461_v63  ;;  %v1479_v59 = vsub.f32 1.0, %v1478_v9  ;;  %vm1487_vm0 = vcmp.eq.f32.partialorder %v1486_v37, 8.507059e+37  ;;  %2183 = vmatpush.bf16.msra.mxu0 %v5128_v16  ;;  %v1750_v47 = vpop.f32.mrf.mxu1 }
 0x5ba   :  { %v1470_v44 = vsel %vm1467_vm12, %v1469_v24, %v1465_v36  ;;  %v1493_v54 = vmul.f32 %v4110_v15, %v1451_v32  ;;  %2194 = vmatpush.bf16.msra.mxu1 %v5105_v48  ;;  %2221 = vmatpush.bf16.msra.mxu3 %v5120_v34  ;;  %v5334_v9 = vpop.f32.mrf.mxu3 }
 0x5bb   :  { %v1492_v3 = vmul.f32 %v1470_v44, %v5086_v21  ;;  %v1480_v10 = vmul.f32 %v4108_v7, %v1479_v59  ;;  %v1488_v21 = vand.u32 2147483648, %v5168_v18 }
 0x5bc   :  { %2207 = vmatpush.bf16.msra.mxu2 %v5110_v11  ;;  %v5332_v63 = vpop.f32.mrf.mxu2 }
 0x5bd   :  { %v1494_v17 = vadd.f32 %v1493_v54, %v1492_v3  ;;  %v1481_v39 = vadd.f32 %v4108_v7, %v1480_v10  ;;  %v1489_v53 = vor.u32 1.1754944e-38, %v1488_v21  ;;  %2184 = vmatpush.bf16.msra.mxu0 %v5140_v31  ;;  %5795 = vst [vmem:[#allocation25_spill] sm:$0xff] %v5332_v63 }
 0x5be   :  { %2195 = vmatpush.bf16.msra.mxu1 %v5117_v0  ;;  %2222 = vmatpush.bf16.msra.mxu3 %v5132_v33 }
 0x5bf   :  { %4111 = vtanh.f32 %v1494_v17  ;;  %v1485_v50 = vsel %vm1484_vm15, %v4108_v7, %v1481_v39  ;;  %v1721_v7 = vpop.f32.mrf.mxu0 }
 0x5c0   :  { %v1490_v38 = vsel %vm1487_vm0, %v1489_v53, %v1485_v50  ;;  %2208 = vmatpush.bf16.msra.mxu2 %v5125_v6 }
 0x5c1   :  { %2185 = vmatpush.bf16.msra.mxu0 %v5156_v25  ;;  %v5330_v20 = vpop.f32.mrf.mxu1 }
 0x5c2   :  { %2196 = vmatpush.bf16.msra.mxu1 %v5130_v1  ;;  %2223 = vmatpush.bf16.msra.mxu3 %v5150_v12  ;;  %v5342_v43 = vpop.f32.mrf.mxu3 }
 0x5c3   :  { %5799 = vst [vmem:[#allocation29_spill] sm:$0xff] %v5342_v43 }
 0x5c4   :  { %2209 = vmatpush.bf16.msra.mxu2 %v5136_v56  ;;  %v5340_v15 = vpop.f32.mrf.mxu2 }
 0x5c5   :  { %v4112_v58 = vpop.eup %4111  ;;  %2186 = vmatpush.bf16.msra.mxu0 %v5170_v13  ;;  %5798 = vst [vmem:[#allocation28_spill] sm:$0xff] %v5340_v15 }
 0x5c6   :  { %v1496_v18 = vmul.f32 %v4112_v58, %v1490_v38  ;;  %2197 = vmatpush.bf16.msra.mxu1 %v5144_v46  ;;  %2224 = vmatpush.bf16.msra.mxu3 %v5164_v4  ;;  %v1542_v38 = vld [vmem:[%s5735_s6] sm:$0xf] }
 0x5c7   :  { %v5328_v24 = vpop.f32.mrf.mxu0 }
 0x5c8   :  { %v1509_v52 = vpack.c.bf16 %v1496_v18, %v5092_v19  ;;  %2210 = vmatpush.bf16.msra.mxu2 %v5166_v8  ;;  %v5794_v19 = vmov 0  }
 0x5c9   :  { %2187 = vmatpush.bf16.msra.mxu0 %v5204_v35  ;;  %v5338_v57 = vpop.f32.mrf.mxu1 }
 0x5ca   :  { %1735 = vmatmul.bf16.gmra.mxu0 %v1509_v52  ;;  %1764 = vmatmul.bf16.gmra.mxu1 %v1509_v52  ;;  %5797 = vst [vmem:[#allocation23_spill] sm:$0xff] %v5338_v57  ;;  %v5350_v40 = vpop.f32.mrf.mxu3 }
 0x5cb   :  { %1793 = vmatmul.bf16.gmra.mxu2 %v1509_v52  ;;  %1822 = vmatmul.bf16.gmra.mxu3 %v1509_v52  ;;  %5803 = vst [vmem:[#allocation32_spill] sm:$0xff] %v5350_v40 }
 0x5cc   :  { %2198 = vmatpush.bf16.msra.mxu1 %v5158_v29  ;;  %2211 = vmatpush.bf16.msra.mxu2 %v5191_v30  ;;  %v5348_v59 = vpop.f32.mrf.mxu2 }
 0x5cd   :  { %2225 = vmatpush.bf16.msra.mxu3 %v5178_v2  ;;  %2188 = vmatpush.bf16.msra.mxu0 %v5228_v45  ;;  %5802 = vst [vmem:[#allocation31_spill] sm:$0xff] %v5348_v59 }
 0x5cf   :  { %v5336_v51 = vpop.f32.mrf.mxu0 }
 0x5d0   :  { %2199 = vmatpush.bf16.msra.mxu1 %v5172_v22  ;;  %2212 = vmatpush.bf16.msra.mxu2 %v5201_v5  ;;  %5796 = vst [vmem:[#allocation26_spill] sm:$0xff] %v5336_v51 }
 0x5d1   :  { %2226 = vmatpush.bf16.msra.mxu3 %v5208_v42  ;;  %v5346_v36 = vpop.f32.mrf.mxu1 }
 0x5d2   :  { %5801 = vst [vmem:[#allocation19_spill] sm:$0xff] %v5346_v36  ;;  %v5358_v3 = vpop.f32.mrf.mxu3 }
 0x5d3   :  { %5807 = vst [vmem:[#allocation35_spill] sm:$0xff] %v5358_v3  ;;  %v5393_v3 = vperm.slane %v1542_v38, 3 }
 0x5d4   :  { %2200 = vmatpush.bf16.msra.mxu1 %v5206_v41  ;;  %2213 = vmatpush.bf16.msra.mxu2 %v5241_v27  ;;  %v5356_v54 = vpop.f32.mrf.mxu2 }
 0x5d5   :  { %2227 = vmatpush.bf16.msra.mxu3 %v5246_v62  ;;  %5806 = vst [vmem:[#allocation34_spill] sm:$0xff] %v5356_v54 }
 0x5d7   :  { %v5344_v32 = vpop.f32.mrf.mxu0 }
 0x5d8   :  { %2201 = vmatpush.bf16.msra.mxu1 %v5239_v23  ;;  %2214 = vmatpush.bf16.msra.mxu2 %v5252_v28  ;;  %5800 = vst [vmem:[#allocation24_spill] sm:$0xff] %v5344_v32 }
 0x5d9   :  { %v5354_v44 = vpop.f32.mrf.mxu1 }
 0x5da   :  { %2064 = vmatmul.bf16.vlgmr.msrb.gmra.mxu0 %v5794_v19  ;;  %2077 = vmatmul.bf16.vlgmr.msrb.gmra.mxu1 %v5794_v19  ;;  %5805 = vst [vmem:[#allocation21_spill] sm:$0xff] %v5354_v44  ;;  %v5366_v21 = vpop.f32.mrf.mxu3  ;;  %v1809_v44 = vadd.f32 %v1808_v26, %v5393_v3 }
 0x5db   :  { %2090 = vmatmul.bf16.vlgmr.msrb.gmra.mxu2 %v5794_v19  ;;  %2103 = vmatmul.bf16.vlgmr.msrb.gmra.mxu3 %v5794_v19  ;;  %5811 = vst [vmem:[#allocation38_spill] sm:$0xff] %v5366_v21  ;;  %v5383_v19 = vperm.slane %v1542_v38, 0 }
 0x5dc   :  { %2306 = vmatpush.bf16.msrb.mxu0 %v5103_v61  ;;  %2319 = vmatpush.bf16.msrb.mxu1 %v5105_v48  ;;  %v5364_v39 = vpop.f32.mrf.mxu2 }
 0x5dd   :  { %2332 = vmatpush.bf16.msrb.mxu2 %v5110_v11  ;;  %2345 = vmatpush.bf16.msrb.mxu3 %v5107_v14  ;;  %5810 = vst [vmem:[#allocation37_spill] sm:$0xff] %v5364_v39  ;;  %v5385_v39 = vperm.slane %v1542_v38, 1 }
 0x5df   :  { %v5352_v49 = vpop.f32.mrf.mxu0 }
 0x5e0   :  { %2307 = vmatpush.bf16.msrb.mxu0 %v5114_v55  ;;  %2320 = vmatpush.bf16.msrb.mxu1 %v5117_v0  ;;  %5804 = vst [vmem:[#allocation27_spill] sm:$0xff] %v5352_v49 }
 0x5e1   :  { %2333 = vmatpush.bf16.msrb.mxu2 %v5125_v6  ;;  %2346 = vmatpush.bf16.msrb.mxu3 %v5120_v34  ;;  %v5362_v17 = vpop.f32.mrf.mxu1 }
 0x5e2   :  { %5809 = vst [vmem:[#allocation20_spill] sm:$0xff] %v5362_v17 }
 0x5e4   :  { %2308 = vmatpush.bf16.msrb.mxu0 %v5128_v16  ;;  %2321 = vmatpush.bf16.msrb.mxu1 %v5130_v1 }
 0x5e5   :  { %2334 = vmatpush.bf16.msrb.mxu2 %v5136_v56  ;;  %2347 = vmatpush.bf16.msrb.mxu3 %v5132_v33 }
 0x5e7   :  { %v5360_v10 = vpop.f32.mrf.mxu0 }
 0x5e8   :  { %2309 = vmatpush.bf16.msrb.mxu0 %v5140_v31  ;;  %2322 = vmatpush.bf16.msrb.mxu1 %v5144_v46  ;;  %5808 = vst [vmem:[#allocation30_spill] sm:$0xff] %v5360_v10 }
 0x5e9   :  { %2335 = vmatpush.bf16.msrb.mxu2 %v5166_v8  ;;  %2348 = vmatpush.bf16.msrb.mxu3 %v5150_v12 }
 0x5ec   :  { %2310 = vmatpush.bf16.msrb.mxu0 %v5156_v25  ;;  %2323 = vmatpush.bf16.msrb.mxu1 %v5158_v29 }
 0x5ed   :  { %2336 = vmatpush.bf16.msrb.mxu2 %v5191_v30  ;;  %2349 = vmatpush.bf16.msrb.mxu3 %v5164_v4 }
 0x5f0   :  { %2311 = vmatpush.bf16.msrb.mxu0 %v5170_v13  ;;  %2324 = vmatpush.bf16.msrb.mxu1 %v5172_v22 }
 0x5f1   :  { %2337 = vmatpush.bf16.msrb.mxu2 %v5201_v5  ;;  %2350 = vmatpush.bf16.msrb.mxu3 %v5178_v2 }
 0x5f4   :  { %2312 = vmatpush.bf16.msrb.mxu0 %v5204_v35  ;;  %2325 = vmatpush.bf16.msrb.mxu1 %v5206_v41 }
 0x5f5   :  { %2338 = vmatpush.bf16.msrb.mxu2 %v5241_v27  ;;  %2351 = vmatpush.bf16.msrb.mxu3 %v5208_v42 }
 0x5f8   :  { %2313 = vmatpush.bf16.msrb.mxu0 %v5228_v45  ;;  %2326 = vmatpush.bf16.msrb.mxu1 %v5239_v23 }
 0x5f9   :  { %2339 = vmatpush.bf16.msrb.mxu2 %v5252_v28  ;;  %2352 = vmatpush.bf16.msrb.mxu3 %v5246_v62 }
 0x647   :  { %v5368_v37 = vpop.f32.mrf.mxu0  ;;  %v5370_v50 = vpop.f32.mrf.mxu1 }
 0x648   :  { %5812 = vst [vmem:[#allocation33_spill] sm:$0xff] %v5368_v37  ;;  %v1722_v37 = vadd.f32 %v1721_v7, %v5383_v19 }
 0x649   :  { %5813 = vst [vmem:[#allocation22_spill] sm:$0xff] %v5370_v50  ;;  %v1751_v50 = vadd.f32 %v1750_v47, %v5385_v39 }
 0x64e   :  { %v5372_v53 = vpop.f32.mrf.mxu2  ;;  %v5374_v58 = vpop.f32.mrf.mxu3 }
 0x64f   :  { %5814 = vst [vmem:[#allocation39_spill] sm:$0xff] %v5372_v53  ;;  %v5379_v18 = vpop.f32.mrf.mxu0  ;;  %v5381_v52 = vpop.f32.mrf.mxu1 }
 0x650   :  { %5815 = vst [vmem:[#allocation40_spill] sm:$0xff] %v5374_v58 }
 0x651   :  { %5816 = vst [vmem:[#allocation36_spill] sm:$0xff] %v5379_v18 }
 0x652   :  { %5817 = vst [vmem:[#allocation41_spill] sm:$0xff] %v5381_v52 }
 0x656   :  { %v5389_v21 = vpop.f32.mrf.mxu2  ;;  %v5391_v53 = vpop.f32.mrf.mxu3 }
 0x657   :  { %5818 = vst [vmem:[#allocation42_spill] sm:$0xff] %v5389_v21  ;;  %v2065_v58 = vpop.f32.mrf.mxu0  ;;  %v2078_v17 = vpop.f32.mrf.mxu1 }
 0x658   :  { %5819 = vst [vmem:[#allocation43_spill] sm:$0xff] %v5391_v53  ;;  %v2108_v10 = vadd.f32 %v2065_v58, %v1722_v37  ;;  %v2109_v54 = vadd.f32 %v2078_v17, %v1751_v50  ;;  %v5396_v17 = vperm.slane %v1542_v38, 2 }
 0x65a   :  { %v3799_v18 = vmul.f32 -1.442695, %v2108_v10  ;;  %v3800_v52 = vmul.f32 -1.442695, %v2109_v54  ;;  %5820 = vst [vmem:[#allocation44_spill] sm:$0xff] %v5396_v17  ;;  %v1780_v26 = vadd.f32 %v1779_v60, %v5396_v17 }
 0x65c   :  { %4113 = vpow2.f32 %v3799_v18 }
 0x65d   :  { %4115 = vpow2.f32 %v3800_v52 }
 0x65e   :  { %v2091_v49 = vpop.f32.mrf.mxu2  ;;  %v2104_v7 = vpop.f32.mrf.mxu3 }
 0x65f   :  { %v2111_v59 = vadd.f32 %v2104_v7, %v1809_v44  ;;  %v2067_v47 = vpop.f32.mrf.mxu0  ;;  %v2080_v40 = vpop.f32.mrf.mxu1  ;;  %v2110_v44 = vadd.f32 %v2091_v49, %v1780_v26 }
 0x661   :  { %v3801_v21 = vmul.f32 -1.442695, %v2111_v59 }
 0x662   :  { %v4114_v36 = vpop.eup %4113 }
 0x663   :  { %v4116_v53 = vpop.eup %4115  ;;  %v2115_v32 = vadd.f32 1.0, %v4114_v36  ;;  %4117 = vpow2.f32 %v3801_v21 }
 0x664   :  { %v2134_v37 = vadd.f32 1.0, %v4116_v53 }
 0x665   :  { %4119 = vrcp.f32 %v2115_v32  ;;  %v2127_v21 = vand.u32 2147483648, %v2115_v32  ;;  %v2125_v47 = vand.u32 2147483647, %v2115_v32  ;;  %vm2121_vm3 = vweird.f32 %v2115_v32 }
 0x666   :  { %4121 = vrcp.f32 %v2134_v37  ;;  %v2106_v54 = vpop.f32.mrf.mxu3  ;;  %v2093_v10 = vpop.f32.mrf.mxu2  ;;  %v2146_v53 = vand.u32 2147483648, %v2134_v37  ;;  %vm2140_vm4 = vweird.f32 %v2134_v37 }
 0x667   :  { %v2144_v10 = vand.u32 2147483647, %v2134_v37  ;;  %v2128_v49 = vor.u32 1.1754944e-38, %v2127_v21  ;;  %vm2126_vm6 = vcmp.eq.f32.partialorder %v2125_v47, 8.507059e+37 }
 0x668   :  { %v2147_v43 = vor.u32 1.1754944e-38, %v2146_v53 }
 0x669   :  { %v4118_v50 = vpop.eup %4117  ;;  %vm2145_vm8 = vcmp.eq.f32.partialorder %v2144_v10, 8.507059e+37 }
 0x66a   :  { %v2154_v58 = vadd.f32 1.0, %v4118_v50 }
 0x66b   :  { %v4120_v18 = vpop.eup %4119 }
 0x66c   :  { %v4122_v52 = vpop.eup %4121  ;;  %v2117_v40 = vmul.f32 %v4120_v18, %v2115_v32  ;;  %4123 = vrcp.f32 %v2154_v58  ;;  %vm2122_vm1 = vweird.f32 %v4120_v18  ;;  %vm2160_vm10 = vweird.f32 %v2154_v58 }
 0x66d   :  { %v2136_v59 = vmul.f32 %v4122_v52, %v2134_v37  ;;  %4125 = vtanh.f32 %v2110_v44  ;;  %vm2141_vm2 = vweird.f32 %v4122_v52  ;;  %vm2123_vm5 = vmor %vm2121_vm3, %vm2122_vm1  ;;  %v2166_v37 = vand.u32 2147483648, %v2154_v58 }
 0x66e   :  { %v2118_v7 = vsub.f32 1.0, %v2117_v40  ;;  %vm2142_vm7 = vmor %vm2140_vm4, %vm2141_vm2 }
 0x66f   :  { %v2137_v36 = vsub.f32 1.0, %v2136_v59  ;;  %v2167_v53 = vor.u32 1.1754944e-38, %v2166_v37 }
 0x670   :  { %v2119_v38 = vmul.f32 %v4120_v18, %v2118_v7 }
 0x671   :  { %v2138_v54 = vmul.f32 %v4122_v52, %v2137_v36 }
 0x672   :  { %v4124_v15 = vpop.eup %4123  ;;  %v2120_v60 = vadd.f32 %v4120_v18, %v2119_v38 }
 0x673   :  { %v2139_v50 = vadd.f32 %v4122_v52, %v2138_v54  ;;  %v2156_v26 = vmul.f32 %v4124_v15, %v2154_v58  ;;  %v4126_v44 = vpop.eup %4125  ;;  %vm2161_vm9 = vweird.f32 %v4124_v15 }
 0x674   :  { %v2124_v40 = vsel %vm2123_vm5, %v4120_v18, %v2120_v60  ;;  %v2164_v18 = vand.u32 2147483647, %v2154_v58  ;;  %vm2162_vm11 = vmor %vm2160_vm10, %vm2161_vm9 }
 0x675   :  { %v2129_v59 = vsel %vm2126_vm6, %v2128_v49, %v2124_v40  ;;  %v2143_v7 = vsel %vm2142_vm7, %v4122_v52, %v2139_v50  ;;  %v2157_v57 = vsub.f32 1.0, %v2156_v26  ;;  %v1811_v49 = vadd.f32 %v5334_v9, %v5393_v3 }
 0x676   :  { %v2148_v36 = vsel %vm2145_vm8, %v2147_v43, %v2143_v7  ;;  %v2171_v51 = vmul.f32 %v4126_v44, %v2129_v59  ;;  %vm2165_vm12 = vcmp.eq.f32.partialorder %v2164_v18, 8.507059e+37 }
 0x677   :  { %v2170_v63 = vmul.f32 0.0, %v2148_v36  ;;  %v2158_v17 = vmul.f32 %v4124_v15, %v2157_v57 }
 0x679   :  { %v5399_v38 = vadd.f32 %v2171_v51, %v2170_v63  ;;  %v2159_v32 = vadd.f32 %v4124_v15, %v2158_v17  ;;  %v1724_v63 = vadd.f32 %v5328_v24, %v5383_v19  ;;  %v1753_v51 = vadd.f32 %v5330_v20, %v5385_v39 }
 0x67b   :  { %4127 = vtanh.f32 %v5399_v38  ;;  %v2163_v21 = vsel %vm2162_vm11, %v4124_v15, %v2159_v32 }
 0x67c   :  { %v2168_v47 = vsel %vm2165_vm12, %v2167_v53, %v2163_v21  ;;  %v5821_v53 = vld [vmem:[#allocation44_spill] sm:$0xff] }
 0x681   :  { %v4128_v52 = vpop.eup %4127 }
 0x682   :  { %v2174_v54 = vmul.f32 %v4128_v52, %v2168_v47  ;;  %v5822_v52 = vld [vmem:[#allocation25_spill] sm:$0xff] }
 0x683   :  { %v1782_v9 = vadd.f32 %v5822_v52, %v5821_v53 }
 0x684   :  { %2175 = vst [vmem:[#allocation11] sm:$0xff] %v2174_v54  ;;  %v2180_v43 = vpack.c.bf16 %v2174_v54, %v2174_v54 }
 0x686   :  { %2189 = vmatmul.bf16.vlgmr.msra.gmra.mxu0 %v2180_v43  ;;  %2202 = vmatmul.bf16.vlgmr.msra.gmra.mxu1 %v2180_v43 }
 0x687   :  { %2215 = vmatmul.bf16.vlgmr.msra.gmra.mxu2 %v2180_v43  ;;  %2228 = vmatmul.bf16.vlgmr.msra.gmra.mxu3 %v2180_v43 }
 0x688   :  { %2431 = vmatpush.bf16.msra.mxu0 %v5103_v61  ;;  %2444 = vmatpush.bf16.msra.mxu1 %v5105_v48 }
 0x689   :  { %2457 = vmatpush.bf16.msra.mxu2 %v5110_v11  ;;  %2470 = vmatpush.bf16.msra.mxu3 %v5107_v14 }
 0x68c   :  { %2432 = vmatpush.bf16.msra.mxu0 %v5114_v55  ;;  %2445 = vmatpush.bf16.msra.mxu1 %v5117_v0 }
 0x68d   :  { %2458 = vmatpush.bf16.msra.mxu2 %v5125_v6  ;;  %2471 = vmatpush.bf16.msra.mxu3 %v5120_v34 }
 0x690   :  { %2433 = vmatpush.bf16.msra.mxu0 %v5128_v16  ;;  %2446 = vmatpush.bf16.msra.mxu1 %v5130_v1 }
 0x691   :  { %2459 = vmatpush.bf16.msra.mxu2 %v5136_v56  ;;  %2472 = vmatpush.bf16.msra.mxu3 %v5132_v33 }
 0x694   :  { %2434 = vmatpush.bf16.msra.mxu0 %v5140_v31  ;;  %2447 = vmatpush.bf16.msra.mxu1 %v5144_v46 }
 0x695   :  { %2460 = vmatpush.bf16.msra.mxu2 %v5166_v8  ;;  %2473 = vmatpush.bf16.msra.mxu3 %v5150_v12 }
 0x698   :  { %2435 = vmatpush.bf16.msra.mxu0 %v5156_v25  ;;  %2448 = vmatpush.bf16.msra.mxu1 %v5158_v29 }
 0x699   :  { %2461 = vmatpush.bf16.msra.mxu2 %v5191_v30  ;;  %2474 = vmatpush.bf16.msra.mxu3 %v5164_v4 }
 0x69c   :  { %2436 = vmatpush.bf16.msra.mxu0 %v5170_v13  ;;  %2449 = vmatpush.bf16.msra.mxu1 %v5172_v22 }
 0x69d   :  { %2462 = vmatpush.bf16.msra.mxu2 %v5201_v5  ;;  %2475 = vmatpush.bf16.msra.mxu3 %v5178_v2 }
 0x6a0   :  { %2437 = vmatpush.bf16.msra.mxu0 %v5204_v35  ;;  %2450 = vmatpush.bf16.msra.mxu1 %v5206_v41 }
 0x6a1   :  { %2463 = vmatpush.bf16.msra.mxu2 %v5241_v27  ;;  %2476 = vmatpush.bf16.msra.mxu3 %v5208_v42 }
 0x6a4   :  { %2438 = vmatpush.bf16.msra.mxu0 %v5228_v45  ;;  %2451 = vmatpush.bf16.msra.mxu1 %v5239_v23 }
 0x6a5   :  { %2464 = vmatpush.bf16.msra.mxu2 %v5252_v28  ;;  %2477 = vmatpush.bf16.msra.mxu3 %v5246_v62 }
 0x703   :  { %v2190_v57 = vpop.f32.mrf.mxu0  ;;  %v2203_v15 = vpop.f32.mrf.mxu1 }
 0x704   :  { %v2233_v17 = vadd.f32 %v2190_v57, %v1724_v63  ;;  %v2234_v58 = vadd.f32 %v2203_v15, %v1753_v51 }
 0x706   :  { %v3802_v10 = vmul.f32 -1.442695, %v2233_v17  ;;  %v3803_v60 = vmul.f32 -1.442695, %v2234_v58 }
 0x708   :  { %4129 = vpow2.f32 %v3802_v10 }
 0x709   :  { %4131 = vpow2.f32 %v3803_v60 }
 0x70a   :  { %v2216_v50 = vpop.f32.mrf.mxu2  ;;  %v2229_v26 = vpop.f32.mrf.mxu3 }
 0x70b   :  { %v2236_v40 = vadd.f32 %v2229_v26, %v1811_v49  ;;  %v2192_v44 = vpop.f32.mrf.mxu0  ;;  %v2205_v59 = vpop.f32.mrf.mxu1  ;;  %v2235_v43 = vadd.f32 %v2216_v50, %v1782_v9 }
 0x70d   :  { %v3804_v24 = vmul.f32 -1.442695, %v2236_v40 }
 0x70e   :  { %v4130_v7 = vpop.eup %4129 }
 0x70f   :  { %v4132_v36 = vpop.eup %4131  ;;  %v2240_v20 = vadd.f32 1.0, %v4130_v7  ;;  %4133 = vpow2.f32 %v3804_v24 }
 0x710   :  { %v2259_v32 = vadd.f32 1.0, %v4132_v36 }
 0x711   :  { %4135 = vrcp.f32 %v2240_v20  ;;  %v2252_v58 = vand.u32 2147483648, %v2240_v20  ;;  %v2250_v49 = vand.u32 2147483647, %v2240_v20  ;;  %vm2246_vm15 = vweird.f32 %v2240_v20 }
 0x712   :  { %4137 = vrcp.f32 %v2259_v32  ;;  %v2218_v37 = vpop.f32.mrf.mxu2  ;;  %v2231_v18 = vpop.f32.mrf.mxu3  ;;  %v2271_v10 = vand.u32 2147483648, %v2259_v32  ;;  %v2269_v40 = vand.u32 2147483647, %v2259_v32  ;;  %vm2265_vm0 = vweird.f32 %v2259_v32 }
 0x713   :  { %v2253_v50 = vor.u32 1.1754944e-38, %v2252_v58  ;;  %vm2251_vm3 = vcmp.eq.f32.partialorder %v2250_v49, 8.507059e+37 }
 0x714   :  { %v2272_v36 = vor.u32 1.1754944e-38, %v2271_v10  ;;  %vm2270_vm4 = vcmp.eq.f32.partialorder %v2269_v40, 8.507059e+37  ;;  %v5824_v40 = vld [vmem:[#allocation23_spill] sm:$0xff] }
 0x715   :  { %v4134_v21 = vpop.eup %4133 }
 0x716   :  { %v2279_v47 = vadd.f32 1.0, %v4134_v21 }
 0x717   :  { %v4136_v54 = vpop.eup %4135 }
 0x718   :  { %v4138_v63 = vpop.eup %4137  ;;  %v2242_v51 = vmul.f32 %v4136_v54, %v2240_v20  ;;  %4139 = vrcp.f32 %v2279_v47  ;;  %vm2247_vm13 = vweird.f32 %v4136_v54  ;;  %vm2285_vm6 = vweird.f32 %v2279_v47 }
 0x719   :  { %v2261_v57 = vmul.f32 %v4138_v63, %v2259_v32  ;;  %4141 = vtanh.f32 %v2235_v43  ;;  %vm2266_vm14 = vweird.f32 %v4138_v63  ;;  %vm2248_vm1 = vmor %vm2246_vm15, %vm2247_vm13 }
 0x71a   :  { %v2243_v15 = vsub.f32 1.0, %v2242_v51  ;;  %vm2267_vm2 = vmor %vm2265_vm0, %vm2266_vm14 }
 0x71b   :  { %v2262_v17 = vsub.f32 1.0, %v2261_v57 }
 0x71c   :  { %v2244_v60 = vmul.f32 %v4136_v54, %v2243_v15 }
 0x71d   :  { %v2263_v26 = vmul.f32 %v4138_v63, %v2262_v17  ;;  %v2291_v17 = vand.u32 2147483648, %v2279_v47 }
 0x71e   :  { %v4140_v44 = vpop.eup %4139  ;;  %v2245_v59 = vadd.f32 %v4136_v54, %v2244_v60 }
 0x71f   :  { %v2264_v24 = vadd.f32 %v4138_v63, %v2263_v26  ;;  %v2281_v7 = vmul.f32 %v4140_v44, %v2279_v47  ;;  %v4142_v18 = vpop.eup %4141  ;;  %vm2286_vm5 = vweird.f32 %v4140_v44  ;;  %v2292_v10 = vor.u32 1.1754944e-38, %v2291_v17 }
 0x720   :  { %v2249_v37 = vsel %vm2248_vm1, %v4136_v54, %v2245_v59  ;;  %v2289_v54 = vand.u32 2147483647, %v2279_v47  ;;  %vm2287_vm7 = vmor %vm2285_vm6, %vm2286_vm5 }
 0x721   :  { %v2254_v21 = vsel %vm2251_vm3, %v2253_v50, %v2249_v37  ;;  %v2268_v52 = vsel %vm2267_vm2, %v4138_v63, %v2264_v24  ;;  %v2282_v9 = vsub.f32 1.0, %v2281_v7 }
 0x722   :  { %v2273_v43 = vsel %vm2270_vm4, %v2272_v36, %v2268_v52  ;;  %v2296_v51 = vmul.f32 %v4142_v18, %v2254_v21  ;;  %vm2290_vm8 = vcmp.eq.f32.partialorder %v2289_v54, 8.507059e+37  ;;  %v5825_v18 = vld [vmem:[#allocation29_spill] sm:$0xff] }
 0x723   :  { %v2295_v57 = vmul.f32 %v2273_v43, %v5399_v38  ;;  %v2283_v15 = vmul.f32 %v4140_v44, %v2282_v9  ;;  %v5823_v38 = vld [vmem:[#allocation26_spill] sm:$0xff]  ;;  %v1814_v21 = vadd.f32 %v5825_v18, %v5393_v3 }
 0x724   :  { %v1727_v47 = vadd.f32 %v5823_v38, %v5383_v19 }
 0x725   :  { %v5443_v20 = vadd.f32 %v2296_v51, %v2295_v57  ;;  %v2284_v32 = vadd.f32 %v4140_v44, %v2283_v15 }
 0x727   :  { %4143 = vtanh.f32 %v5443_v20  ;;  %v2288_v58 = vsel %vm2287_vm7, %v4140_v44, %v2284_v32  ;;  %v1756_v44 = vadd.f32 %v5824_v40, %v5385_v39 }
 0x728   :  { %v2293_v60 = vsel %vm2290_vm8, %v2292_v10, %v2288_v58 }
 0x72d   :  { %v4144_v63 = vpop.eup %4143 }
 0x72e   :  { %v2299_v49 = vmul.f32 %v4144_v63, %v2293_v60 }
 0x730   :  { %2300 = vst [vmem:[#allocation11 + $0x8] sm:$0xff] %v2299_v49  ;;  %v2305_v26 = vpack.c.bf16 %v2299_v49, %v2299_v49  ;;  %v5826_v49 = vld [vmem:[#allocation28_spill] sm:$0xff] }
 0x732   :  { %2314 = vmatmul.bf16.vlgmr.msrb.gmra.mxu0 %v2305_v26  ;;  %2327 = vmatmul.bf16.vlgmr.msrb.gmra.mxu1 %v2305_v26 }
 0x733   :  { %2340 = vmatmul.bf16.vlgmr.msrb.gmra.mxu2 %v2305_v26  ;;  %2353 = vmatmul.bf16.vlgmr.msrb.gmra.mxu3 %v2305_v26  ;;  %v1785_v26 = vadd.f32 %v5826_v49, %v5821_v53 }
 0x734   :  { %2556 = vmatpush.bf16.msrb.mxu0 %v5103_v61  ;;  %2569 = vmatpush.bf16.msrb.mxu1 %v5105_v48 }
 0x735   :  { %2582 = vmatpush.bf16.msrb.mxu2 %v5110_v11  ;;  %2595 = vmatpush.bf16.msrb.mxu3 %v5107_v14 }
 0x738   :  { %2557 = vmatpush.bf16.msrb.mxu0 %v5114_v55  ;;  %2570 = vmatpush.bf16.msrb.mxu1 %v5117_v0 }
 0x739   :  { %2583 = vmatpush.bf16.msrb.mxu2 %v5125_v6  ;;  %2596 = vmatpush.bf16.msrb.mxu3 %v5120_v34 }
 0x73c   :  { %2558 = vmatpush.bf16.msrb.mxu0 %v5128_v16  ;;  %2571 = vmatpush.bf16.msrb.mxu1 %v5130_v1 }
 0x73d   :  { %2584 = vmatpush.bf16.msrb.mxu2 %v5136_v56  ;;  %2597 = vmatpush.bf16.msrb.mxu3 %v5132_v33 }
 0x740   :  { %2559 = vmatpush.bf16.msrb.mxu0 %v5140_v31  ;;  %2572 = vmatpush.bf16.msrb.mxu1 %v5144_v46 }
 0x741   :  { %2585 = vmatpush.bf16.msrb.mxu2 %v5166_v8  ;;  %2598 = vmatpush.bf16.msrb.mxu3 %v5150_v12 }
 0x744   :  { %2560 = vmatpush.bf16.msrb.mxu0 %v5156_v25  ;;  %2573 = vmatpush.bf16.msrb.mxu1 %v5158_v29 }
 0x745   :  { %2586 = vmatpush.bf16.msrb.mxu2 %v5191_v30  ;;  %2599 = vmatpush.bf16.msrb.mxu3 %v5164_v4 }
 0x748   :  { %2561 = vmatpush.bf16.msrb.mxu0 %v5170_v13  ;;  %2574 = vmatpush.bf16.msrb.mxu1 %v5172_v22 }
 0x749   :  { %2587 = vmatpush.bf16.msrb.mxu2 %v5201_v5  ;;  %2600 = vmatpush.bf16.msrb.mxu3 %v5178_v2 }
 0x74c   :  { %2562 = vmatpush.bf16.msrb.mxu0 %v5204_v35  ;;  %2575 = vmatpush.bf16.msrb.mxu1 %v5206_v41 }
 0x74d   :  { %2588 = vmatpush.bf16.msrb.mxu2 %v5241_v27  ;;  %2601 = vmatpush.bf16.msrb.mxu3 %v5208_v42 }
 0x750   :  { %2563 = vmatpush.bf16.msrb.mxu0 %v5228_v45  ;;  %2576 = vmatpush.bf16.msrb.mxu1 %v5239_v23 }
 0x751   :  { %2589 = vmatpush.bf16.msrb.mxu2 %v5252_v28  ;;  %2602 = vmatpush.bf16.msrb.mxu3 %v5246_v62 }
 0x7af   :  { %v2315_v59 = vpop.f32.mrf.mxu0  ;;  %v2328_v50 = vpop.f32.mrf.mxu1 }
 0x7b0   :  { %v2358_v24 = vadd.f32 %v2315_v59, %v1727_v47  ;;  %v2359_v7 = vadd.f32 %v2328_v50, %v1756_v44 }
 0x7b2   :  { %v3805_v36 = vmul.f32 -1.442695, %v2358_v24  ;;  %v3806_v37 = vmul.f32 -1.442695, %v2359_v7 }
 0x7b4   :  { %4145 = vpow2.f32 %v3805_v36 }
 0x7b5   :  { %4147 = vpow2.f32 %v3806_v37 }
 0x7b6   :  { %v2341_v52 = vpop.f32.mrf.mxu2  ;;  %v2354_v9 = vpop.f32.mrf.mxu3 }
 0x7b7   :  { %v2361_v43 = vadd.f32 %v2354_v9, %v1814_v21  ;;  %v2317_v51 = vpop.f32.mrf.mxu0  ;;  %v2330_v57 = vpop.f32.mrf.mxu1  ;;  %v2360_v40 = vadd.f32 %v2341_v52, %v1785_v26 }
 0x7b9   :  { %v3807_v15 = vmul.f32 -1.442695, %v2361_v43 }
 0x7ba   :  { %v4146_v32 = vpop.eup %4145 }
 0x7bb   :  { %v4148_v17 = vpop.eup %4147  ;;  %v2365_v54 = vadd.f32 1.0, %v4146_v32  ;;  %4149 = vpow2.f32 %v3807_v15 }
 0x7bc   :  { %v2384_v58 = vadd.f32 1.0, %v4148_v17 }
 0x7bd   :  { %4151 = vrcp.f32 %v2365_v54  ;;  %v2377_v36 = vand.u32 2147483648, %v2365_v54  ;;  %v2375_v21 = vand.u32 2147483647, %v2365_v54  ;;  %vm2371_vm11 = vweird.f32 %v2365_v54 }
 0x7be   :  { %4153 = vrcp.f32 %v2384_v58  ;;  %v2343_v10 = vpop.f32.mrf.mxu2  ;;  %v2356_v63 = vpop.f32.mrf.mxu3  ;;  %v2396_v37 = vand.u32 2147483648, %v2384_v58  ;;  %v2394_v43 = vand.u32 2147483647, %v2384_v58  ;;  %vm2390_vm12 = vweird.f32 %v2384_v58 }
 0x7bf   :  { %v2378_v52 = vor.u32 1.1754944e-38, %v2377_v36  ;;  %vm2376_vm15 = vcmp.eq.f32.partialorder %v2375_v21, 8.507059e+37 }
 0x7c0   :  { %v2397_v17 = vor.u32 1.1754944e-38, %v2396_v37  ;;  %vm2395_vm0 = vcmp.eq.f32.partialorder %v2394_v43, 8.507059e+37  ;;  %v5828_v43 = vld [vmem:[#allocation19_spill] sm:$0xff] }
 0x7c1   :  { %v4150_v60 = vpop.eup %4149 }
 0x7c2   :  { %v2404_v38 = vadd.f32 1.0, %v4150_v60 }
 0x7c3   :  { %v4152_v47 = vpop.eup %4151 }
 0x7c4   :  { %v4154_v44 = vpop.eup %4153  ;;  %v2367_v59 = vmul.f32 %v4152_v47, %v2365_v54  ;;  %4155 = vrcp.f32 %v2404_v38  ;;  %vm2372_vm9 = vweird.f32 %v4152_v47  ;;  %vm2410_vm2 = vweird.f32 %v2404_v38 }
 0x7c5   :  { %v2386_v50 = vmul.f32 %v4154_v44, %v2384_v58  ;;  %4157 = vtanh.f32 %v2360_v40  ;;  %vm2391_vm10 = vweird.f32 %v4154_v44  ;;  %vm2373_vm13 = vmor %vm2371_vm11, %vm2372_vm9 }
 0x7c6   :  { %v2368_v24 = vsub.f32 1.0, %v2367_v59  ;;  %vm2392_vm14 = vmor %vm2390_vm12, %vm2391_vm10 }
 0x7c7   :  { %v2387_v7 = vsub.f32 1.0, %v2386_v50 }
 0x7c8   :  { %v2369_v18 = vmul.f32 %v4152_v47, %v2368_v24 }
 0x7c9   :  { %v2388_v9 = vmul.f32 %v4154_v44, %v2387_v7  ;;  %v2416_v7 = vand.u32 2147483648, %v2404_v38 }
 0x7ca   :  { %v4156_v51 = vpop.eup %4155  ;;  %v2370_v57 = vadd.f32 %v4152_v47, %v2369_v18 }
 0x7cb   :  { %v2389_v15 = vadd.f32 %v4154_v44, %v2388_v9  ;;  %v2406_v32 = vmul.f32 %v4156_v51, %v2404_v38  ;;  %v4158_v63 = vpop.eup %4157  ;;  %vm2411_vm1 = vweird.f32 %v4156_v51  ;;  %v2417_v37 = vor.u32 1.1754944e-38, %v2416_v7 }
 0x7cc   :  { %v2374_v10 = vsel %vm2373_vm13, %v4152_v47, %v2370_v57  ;;  %v2414_v47 = vand.u32 2147483647, %v2404_v38  ;;  %vm2412_vm3 = vmor %vm2410_vm2, %vm2411_vm1  ;;  %v5827_v38 = vld [vmem:[#allocation24_spill] sm:$0xff] }
 0x7cd   :  { %v2379_v60 = vsel %vm2376_vm15, %v2378_v52, %v2374_v10  ;;  %v2393_v49 = vsel %vm2392_vm14, %v4154_v44, %v2389_v15  ;;  %v2407_v26 = vsub.f32 1.0, %v2406_v32  ;;  %v1729_v9 = vadd.f32 %v5827_v38, %v5383_v19 }
 0x7ce   :  { %v2398_v40 = vsel %vm2395_vm0, %v2397_v17, %v2393_v49  ;;  %v2421_v59 = vmul.f32 %v4158_v63, %v2379_v60  ;;  %vm2415_vm4 = vcmp.eq.f32.partialorder %v2414_v47, 8.507059e+37  ;;  %v5829_v63 = vld [vmem:[#allocation32_spill] sm:$0xff] }
 0x7cf   :  { %v2420_v50 = vmul.f32 %v2398_v40, %v5443_v20  ;;  %v2408_v24 = vmul.f32 %v4156_v51, %v2407_v26  ;;  %v1816_v60 = vadd.f32 %v5829_v63, %v5393_v3 }
 0x7d1   :  { %v5487_v54 = vadd.f32 %v2421_v59, %v2420_v50  ;;  %v2409_v58 = vadd.f32 %v4156_v51, %v2408_v24 }
 0x7d3   :  { %4159 = vtanh.f32 %v5487_v54  ;;  %v2413_v36 = vsel %vm2412_vm3, %v4156_v51, %v2409_v58  ;;  %v1758_v51 = vadd.f32 %v5828_v43, %v5385_v39 }
 0x7d4   :  { %v2418_v18 = vsel %vm2415_vm4, %v2417_v37, %v2413_v36 }
 0x7d9   :  { %v4160_v44 = vpop.eup %4159 }
 0x7da   :  { %v5490_v21 = vmul.f32 %v4160_v44, %v2418_v18 }
 0x7dc   :  { %2425 = vst [vmem:[#allocation11 + $0x10] sm:$0xff] %v5490_v21  ;;  %v2430_v20 = vpack.c.bf16 %v5490_v21, %v5490_v21 }
 0x7de   :  { %2439 = vmatmul.bf16.vlgmr.msra.gmra.mxu0 %v2430_v20  ;;  %2452 = vmatmul.bf16.vlgmr.msra.gmra.mxu1 %v2430_v20 }
 0x7df   :  { %2465 = vmatmul.bf16.vlgmr.msra.gmra.mxu2 %v2430_v20  ;;  %2478 = vmatmul.bf16.vlgmr.msra.gmra.mxu3 %v2430_v20  ;;  %v5830_v20 = vld [vmem:[#allocation31_spill] sm:$0xff] }
 0x7e0   :  { %2681 = vmatpush.bf16.msra.mxu0 %v5103_v61  ;;  %2694 = vmatpush.bf16.msra.mxu1 %v5105_v48  ;;  %v1787_v38 = vadd.f32 %v5830_v20, %v5821_v53 }
 0x7e1   :  { %2707 = vmatpush.bf16.msra.mxu2 %v5110_v11  ;;  %2720 = vmatpush.bf16.msra.mxu3 %v5107_v14 }
 0x7e4   :  { %2682 = vmatpush.bf16.msra.mxu0 %v5114_v55  ;;  %2695 = vmatpush.bf16.msra.mxu1 %v5117_v0 }
 0x7e5   :  { %2708 = vmatpush.bf16.msra.mxu2 %v5125_v6  ;;  %2721 = vmatpush.bf16.msra.mxu3 %v5120_v34 }
 0x7e8   :  { %2683 = vmatpush.bf16.msra.mxu0 %v5128_v16  ;;  %2696 = vmatpush.bf16.msra.mxu1 %v5130_v1 }
 0x7e9   :  { %2709 = vmatpush.bf16.msra.mxu2 %v5136_v56  ;;  %2722 = vmatpush.bf16.msra.mxu3 %v5132_v33 }
 0x7ec   :  { %2684 = vmatpush.bf16.msra.mxu0 %v5140_v31  ;;  %2697 = vmatpush.bf16.msra.mxu1 %v5144_v46 }
 0x7ed   :  { %2710 = vmatpush.bf16.msra.mxu2 %v5166_v8  ;;  %2723 = vmatpush.bf16.msra.mxu3 %v5150_v12 }
 0x7f0   :  { %2685 = vmatpush.bf16.msra.mxu0 %v5156_v25  ;;  %2698 = vmatpush.bf16.msra.mxu1 %v5158_v29 }
 0x7f1   :  { %2711 = vmatpush.bf16.msra.mxu2 %v5191_v30  ;;  %2724 = vmatpush.bf16.msra.mxu3 %v5164_v4 }
 0x7f4   :  { %2686 = vmatpush.bf16.msra.mxu0 %v5170_v13  ;;  %2699 = vmatpush.bf16.msra.mxu1 %v5172_v22 }
 0x7f5   :  { %2712 = vmatpush.bf16.msra.mxu2 %v5201_v5  ;;  %2725 = vmatpush.bf16.msra.mxu3 %v5178_v2 }
 0x7f8   :  { %2687 = vmatpush.bf16.msra.mxu0 %v5204_v35  ;;  %2700 = vmatpush.bf16.msra.mxu1 %v5206_v41 }
 0x7f9   :  { %2713 = vmatpush.bf16.msra.mxu2 %v5241_v27  ;;  %2726 = vmatpush.bf16.msra.mxu3 %v5208_v42 }
 0x7fc   :  { %2688 = vmatpush.bf16.msra.mxu0 %v5228_v45  ;;  %2701 = vmatpush.bf16.msra.mxu1 %v5239_v23 }
 0x7fd   :  { %2714 = vmatpush.bf16.msra.mxu2 %v5252_v28  ;;  %2727 = vmatpush.bf16.msra.mxu3 %v5246_v62 }
 0x85b   :  { %v2440_v57 = vpop.f32.mrf.mxu0  ;;  %v2453_v52 = vpop.f32.mrf.mxu1 }
 0x85c   :  { %v2483_v15 = vadd.f32 %v2440_v57, %v1729_v9  ;;  %v2484_v32 = vadd.f32 %v2453_v52, %v1758_v51 }
 0x85e   :  { %v3808_v17 = vmul.f32 -1.442695, %v2483_v15  ;;  %v3809_v10 = vmul.f32 -1.442695, %v2484_v32 }
 0x860   :  { %4161 = vpow2.f32 %v3808_v17 }
 0x861   :  { %4163 = vpow2.f32 %v3809_v10 }
 0x862   :  { %v2466_v49 = vpop.f32.mrf.mxu2  ;;  %v2479_v26 = vpop.f32.mrf.mxu3 }
 0x863   :  { %v2486_v40 = vadd.f32 %v2479_v26, %v1816_v60  ;;  %v2442_v59 = vpop.f32.mrf.mxu0  ;;  %v2455_v50 = vpop.f32.mrf.mxu1  ;;  %v2485_v51 = vadd.f32 %v2466_v49, %v1787_v38 }
 0x865   :  { %v3810_v24 = vmul.f32 -1.442695, %v2486_v40 }
 0x866   :  { %v4162_v58 = vpop.eup %4161 }
 0x867   :  { %v4164_v7 = vpop.eup %4163  ;;  %v2490_v47 = vadd.f32 1.0, %v4162_v58  ;;  %4165 = vpow2.f32 %v3810_v24 }
 0x868   :  { %v2509_v36 = vadd.f32 1.0, %v4164_v7 }
 0x869   :  { %4167 = vrcp.f32 %v2490_v47  ;;  %v2502_v10 = vand.u32 2147483648, %v2490_v47  ;;  %v2500_v26 = vand.u32 2147483647, %v2490_v47  ;;  %vm2496_vm7 = vweird.f32 %v2490_v47 }
 0x86a   :  { %4169 = vrcp.f32 %v2509_v36  ;;  %v2468_v37 = vpop.f32.mrf.mxu2  ;;  %v2481_v44 = vpop.f32.mrf.mxu3  ;;  %v2521_v63 = vand.u32 2147483648, %v2509_v36  ;;  %v2519_v59 = vand.u32 2147483647, %v2509_v36  ;;  %vm2515_vm8 = vweird.f32 %v2509_v36 }
 0x86b   :  { %v2503_v49 = vor.u32 1.1754944e-38, %v2502_v10  ;;  %vm2501_vm11 = vcmp.eq.f32.partialorder %v2500_v26, 8.507059e+37 }
 0x86c   :  { %v2522_v37 = vor.u32 1.1754944e-38, %v2521_v63  ;;  %vm2520_vm12 = vcmp.eq.f32.partialorder %v2519_v59, 8.507059e+37 }
 0x86d   :  { %v4166_v18 = vpop.eup %4165 }
 0x86e   :  { %v2529_v9 = vadd.f32 1.0, %v4166_v18 }
 0x86f   :  { %v4168_v43 = vpop.eup %4167 }
 0x870   :  { %v4170_v57 = vpop.eup %4169  ;;  %v2492_v52 = vmul.f32 %v4168_v43, %v2490_v47  ;;  %4171 = vrcp.f32 %v2529_v9  ;;  %vm2497_vm5 = vweird.f32 %v4168_v43  ;;  %v2541_v10 = vand.u32 2147483648, %v2529_v9 }
 0x871   :  { %v2511_v15 = vmul.f32 %v4170_v57, %v2509_v36  ;;  %4173 = vtanh.f32 %v2485_v51  ;;  %vm2516_vm6 = vweird.f32 %v4170_v57  ;;  %vm2498_vm9 = vmor %vm2496_vm7, %vm2497_vm5  ;;  %vm2535_vm14 = vweird.f32 %v2529_v9 }
 0x872   :  { %v2493_v32 = vsub.f32 1.0, %v2492_v52  ;;  %vm2517_vm10 = vmor %vm2515_vm8, %vm2516_vm6 }
 0x873   :  { %v2512_v17 = vsub.f32 1.0, %v2511_v15 }
 0x874   :  { %v2494_v60 = vmul.f32 %v4168_v43, %v2493_v32 }
 0x875   :  { %v2513_v40 = vmul.f32 %v4170_v57, %v2512_v17 }
 0x876   :  { %v4172_v50 = vpop.eup %4171  ;;  %v2495_v24 = vadd.f32 %v4168_v43, %v2494_v60  ;;  %v2542_v60 = vor.u32 1.1754944e-38, %v2541_v10 }
 0x877   :  { %v2514_v58 = vadd.f32 %v4170_v57, %v2513_v40  ;;  %v2531_v7 = vmul.f32 %v4172_v50, %v2529_v9  ;;  %v4174_v18 = vpop.eup %4173  ;;  %vm2536_vm13 = vweird.f32 %v4172_v50 }
 0x878   :  { %v2499_v44 = vsel %vm2498_vm9, %v4168_v43, %v2495_v24  ;;  %v2539_v43 = vand.u32 2147483647, %v2529_v9  ;;  %vm2537_vm15 = vmor %vm2535_vm14, %vm2536_vm13  ;;  %v5831_v9 = vld [vmem:[#allocation27_spill] sm:$0xff] }
 0x879   :  { %v2504_v20 = vsel %vm2501_vm11, %v2503_v49, %v2499_v44  ;;  %v2518_v38 = vsel %vm2517_vm10, %v4170_v57, %v2514_v58  ;;  %v2532_v51 = vsub.f32 1.0, %v2531_v7  ;;  %v1732_v59 = vadd.f32 %v5831_v9, %v5383_v19  ;;  %v5834_v9 = vld [vmem:[#allocation34_spill] sm:$0xff] }
 0x87a   :  { %v2523_v52 = vsel %vm2520_vm12, %v2522_v37, %v2518_v38  ;;  %v2546_v15 = vmul.f32 %v4174_v18, %v2504_v20  ;;  %vm2540_vm0 = vcmp.eq.f32.partialorder %v2539_v43, 8.507059e+37  ;;  %v5833_v20 = vld [vmem:[#allocation35_spill] sm:$0xff] }
 0x87b   :  { %v2545_v32 = vmul.f32 %v2523_v52, %v5487_v54  ;;  %v2533_v17 = vmul.f32 %v4172_v50, %v2532_v51  ;;  %v1819_v38 = vadd.f32 %v5833_v20, %v5393_v3 }
 0x87d   :  { %v5536_v47 = vadd.f32 %v2546_v15, %v2545_v32  ;;  %v2534_v36 = vadd.f32 %v4172_v50, %v2533_v17 }
 0x87f   :  { %4175 = vtanh.f32 %v5536_v47  ;;  %v2538_v63 = vsel %vm2537_vm15, %v4172_v50, %v2534_v36  ;;  %v5832_v50 = vld [vmem:[#allocation21_spill] sm:$0xff] }
 0x880   :  { %v2543_v26 = vsel %vm2540_vm0, %v2542_v60, %v2538_v63  ;;  %v1761_v24 = vadd.f32 %v5832_v50, %v5385_v39 }
 0x885   :  { %v4176_v57 = vpop.eup %4175 }
 0x886   :  { %v5539_v40 = vmul.f32 %v4176_v57, %v2543_v26 }
 0x888   :  { %2550 = vst [vmem:[#allocation11 + $0x18] sm:$0xff] %v5539_v40  ;;  %v2555_v54 = vpack.c.bf16 %v5539_v40, %v5539_v40 }
 0x88a   :  { %2564 = vmatmul.bf16.vlgmr.msrb.gmra.mxu0 %v2555_v54  ;;  %2577 = vmatmul.bf16.vlgmr.msrb.gmra.mxu1 %v2555_v54 }
 0x88b   :  { %2590 = vmatmul.bf16.vlgmr.msrb.gmra.mxu2 %v2555_v54  ;;  %2603 = vmatmul.bf16.vlgmr.msrb.gmra.mxu3 %v2555_v54 }
 0x88c   :  { %2806 = vmatpush.bf16.msrb.mxu0 %v5103_v61  ;;  %2819 = vmatpush.bf16.msrb.mxu1 %v5105_v48 }
 0x88d   :  { %2832 = vmatpush.bf16.msrb.mxu2 %v5110_v11  ;;  %2845 = vmatpush.bf16.msrb.mxu3 %v5107_v14 }
 0x890   :  { %2807 = vmatpush.bf16.msrb.mxu0 %v5114_v55  ;;  %2820 = vmatpush.bf16.msrb.mxu1 %v5117_v0 }
 0x891   :  { %2833 = vmatpush.bf16.msrb.mxu2 %v5125_v6  ;;  %2846 = vmatpush.bf16.msrb.mxu3 %v5120_v34 }
 0x894   :  { %2808 = vmatpush.bf16.msrb.mxu0 %v5128_v16  ;;  %2821 = vmatpush.bf16.msrb.mxu1 %v5130_v1 }
 0x895   :  { %2834 = vmatpush.bf16.msrb.mxu2 %v5136_v56  ;;  %2847 = vmatpush.bf16.msrb.mxu3 %v5132_v33 }
 0x898   :  { %2809 = vmatpush.bf16.msrb.mxu0 %v5140_v31  ;;  %2822 = vmatpush.bf16.msrb.mxu1 %v5144_v46 }
 0x899   :  { %2835 = vmatpush.bf16.msrb.mxu2 %v5166_v8  ;;  %2848 = vmatpush.bf16.msrb.mxu3 %v5150_v12 }
 0x89c   :  { %2810 = vmatpush.bf16.msrb.mxu0 %v5156_v25  ;;  %2823 = vmatpush.bf16.msrb.mxu1 %v5158_v29 }
 0x89d   :  { %2836 = vmatpush.bf16.msrb.mxu2 %v5191_v30  ;;  %2849 = vmatpush.bf16.msrb.mxu3 %v5164_v4 }
 0x8a0   :  { %2811 = vmatpush.bf16.msrb.mxu0 %v5170_v13  ;;  %2824 = vmatpush.bf16.msrb.mxu1 %v5172_v22 }
 0x8a1   :  { %2837 = vmatpush.bf16.msrb.mxu2 %v5201_v5  ;;  %2850 = vmatpush.bf16.msrb.mxu3 %v5178_v2 }
 0x8a4   :  { %2812 = vmatpush.bf16.msrb.mxu0 %v5204_v35  ;;  %2825 = vmatpush.bf16.msrb.mxu1 %v5206_v41 }
 0x8a5   :  { %2838 = vmatpush.bf16.msrb.mxu2 %v5241_v27  ;;  %2851 = vmatpush.bf16.msrb.mxu3 %v5208_v42 }
 0x8a8   :  { %2813 = vmatpush.bf16.msrb.mxu0 %v5228_v45  ;;  %2826 = vmatpush.bf16.msrb.mxu1 %v5239_v23 }
 0x8a9   :  { %2839 = vmatpush.bf16.msrb.mxu2 %v5252_v28  ;;  %2852 = vmatpush.bf16.msrb.mxu3 %v5246_v62 }
 0x907   :  { %v2565_v49 = vpop.f32.mrf.mxu0  ;;  %v2578_v58 = vpop.f32.mrf.mxu1 }
 0x908   :  { %v2608_v7 = vadd.f32 %v2565_v49, %v1732_v59  ;;  %v2609_v37 = vadd.f32 %v2578_v58, %v1761_v24  ;;  %v1790_v59 = vadd.f32 %v5834_v9, %v5821_v53 }
 0x90a   :  { %v3811_v44 = vmul.f32 -1.442695, %v2608_v7  ;;  %v3812_v18 = vmul.f32 -1.442695, %v2609_v37 }
 0x90c   :  { %4177 = vpow2.f32 %v3811_v44 }
 0x90d   :  { %4179 = vpow2.f32 %v3812_v18 }
 0x90e   :  { %v2591_v51 = vpop.f32.mrf.mxu2  ;;  %v2604_v52 = vpop.f32.mrf.mxu3 }
 0x90f   :  { %v2611_v15 = vadd.f32 %v2604_v52, %v1819_v38  ;;  %v2567_v32 = vpop.f32.mrf.mxu0  ;;  %v2580_v17 = vpop.f32.mrf.mxu1  ;;  %v2610_v49 = vadd.f32 %v2591_v51, %v1790_v59 }
 0x911   :  { %v3813_v36 = vmul.f32 -1.442695, %v2611_v15 }
 0x912   :  { %v4178_v10 = vpop.eup %4177 }
 0x913   :  { %v4180_v43 = vpop.eup %4179  ;;  %v2615_v63 = vadd.f32 1.0, %v4178_v10  ;;  %4181 = vpow2.f32 %v3813_v36 }
 0x914   :  { %v2634_v60 = vadd.f32 1.0, %v4180_v43 }
 0x915   :  { %4183 = vrcp.f32 %v2615_v63  ;;  %v2627_v20 = vand.u32 2147483648, %v2615_v63  ;;  %v2625_v15 = vand.u32 2147483647, %v2615_v63  ;;  %vm2621_vm3 = vweird.f32 %v2615_v63 }
 0x916   :  { %4185 = vrcp.f32 %v2634_v60  ;;  %v2593_v57 = vpop.f32.mrf.mxu2  ;;  %v2606_v26 = vpop.f32.mrf.mxu3  ;;  %v2646_v38 = vand.u32 2147483648, %v2634_v60  ;;  %v2644_v17 = vand.u32 2147483647, %v2634_v60  ;;  %vm2640_vm4 = vweird.f32 %v2634_v60 }
 0x917   :  { %v2628_v51 = vor.u32 1.1754944e-38, %v2627_v20  ;;  %vm2626_vm7 = vcmp.eq.f32.partialorder %v2625_v15, 8.507059e+37 }
 0x918   :  { %v2647_v26 = vor.u32 1.1754944e-38, %v2646_v38  ;;  %vm2645_vm8 = vcmp.eq.f32.partialorder %v2644_v17, 8.507059e+37 }
 0x919   :  { %v4182_v54 = vpop.eup %4181 }
 0x91a   :  { %v2654_v50 = vadd.f32 1.0, %v4182_v54 }
 0x91b   :  { %v4184_v24 = vpop.eup %4183 }
 0x91c   :  { %v4186_v58 = vpop.eup %4185  ;;  %v2617_v7 = vmul.f32 %v4184_v24, %v2615_v63  ;;  %4187 = vrcp.f32 %v2654_v50  ;;  %vm2622_vm1 = vweird.f32 %v4184_v24  ;;  %v2666_v20 = vand.u32 2147483648, %v2654_v50 }
 0x91d   :  { %v2636_v37 = vmul.f32 %v4186_v58, %v2634_v60  ;;  %4189 = vtanh.f32 %v2610_v49  ;;  %vm2641_vm2 = vweird.f32 %v4186_v58  ;;  %vm2623_vm5 = vmor %vm2621_vm3, %vm2622_vm1  ;;  %vm2660_vm10 = vweird.f32 %v2654_v50 }
 0x91e   :  { %v2618_v44 = vsub.f32 1.0, %v2617_v7  ;;  %vm2642_vm6 = vmor %vm2640_vm4, %vm2641_vm2  ;;  %v2667_v15 = vor.u32 1.1754944e-38, %v2666_v20 }
 0x91f   :  { %v2637_v18 = vsub.f32 1.0, %v2636_v37 }
 0x920   :  { %v2619_v52 = vmul.f32 %v4184_v24, %v2618_v44 }
 0x921   :  { %v2638_v32 = vmul.f32 %v4186_v58, %v2637_v18 }
 0x922   :  { %v4188_v36 = vpop.eup %4187  ;;  %v2620_v10 = vadd.f32 %v4184_v24, %v2619_v52 }
 0x923   :  { %v2639_v43 = vadd.f32 %v4186_v58, %v2638_v32  ;;  %v2656_v57 = vmul.f32 %v4188_v36, %v2654_v50  ;;  %v4190_v9 = vpop.eup %4189  ;;  %vm2661_vm9 = vweird.f32 %v4188_v36 }
 0x924   :  { %v2624_v54 = vsel %vm2623_vm5, %v4184_v24, %v2620_v10  ;;  %v2664_v24 = vand.u32 2147483647, %v2654_v50  ;;  %vm2662_vm11 = vmor %vm2660_vm10, %vm2661_vm9 }
 0x925   :  { %v2629_v59 = vsel %vm2626_vm7, %v2628_v51, %v2624_v54  ;;  %v2643_v49 = vsel %vm2642_vm6, %v4186_v58, %v2639_v43  ;;  %v2657_v7 = vsub.f32 1.0, %v2656_v57 }
 0x926   :  { %v2648_v37 = vsel %vm2645_vm8, %v2647_v26, %v2643_v49  ;;  %v2671_v44 = vmul.f32 %v4190_v9, %v2629_v59  ;;  %vm2665_vm12 = vcmp.eq.f32.partialorder %v2664_v24, 8.507059e+37 }
 0x927   :  { %v2670_v18 = vmul.f32 %v2648_v37, %v5536_v47  ;;  %v2658_v52 = vmul.f32 %v4188_v36, %v2657_v7 }
 0x929   :  { %v5585_v63 = vadd.f32 %v2671_v44, %v2670_v18  ;;  %v2659_v60 = vadd.f32 %v4188_v36, %v2658_v52 }
 0x92b   :  { %4191 = vtanh.f32 %v5585_v63  ;;  %v2663_v38 = vsel %vm2662_vm11, %v4188_v36, %v2659_v60 }
 0x92c   :  { %v2668_v32 = vsel %vm2665_vm12, %v2667_v15, %v2663_v38 }
 0x931   :  { %v4192_v58 = vpop.eup %4191 }
 0x932   :  { %v5588_v17 = vmul.f32 %v4192_v58, %v2668_v32 }
 0x934   :  { %2675 = vst [vmem:[#allocation11 + $0x20] sm:$0xff] %v5588_v17  ;;  %v2680_v47 = vpack.c.bf16 %v5588_v17, %v5588_v17 }
 0x936   :  { %2689 = vmatmul.bf16.vlgmr.msra.gmra.mxu0 %v2680_v47  ;;  %2702 = vmatmul.bf16.vlgmr.msra.gmra.mxu1 %v2680_v47 }
 0x937   :  { %2715 = vmatmul.bf16.vlgmr.msra.gmra.mxu2 %v2680_v47  ;;  %2728 = vmatmul.bf16.vlgmr.msra.gmra.mxu3 %v2680_v47 }
 0x938   :  { %2931 = vmatpush.bf16.msra.mxu0 %v5103_v61  ;;  %2944 = vmatpush.bf16.msra.mxu1 %v5105_v48  ;;  %v5835_v61 = vld [vmem:[#allocation30_spill] sm:$0xff] }
 0x939   :  { %2957 = vmatpush.bf16.msra.mxu2 %v5110_v11  ;;  %2970 = vmatpush.bf16.msra.mxu3 %v5107_v14  ;;  %v1734_v48 = vadd.f32 %v5835_v61, %v5383_v19  ;;  %v5836_v14 = vld [vmem:[#allocation20_spill] sm:$0xff] }
 0x93a   :  { %v1763_v11 = vadd.f32 %v5836_v14, %v5385_v39 }
 0x93c   :  { %2932 = vmatpush.bf16.msra.mxu0 %v5114_v55  ;;  %2945 = vmatpush.bf16.msra.mxu1 %v5117_v0 }
 0x93d   :  { %2958 = vmatpush.bf16.msra.mxu2 %v5125_v6  ;;  %2971 = vmatpush.bf16.msra.mxu3 %v5120_v34 }
 0x940   :  { %2933 = vmatpush.bf16.msra.mxu0 %v5128_v16  ;;  %2946 = vmatpush.bf16.msra.mxu1 %v5130_v1 }
 0x941   :  { %2959 = vmatpush.bf16.msra.mxu2 %v5136_v56  ;;  %2972 = vmatpush.bf16.msra.mxu3 %v5132_v33  ;;  %v5837_v33 = vld [vmem:[#allocation38_spill] sm:$0xff] }
 0x942   :  { %v1821_v56 = vadd.f32 %v5837_v33, %v5393_v3 }
 0x944   :  { %2934 = vmatpush.bf16.msra.mxu0 %v5140_v31  ;;  %2947 = vmatpush.bf16.msra.mxu1 %v5144_v46 }
 0x945   :  { %2960 = vmatpush.bf16.msra.mxu2 %v5166_v8  ;;  %2973 = vmatpush.bf16.msra.mxu3 %v5150_v12 }
 0x948   :  { %2935 = vmatpush.bf16.msra.mxu0 %v5156_v25  ;;  %2948 = vmatpush.bf16.msra.mxu1 %v5158_v29 }
 0x949   :  { %2961 = vmatpush.bf16.msra.mxu2 %v5191_v30  ;;  %2974 = vmatpush.bf16.msra.mxu3 %v5164_v4 }
 0x94c   :  { %2936 = vmatpush.bf16.msra.mxu0 %v5170_v13  ;;  %2949 = vmatpush.bf16.msra.mxu1 %v5172_v22 }
 0x94d   :  { %2962 = vmatpush.bf16.msra.mxu2 %v5201_v5  ;;  %2975 = vmatpush.bf16.msra.mxu3 %v5178_v2 }
 0x950   :  { %2937 = vmatpush.bf16.msra.mxu0 %v5204_v35  ;;  %2950 = vmatpush.bf16.msra.mxu1 %v5206_v41  ;;  %v5838_v41 = vld [vmem:[#allocation37_spill] sm:$0xff] }
 0x951   :  { %2963 = vmatpush.bf16.msra.mxu2 %v5241_v27  ;;  %2976 = vmatpush.bf16.msra.mxu3 %v5208_v42  ;;  %v1792_v42 = vadd.f32 %v5838_v41, %v5821_v53 }
 0x954   :  { %2938 = vmatpush.bf16.msra.mxu0 %v5228_v45  ;;  %2951 = vmatpush.bf16.msra.mxu1 %v5239_v23 }
 0x955   :  { %2964 = vmatpush.bf16.msra.mxu2 %v5252_v28  ;;  %2977 = vmatpush.bf16.msra.mxu3 %v5246_v62 }
 0x9b3   :  { %v2690_v55 = vpop.f32.mrf.mxu0  ;;  %v2703_v0 = vpop.f32.mrf.mxu1 }
 0x9b4   :  { %v2733_v34 = vadd.f32 %v2690_v55, %v1734_v48  ;;  %v2734_v6 = vadd.f32 %v2703_v0, %v1763_v11 }
 0x9b6   :  { %v3814_v16 = vmul.f32 -1.442695, %v2733_v34  ;;  %v3815_v1 = vmul.f32 -1.442695, %v2734_v6 }
 0x9b8   :  { %4193 = vpow2.f32 %v3814_v16 }
 0x9b9   :  { %4195 = vpow2.f32 %v3815_v1  ;;  %v5839_v1 = vld [vmem:[#allocation33_spill] sm:$0xff] }
 0x9ba   :  { %v2716_v31 = vpop.f32.mrf.mxu2  ;;  %v2729_v46 = vpop.f32.mrf.mxu3  ;;  %v1737_v33 = vadd.f32 %v5839_v1, %v5383_v19 }
 0x9bb   :  { %v2736_v12 = vadd.f32 %v2729_v46, %v1821_v56  ;;  %v2692_v25 = vpop.f32.mrf.mxu0  ;;  %v2705_v29 = vpop.f32.mrf.mxu1  ;;  %v2735_v27 = vadd.f32 %v2716_v31, %v1792_v42  ;;  %v5840_v56 = vld [vmem:[#allocation22_spill] sm:$0xff] }
 0x9bc   :  { %v1766_v31 = vadd.f32 %v5840_v56, %v5385_v39  ;;  %v3970_v46 = vld [vmem:[%s5736_s7 + $0x38] sm:$0xff] }
 0x9bd   :  { %v3816_v4 = vmul.f32 -1.442695, %v2736_v12 }
 0x9be   :  { %v4194_v8 = vpop.eup %4193 }
 0x9bf   :  { %v4196_v13 = vpop.eup %4195  ;;  %v2740_v22 = vadd.f32 1.0, %v4194_v8  ;;  %4197 = vpow2.f32 %v3816_v4 }
 0x9c0   :  { %v2759_v2 = vadd.f32 1.0, %v4196_v13 }
 0x9c1   :  { %4199 = vrcp.f32 %v2740_v22  ;;  %v2752_v51 = vand.u32 2147483648, %v2740_v22  ;;  %v2750_v26 = vand.u32 2147483647, %v2740_v22  ;;  %vm2746_vm15 = vweird.f32 %v2740_v22 }
 0x9c2   :  { %4201 = vrcp.f32 %v2759_v2  ;;  %v2718_v30 = vpop.f32.mrf.mxu2  ;;  %v2731_v5 = vpop.f32.mrf.mxu3  ;;  %v2771_v43 = vand.u32 2147483648, %v2759_v2  ;;  %v2769_v9 = vand.u32 2147483647, %v2759_v2  ;;  %vm2765_vm0 = vweird.f32 %v2759_v2 }
 0x9c3   :  { %v2753_v7 = vor.u32 1.1754944e-38, %v2752_v51  ;;  %vm2751_vm3 = vcmp.eq.f32.partialorder %v2750_v26, 8.507059e+37  ;;  %v5841_v30 = vld [vmem:[#allocation40_spill] sm:$0xff]  ;;  %v3965_v26 = vld [vmem:[%s5736_s7 + $0x10] sm:$0xff] }
 0x9c4   :  { %v2772_v18 = vor.u32 1.1754944e-38, %v2771_v43  ;;  %vm2770_vm4 = vcmp.eq.f32.partialorder %v2769_v9, 8.507059e+37  ;;  %v1824_v5 = vadd.f32 %v5841_v30, %v5393_v3  ;;  %v5842_v9 = vld [vmem:[#allocation39_spill] sm:$0xff] }
 0x9c5   :  { %v4198_v35 = vpop.eup %4197 }
 0x9c6   :  { %v2779_v45 = vadd.f32 1.0, %v4198_v35 }
 0x9c7   :  { %v4200_v23 = vpop.eup %4199 }
 0x9c8   :  { %v4202_v62 = vpop.eup %4201  ;;  %v2742_v28 = vmul.f32 %v4200_v23, %v2740_v22  ;;  %4203 = vrcp.f32 %v2779_v45  ;;  %vm2747_vm13 = vweird.f32 %v4200_v23  ;;  %v2791_v14 = vand.u32 2147483648, %v2779_v45  ;;  %v3969_v22 = vld [vmem:[%s5736_s7 + $0x30] sm:$0xff] }
 0x9c9   :  { %v2761_v50 = vmul.f32 %v4202_v62, %v2759_v2  ;;  %4205 = vtanh.f32 %v2735_v27  ;;  %vm2766_vm14 = vweird.f32 %v4202_v62  ;;  %vm2748_vm1 = vmor %vm2746_vm15, %vm2747_vm13  ;;  %vm2785_vm6 = vweird.f32 %v2779_v45  ;;  %v3968_v2 = vld [vmem:[%s5736_s7 + $0x28] sm:$0xff]  ;;  %v3967_v27 = vld [vmem:[%s5736_s7 + $0x20] sm:$0xff] }
 0x9ca   :  { %v2743_v36 = vsub.f32 1.0, %v2742_v28  ;;  %vm2767_vm2 = vmor %vm2765_vm0, %vm2766_vm14  ;;  %v2789_v11 = vand.u32 2147483647, %v2779_v45  ;;  %v2792_v0 = vor.u32 1.1754944e-38, %v2791_v14 }
 0x9cb   :  { %v2762_v10 = vsub.f32 1.0, %v2761_v50 }
 0x9cc   :  { %v2744_v57 = vmul.f32 %v4200_v23, %v2743_v36  ;;  %vm2790_vm8 = vcmp.eq.f32.partialorder %v2789_v11, 8.507059e+37 }
 0x9cd   :  { %v2763_v54 = vmul.f32 %v4202_v62, %v2762_v10 }
 0x9ce   :  { %v4204_v59 = vpop.eup %4203  ;;  %v2745_v49 = vadd.f32 %v4200_v23, %v2744_v57  ;;  %v3966_v57 = vld [vmem:[%s5736_s7 + $0x18] sm:$0xff] }
 0x9cf   :  { %v2764_v37 = vadd.f32 %v4202_v62, %v2763_v54  ;;  %v2781_v44 = vmul.f32 %v4204_v59, %v2779_v45  ;;  %v4206_v60 = vpop.eup %4205  ;;  %vm2786_vm5 = vweird.f32 %v4204_v59 }
 0x9d0   :  { %v2749_v52 = vsel %vm2748_vm1, %v4200_v23, %v2745_v49  ;;  %vm2787_vm7 = vmor %vm2785_vm6, %vm2786_vm5 }
 0x9d1   :  { %v2754_v20 = vsel %vm2751_vm3, %v2753_v7, %v2749_v52  ;;  %v2768_v24 = vsel %vm2767_vm2, %v4202_v62, %v2764_v37  ;;  %v2782_v38 = vsub.f32 1.0, %v2781_v44  ;;  %v3964_v52 = vld [vmem:[%s5736_s7 + $0x8] sm:$0xff] }
 0x9d2   :  { %v2773_v15 = vsel %vm2770_vm4, %v2772_v18, %v2768_v24  ;;  %v2796_v58 = vmul.f32 %v4206_v60, %v2754_v20 }
 0x9d3   :  { %v2795_v32 = vmul.f32 %v2773_v15, %v5585_v63  ;;  %v2783_v47 = vmul.f32 %v4204_v59, %v2782_v38 }
 0x9d5   :  { %v5634_v61 = vadd.f32 %v2796_v58, %v2795_v32  ;;  %v2784_v48 = vadd.f32 %v4204_v59, %v2783_v47  ;;  %v3963_v47 = vld [vmem:[%s5736_s7] sm:$0xff] }
 0x9d7   :  { %4207 = vtanh.f32 %v5634_v61  ;;  %v2788_v55 = vsel %vm2787_vm7, %v4204_v59, %v2784_v48  ;;  %v1795_v59 = vadd.f32 %v5842_v9, %v5821_v53 }
 0x9d8   :  { %v2793_v6 = vsel %vm2790_vm8, %v2792_v0, %v2788_v55 }
 0x9dd   :  { %v4208_v34 = vpop.eup %4207 }
 0x9de   :  { %v5637_v16 = vmul.f32 %v4208_v34, %v2793_v6 }
 0x9e0   :  { %2800 = vst [vmem:[#allocation11 + $0x28] sm:$0xff] %v5637_v16  ;;  %v2805_v63 = vpack.c.bf16 %v5637_v16, %v5637_v16 }
 0x9e2   :  { %2814 = vmatmul.bf16.vlgmr.msrb.gmra.mxu0 %v2805_v63  ;;  %2827 = vmatmul.bf16.vlgmr.msrb.gmra.mxu1 %v2805_v63 }
 0x9e3   :  { %2840 = vmatmul.bf16.vlgmr.msrb.gmra.mxu2 %v2805_v63  ;;  %2853 = vmatmul.bf16.vlgmr.msrb.gmra.mxu3 %v2805_v63 }
 0x9e4   :  { %3131 = vmatpush.bf16.msrb.mxu0 %v3970_v46 }
 0x9e8   :  { %3132 = vmatpush.bf16.msrb.mxu0 %v3969_v22 }
 0x9ec   :  { %3133 = vmatpush.bf16.msrb.mxu0 %v3968_v2 }
 0x9f0   :  { %3134 = vmatpush.bf16.msrb.mxu0 %v3967_v27 }
 0x9f4   :  { %3135 = vmatpush.bf16.msrb.mxu0 %v3966_v57 }
 0x9f8   :  { %3136 = vmatpush.bf16.msrb.mxu0 %v3965_v26 }
 0x9fc   :  { %3137 = vmatpush.bf16.msrb.mxu0 %v3964_v52 }
 0xa00   :  { %3138 = vmatpush.bf16.msrb.mxu0 %v3963_v47 }
 0xa5f   :  { %v2815_v12 = vpop.f32.mrf.mxu0  ;;  %v2828_v25 = vpop.f32.mrf.mxu1 }
 0xa60   :  { %v2858_v29 = vadd.f32 %v2815_v12, %v1737_v33  ;;  %v2859_v4 = vadd.f32 %v2828_v25, %v1766_v31 }
 0xa62   :  { %v3817_v8 = vmul.f32 -1.442695, %v2858_v29  ;;  %v3818_v13 = vmul.f32 -1.442695, %v2859_v4 }
 0xa64   :  { %4209 = vpow2.f32 %v3817_v8 }
 0xa65   :  { %4211 = vpow2.f32 %v3818_v13 }
 0xa66   :  { %v2841_v35 = vpop.f32.mrf.mxu2  ;;  %v2854_v41 = vpop.f32.mrf.mxu3 }
 0xa67   :  { %v2861_v42 = vadd.f32 %v2854_v41, %v1824_v5  ;;  %v2817_v45 = vpop.f32.mrf.mxu0  ;;  %v2830_v23 = vpop.f32.mrf.mxu1  ;;  %v2860_v37 = vadd.f32 %v2841_v35, %v1795_v59 }
 0xa68   :  { %v3052_v45 = vld [vmem:[#allocation11 + $0x8] sm:$0xff]  ;;  %v3051_v23 = vld [vmem:[#allocation11] sm:$0xff] }
 0xa69   :  { %v3819_v62 = vmul.f32 -1.442695, %v2861_v42  ;;  %v3059_v27 = vpack.c.bf16 %v3052_v45, %v3051_v23 }
 0xa6a   :  { %v4210_v28 = vpop.eup %4209 }
 0xa6b   :  { %v4212_v50 = vpop.eup %4211  ;;  %v2865_v36 = vadd.f32 1.0, %v4210_v28  ;;  %4213 = vpow2.f32 %v3819_v62  ;;  %v3060_v62 = vpack.c.bf16 %v5539_v40, %v5490_v21  ;;  %v3061_v28 = vpack.c.bf16 %v5637_v16, %v5588_v17  ;;  %v5845_v21 = vld [vmem:[#allocation43_spill] sm:$0xff] }
 0xa6c   :  { %v2884_v10 = vadd.f32 1.0, %v4212_v50  ;;  %v5843_v50 = vld [vmem:[#allocation36_spill] sm:$0xff]  ;;  %v1826_v40 = vadd.f32 %v5845_v21, %v5393_v3 }
 0xa6d   :  { %4215 = vrcp.f32 %v2865_v36  ;;  %v2877_v38 = vand.u32 2147483648, %v2865_v36  ;;  %v2875_v32 = vand.u32 2147483647, %v2865_v36  ;;  %vm2871_vm11 = vweird.f32 %v2865_v36 }
 0xa6e   :  { %4217 = vrcp.f32 %v2884_v10  ;;  %v2843_v51 = vpop.f32.mrf.mxu2  ;;  %v2856_v43 = vpop.f32.mrf.mxu3  ;;  %v2896_v15 = vand.u32 2147483648, %v2884_v10  ;;  %v2894_v14 = vand.u32 2147483647, %v2884_v10  ;;  %vm2890_vm12 = vweird.f32 %v2884_v10 }
 0xa6f   :  { %v2878_v0 = vor.u32 1.1754944e-38, %v2877_v38  ;;  %vm2876_vm15 = vcmp.eq.f32.partialorder %v2875_v32, 8.507059e+37 }
 0xa70   :  { %v2897_v63 = vor.u32 1.1754944e-38, %v2896_v15  ;;  %vm2895_vm0 = vcmp.eq.f32.partialorder %v2894_v14, 8.507059e+37 }
 0xa71   :  { %v4214_v54 = vpop.eup %4213 }
 0xa72   :  { %v2904_v49 = vadd.f32 1.0, %v4214_v54 }
 0xa73   :  { %v4216_v7 = vpop.eup %4215 }
 0xa74   :  { %v4218_v44 = vpop.eup %4217  ;;  %v2867_v18 = vmul.f32 %v4216_v7, %v2865_v36  ;;  %4219 = vrcp.f32 %v2904_v49  ;;  %vm2872_vm9 = vweird.f32 %v4216_v7  ;;  %v2916_v22 = vand.u32 2147483648, %v2904_v49 }
 0xa75   :  { %v2886_v60 = vmul.f32 %v4218_v44, %v2884_v10  ;;  %4221 = vtanh.f32 %v2860_v37  ;;  %vm2891_vm10 = vweird.f32 %v4218_v44  ;;  %vm2873_vm13 = vmor %vm2871_vm11, %vm2872_vm9  ;;  %vm2910_vm2 = vweird.f32 %v2904_v49  ;;  %v5844_v10 = vld [vmem:[#allocation41_spill] sm:$0xff] }
 0xa76   :  { %v2868_v20 = vsub.f32 1.0, %v2867_v18  ;;  %vm2892_vm14 = vmor %vm2890_vm12, %vm2891_vm10  ;;  %v2914_v2 = vand.u32 2147483647, %v2904_v49  ;;  %v2917_v5 = vor.u32 1.1754944e-38, %v2916_v22  ;;  %v1739_v36 = vadd.f32 %v5843_v50, %v5383_v19 }
 0xa77   :  { %v2887_v24 = vsub.f32 1.0, %v2886_v60  ;;  %v1768_v51 = vadd.f32 %v5844_v10, %v5385_v39  ;;  %v5696_v60 = vld [vmem:[%s5737_s8] ss:$0 sm:$0xff]  ;;  %s4434_s8 = smov [#allocation11]  }
 0xa78   :  { %v2869_v58 = vmul.f32 %v4216_v7, %v2868_v20  ;;  %vm2915_vm4 = vcmp.eq.f32.partialorder %v2914_v2, 8.507059e+37  ;;  %s3324_s21 = sshll.u32 %s4434_s8, 4  ;;  %s3325_s21 = int_to_ptr.vmem [resolvable:$true] %s3324_s21 }
 0xa79   :  { %v2888_v48 = vmul.f32 %v4218_v44, %v2887_v24  ;;  %v5846_v24 = vld [vmem:[#allocation42_spill] sm:$0xff] }
 0xa7a   :  { %v4220_v11 = vpop.eup %4219  ;;  %v2870_v55 = vadd.f32 %v4216_v7, %v2869_v58  ;;  %v1797_v38 = vadd.f32 %v5846_v24, %v5821_v53 }
 0xa7b   :  { %v2889_v34 = vadd.f32 %v4218_v44, %v2888_v48  ;;  %v2906_v6 = vmul.f32 %v4220_v11, %v2904_v49  ;;  %v4222_v33 = vpop.eup %4221  ;;  %vm2911_vm1 = vweird.f32 %v4220_v11 }
 0xa7c   :  { %v2874_v1 = vsel %vm2873_vm13, %v4216_v7, %v2870_v55  ;;  %vm2912_vm3 = vmor %vm2910_vm2, %vm2911_vm1 }
 0xa7d   :  { %v2879_v56 = vsel %vm2876_vm15, %v2878_v0, %v2874_v1  ;;  %v2893_v31 = vsel %vm2892_vm14, %v4218_v44, %v2889_v34  ;;  %v2907_v46 = vsub.f32 1.0, %v2906_v6 }
 0xa7e   :  { %v2898_v12 = vsel %vm2895_vm0, %v2897_v63, %v2893_v31  ;;  %v2921_v25 = vmul.f32 %v4222_v33, %v2879_v56 }
 0xa7f   :  { %v2920_v29 = vmul.f32 %v2898_v12, %v5634_v61  ;;  %v2908_v4 = vmul.f32 %v4220_v11, %v2907_v46 }
 0xa81   :  { %v5675_v8 = vadd.f32 %v2921_v25, %v2920_v29  ;;  %v2909_v13 = vadd.f32 %v4220_v11, %v2908_v4 }
 0xa83   :  { %4223 = vtanh.f32 %v5675_v8  ;;  %v2913_v30 = vsel %vm2912_vm3, %v4220_v11, %v2909_v13 }
 0xa84   :  { %v2918_v41 = vsel %vm2915_vm4, %v2917_v5, %v2913_v30 }
 0xa89   :  { %v4224_v35 = vpop.eup %4223 }
 0xa8a   :  { %v5678_v42 = vmul.f32 %v4224_v35, %v2918_v41 }
 0xa8c   :  { %2925 = vst [vmem:[#allocation11 + $0x30] sm:$0xff] %v5678_v42  ;;  %v2930_v61 = vpack.c.bf16 %v5678_v42, %v5678_v42 }
 0xa8e   :  { %2939 = vmatmul.bf16.vlgmr.msra.gmra.mxu0 %v2930_v61  ;;  %2952 = vmatmul.bf16.vlgmr.msra.gmra.mxu1 %v2930_v61 }
 0xa8f   :  { %2965 = vmatmul.bf16.vlgmr.msra.gmra.mxu2 %v2930_v61  ;;  %2978 = vmatmul.bf16.vlgmr.msra.gmra.mxu3 %v2930_v61 }
 0xa9e   :  { %3139 = vmatmul.bf16.vlgmr.msrb.gmra.mxu0 %v3059_v27 }
 0xaae   :  { %3144 = vmatmul.bf16.gmra.mxu0 %v3060_v62 }
 0xabe   :  { %3149 = vmatmul.bf16.gmra.mxu0 %v3061_v28 }
 0xb0b   :  { %v2940_v43 = vpop.f32.mrf.mxu0  ;;  %v2953_v57 = vpop.f32.mrf.mxu1 }
 0xb0c   :  { %v2983_v26 = vadd.f32 %v2940_v43, %v1739_v36  ;;  %v2984_v54 = vadd.f32 %v2953_v57, %v1768_v51 }
 0xb0e   :  { %v3820_v9 = vmul.f32 -1.442695, %v2983_v26  ;;  %v3821_v59 = vmul.f32 -1.442695, %v2984_v54 }
 0xb10   :  { %4225 = vpow2.f32 %v3820_v9 }
 0xb11   :  { %4227 = vpow2.f32 %v3821_v59 }
 0xb12   :  { %v2966_v49 = vpop.f32.mrf.mxu2  ;;  %v2979_v17 = vpop.f32.mrf.mxu3 }
 0xb13   :  { %v2986_v16 = vadd.f32 %v2979_v17, %v1826_v40  ;;  %v2942_v7 = vpop.f32.mrf.mxu0  ;;  %v2955_v37 = vpop.f32.mrf.mxu1  ;;  %v2985_v47 = vadd.f32 %v2966_v49, %v1797_v38 }
 0xb15   :  { %v3822_v19 = vmul.f32 -1.442695, %v2986_v16 }
 0xb16   :  { %v4226_v44 = vpop.eup %4225 }
 0xb17   :  { %v4228_v18 = vpop.eup %4227  ;;  %v2990_v39 = vadd.f32 1.0, %v4226_v44  ;;  %4229 = vpow2.f32 %v3822_v19 }
 0xb18   :  { %v3009_v52 = vadd.f32 1.0, %v4228_v18 }
 0xb19   :  { %4231 = vrcp.f32 %v2990_v39  ;;  %v3000_v53 = vand.u32 2147483647, %v2990_v39  ;;  %v3002_v33 = vand.u32 2147483648, %v2990_v39  ;;  %vm2996_vm8 = vweird.f32 %v2990_v39 }
 0xb1a   :  { %4233 = vrcp.f32 %v3009_v52  ;;  %v2968_v3 = vpop.f32.mrf.mxu2  ;;  %v2981_v20 = vpop.f32.mrf.mxu3  ;;  %v3021_v1 = vand.u32 2147483648, %v3009_v52  ;;  %v3019_v46 = vand.u32 2147483647, %v3009_v52  ;;  %vm3015_vm7 = vweird.f32 %v3009_v52 }
 0xb1b   :  { %v3140_v15 = vpop.f32.mrf.mxu0  ;;  %vm3001_vm10 = vcmp.eq.f32.partialorder %v3000_v53, 8.507059e+37  ;;  %v3003_v2 = vor.u32 1.1754944e-38, %v3002_v33 }
 0xb1c   :  { %v3141_v58 = vadd.f32 %v5696_v60, %v3140_v15  ;;  %v3022_v41 = vor.u32 1.1754944e-38, %v3021_v1  ;;  %vm3020_vm12 = vcmp.eq.f32.partialorder %v3019_v46, 8.507059e+37 }
 0xb1d   :  { %v4230_v32 = vpop.eup %4229 }
 0xb1e   :  { %v5701_v48 = vadd.f32 1.0, %v4230_v32  ;;  %v3855_v14 = vmul.f32 -1.442695, %v3141_v58 }
 0xb1f   :  { %v4232_v11 = vpop.eup %4231 }
 0xb20   :  { %v4234_v55 = vpop.eup %4233  ;;  %v2992_v0 = vmul.f32 %v4232_v11, %v2990_v39  ;;  %4235 = vrcp.f32 %v5701_v48  ;;  %vm2997_vm5 = vweird.f32 %v4232_v11  ;;  %v3041_v59 = vand.u32 2147483648, %v5701_v48 }
 0xb21   :  { %v3011_v34 = vmul.f32 %v4234_v55, %v3009_v52  ;;  %4237 = vtanh.f32 %v2985_v47  ;;  %vm3016_vm6 = vweird.f32 %v4234_v55  ;;  %vm2998_vm9 = vmor %vm2996_vm8, %vm2997_vm5  ;;  %vm3035_vm14 = vweird.f32 %v5701_v48 }
 0xb22   :  { %v2993_v6 = vsub.f32 1.0, %v2992_v0  ;;  %4239 = vpow2.f32 %v3855_v14  ;;  %vm3017_vm11 = vmor %vm3015_vm7, %vm3016_vm6  ;;  %v3039_v40 = vand.u32 2147483647, %v5701_v48  ;;  %v3042_v16 = vor.u32 1.1754944e-38, %v3041_v59 }
 0xb23   :  { %v3012_v63 = vsub.f32 1.0, %v3011_v34  ;;  %v3142_v56 = vpop.f32.mrf.mxu0 }
 0xb24   :  { %v2994_v31 = vmul.f32 %v4232_v11, %v2993_v6  ;;  %v3143_v12 = vadd.f32 %v5696_v60, %v3142_v56  ;;  %vm3040_vm0 = vcmp.eq.f32.partialorder %v3039_v40, 8.507059e+37 }
 0xb25   :  { %v3013_v25 = vmul.f32 %v4234_v55, %v3012_v63 }
 0xb26   :  { %v4236_v29 = vpop.eup %4235  ;;  %v2995_v4 = vadd.f32 %v4232_v11, %v2994_v31  ;;  %v3856_v13 = vmul.f32 -1.442695, %v3143_v12 }
 0xb27   :  { %v4238_v22 = vpop.eup %4237  ;;  %v3014_v30 = vadd.f32 %v4234_v55, %v3013_v25  ;;  %v3031_v5 = vmul.f32 %v4236_v29, %v5701_v48  ;;  %vm3036_vm13 = vweird.f32 %v4236_v29 }
 0xb28   :  { %v4240_v35 = vpop.eup %4239  ;;  %v2999_v61 = vsel %vm2998_vm9, %v4232_v11, %v2995_v4  ;;  %4241 = vpow2.f32 %v3856_v13  ;;  %vm3037_vm15 = vmor %vm3035_vm14, %vm3036_vm13 }
 0xb29   :  { %v3004_v45 = vsel %vm3001_vm10, %v3003_v2, %v2999_v61  ;;  %v3018_v23 = vsel %vm3017_vm11, %v4234_v55, %v3014_v30  ;;  %v3032_v27 = vsub.f32 1.0, %v3031_v5  ;;  %v3184_v62 = vadd.f32 1.0, %v4240_v35 }
 0xb2a   :  { %v3023_v28 = vsel %vm3020_vm12, %v3022_v41, %v3018_v23  ;;  %v3046_v50 = vmul.f32 %v4238_v22, %v3004_v45 }
 0xb2b   :  { %v3045_v36 = vmul.f32 %v3023_v28, %v5675_v8  ;;  %v3033_v10 = vmul.f32 %v4236_v29, %v3032_v27  ;;  %4243 = vrcp.f32 %v3184_v62  ;;  %v3145_v51 = vpop.f32.mrf.mxu0  ;;  %v3201_v39 = vand.u32 2147483647, %v3184_v62 }
 0xb2c   :  { %v3146_v43 = vadd.f32 %v5696_v60, %v3145_v51  ;;  %v3203_v52 = vand.u32 2147483648, %v3184_v62  ;;  %vm3197_vm2 = vweird.f32 %v3184_v62 }
 0xb2d   :  { %v3047_v57 = vadd.f32 %v3046_v50, %v3045_v36  ;;  %v3034_v54 = vadd.f32 %v4236_v29, %v3033_v10  ;;  %vm3202_vm4 = vcmp.eq.f32.partialorder %v3201_v39, 8.507059e+37 }
 0xb2e   :  { %v4242_v26 = vpop.eup %4241  ;;  %v3857_v9 = vmul.f32 -1.442695, %v3146_v43  ;;  %v3204_v48 = vor.u32 1.1754944e-38, %v3203_v52 }
 0xb2f   :  { %4245 = vtanh.f32 %v3047_v57  ;;  %v3185_v21 = vadd.f32 1.0, %v4242_v26  ;;  %v3038_v49 = vsel %vm3037_vm15, %v4236_v29, %v3034_v54 }
 0xb30   :  { %4247 = vpow2.f32 %v3857_v9  ;;  %v3043_v18 = vsel %vm3040_vm0, %v3042_v16, %v3038_v49 }
 0xb31   :  { %v4244_v8 = vpop.eup %4243  ;;  %4249 = vrcp.f32 %v3185_v21  ;;  %v3218_v34 = vand.u32 2147483648, %v3185_v21  ;;  %v3216_v1 = vand.u32 2147483647, %v3185_v21  ;;  %vm3212_vm6 = vweird.f32 %v3185_v21 }
 0xb32   :  { %v3193_v17 = vmul.f32 %v4244_v8, %v3184_v62  ;;  %vm3198_vm1 = vweird.f32 %v4244_v8 }
 0xb33   :  { %v3147_v7 = vpop.f32.mrf.mxu0  ;;  %vm3199_vm3 = vmor %vm3197_vm2, %vm3198_vm1  ;;  %v3219_v12 = vor.u32 1.1754944e-38, %v3218_v34  ;;  %vm3217_vm8 = vcmp.eq.f32.partialorder %v3216_v1, 8.507059e+37 }
 0xb34   :  { %v3194_v37 = vsub.f32 1.0, %v3193_v17  ;;  %v3148_v19 = vadd.f32 %v5696_v60, %v3147_v7 }
 0xb35   :  { %v4246_v44 = vpop.eup %4245 }
 0xb36   :  { %v4248_v3 = vpop.eup %4247  ;;  %v3049_v20 = vmul.f32 %v4246_v44, %v3043_v18  ;;  %v3195_v24 = vmul.f32 %v4244_v8, %v3194_v37  ;;  %v3858_v38 = vmul.f32 -1.442695, %v3148_v19 }
 0xb37   :  { %v4250_v15 = vpop.eup %4249  ;;  %v3186_v58 = vadd.f32 1.0, %v4248_v3 }
 0xb38   :  { %3050 = vst [vmem:[#allocation11 + $0x38] sm:$0xff] %v3049_v20  ;;  %v3196_v32 = vadd.f32 %v4244_v8, %v3195_v24  ;;  %v3208_v47 = vmul.f32 %v4250_v15, %v3185_v21  ;;  %4251 = vpow2.f32 %v3858_v38  ;;  %v3062_v55 = vpack.c.bf16 %v3049_v20, %v5678_v42 }
 0xb39   :  { %4253 = vrcp.f32 %v3186_v58  ;;  %vm3213_vm5 = vweird.f32 %v4250_v15  ;;  %v3233_v22 = vand.u32 2147483648, %v3186_v58  ;;  %v3231_v5 = vand.u32 2147483647, %v3186_v58  ;;  %3332 = dma.vmem_to_hbm [thread:$0]  %s3325_s21, 1024, %s3327_s24, [#allocation5], %s4435_s25, %s4435_s25, %s4436_s26  }
 0xb3a   :  { %v3200_v14 = vsel %vm3199_vm3, %v4244_v8, %v3196_v32  ;;  %v3209_v11 = vsub.f32 1.0, %v3208_v47  ;;  %3154 = vmatmul.bf16.gmra.mxu0 %v3062_v55  ;;  %vm3214_vm7 = vmor %vm3212_vm6, %vm3213_vm5  ;;  %vm3227_vm10 = vweird.f32 %v3186_v58 }
 0xb3b   :  { %v3205_v0 = vsel %vm3202_vm4, %v3204_v48, %v3200_v14  ;;  %v3150_v6 = vpop.f32.mrf.mxu0  ;;  %v3234_v27 = vor.u32 1.1754944e-38, %v3233_v22  ;;  %vm3232_vm12 = vcmp.eq.f32.partialorder %v3231_v5, 8.507059e+37 }
 0xb3c   :  { %3312 = vst [vmem:[#allocation12] sm:$0xff] %v3205_v0  ;;  %v3210_v63 = vmul.f32 %v4250_v15, %v3209_v11  ;;  %v3151_v53 = vadd.f32 %v5696_v60, %v3150_v6 }
 0xb3e   :  { %v4252_v33 = vpop.eup %4251  ;;  %v3211_v56 = vadd.f32 %v4250_v15, %v3210_v63  ;;  %v3859_v31 = vmul.f32 -1.442695, %v3151_v53 }
 0xb3f   :  { %v4254_v46 = vpop.eup %4253  ;;  %v3187_v25 = vadd.f32 1.0, %v4252_v33 }
 0xb40   :  { %v3215_v29 = vsel %vm3214_vm7, %v4250_v15, %v3211_v56  ;;  %v3223_v42 = vmul.f32 %v4254_v46, %v3186_v58  ;;  %4255 = vpow2.f32 %v3859_v31  ;;  %vm3228_vm9 = vweird.f32 %v4254_v46 }
 0xb41   :  { %v3220_v4 = vsel %vm3217_vm8, %v3219_v12, %v3215_v29  ;;  %4257 = vrcp.f32 %v3187_v25  ;;  %vm3229_vm11 = vmor %vm3227_vm10, %vm3228_vm9  ;;  %v3248_v51 = vand.u32 2147483648, %v3187_v25  ;;  %v3246_v57 = vand.u32 2147483647, %v3187_v25 }
 0xb42   :  { %3313 = vst [vmem:[#allocation12 + $0x8] sm:$0xff] %v3220_v4  ;;  %v3224_v13 = vsub.f32 1.0, %v3223_v42  ;;  %vm3242_vm14 = vweird.f32 %v3187_v25 }
 0xb43   :  { %v3152_v2 = vpop.f32.mrf.mxu0  ;;  %v3249_v59 = vor.u32 1.1754944e-38, %v3248_v51  ;;  %vm3247_vm0 = vcmp.eq.f32.partialorder %v3246_v57, 8.507059e+37 }
 0xb44   :  { %v3225_v30 = vmul.f32 %v4254_v46, %v3224_v13  ;;  %v3153_v35 = vadd.f32 %v5696_v60, %v3152_v2 }
 0xb46   :  { %v4256_v41 = vpop.eup %4255  ;;  %v3226_v61 = vadd.f32 %v4254_v46, %v3225_v30  ;;  %v3860_v45 = vmul.f32 -1.442695, %v3153_v35 }
 0xb47   :  { %v4258_v23 = vpop.eup %4257  ;;  %v3188_v62 = vadd.f32 1.0, %v4256_v41 }
 0xb48   :  { %v3230_v28 = vsel %vm3229_vm11, %v4254_v46, %v3226_v61  ;;  %v3238_v50 = vmul.f32 %v4258_v23, %v3187_v25  ;;  %4259 = vpow2.f32 %v3860_v45  ;;  %vm3243_vm13 = vweird.f32 %v4258_v23 }
 0xb49   :  { %v3235_v36 = vsel %vm3232_vm12, %v3234_v27, %v3230_v28  ;;  %4261 = vrcp.f32 %v3188_v62  ;;  %vm3244_vm15 = vmor %vm3242_vm14, %vm3243_vm13  ;;  %v3263_v16 = vand.u32 2147483648, %v3188_v62  ;;  %v3261_v37 = vand.u32 2147483647, %v3188_v62 }
 0xb4a   :  { %3314 = vst [vmem:[#allocation12 + $0x10] sm:$0xff] %v3235_v36  ;;  %v3239_v10 = vsub.f32 1.0, %v3238_v50  ;;  %vm3257_vm2 = vweird.f32 %v3188_v62 }
 0xb4b   :  { %v3264_v18 = vor.u32 1.1754944e-38, %v3263_v16  ;;  %vm3262_vm4 = vcmp.eq.f32.partialorder %v3261_v37, 8.507059e+37 }
 0xb4c   :  { %v3240_v43 = vmul.f32 %v4258_v23, %v3239_v10 }
 0xb4e   :  { %v4260_v26 = vpop.eup %4259  ;;  %v3241_v54 = vadd.f32 %v4258_v23, %v3240_v43 }
 0xb4f   :  { %v4262_v9 = vpop.eup %4261  ;;  %v3189_v21 = vadd.f32 1.0, %v4260_v26 }
 0xb50   :  { %v3245_v40 = vsel %vm3244_vm15, %v4258_v23, %v3241_v54  ;;  %v3253_v8 = vmul.f32 %v4262_v9, %v3188_v62  ;;  %vm3258_vm1 = vweird.f32 %v4262_v9 }
 0xb51   :  { %v3250_v49 = vsel %vm3247_vm0, %v3249_v59, %v3245_v40  ;;  %4263 = vrcp.f32 %v3189_v21  ;;  %vm3259_vm3 = vmor %vm3257_vm2, %vm3258_vm1  ;;  %v3278_v24 = vand.u32 2147483648, %v3189_v21  ;;  %v3276_v15 = vand.u32 2147483647, %v3189_v21 }
 0xb52   :  { %3315 = vst [vmem:[#allocation12 + $0x18] sm:$0xff] %v3250_v49  ;;  %v3254_v17 = vsub.f32 1.0, %v3253_v8  ;;  %vm3272_vm6 = vweird.f32 %v3189_v21 }
 0xb53   :  { %v3279_v32 = vor.u32 1.1754944e-38, %v3278_v24  ;;  %vm3277_vm8 = vcmp.eq.f32.partialorder %v3276_v15, 8.507059e+37 }
 0xb54   :  { %v3255_v7 = vmul.f32 %v4262_v9, %v3254_v17 }
 0xb56   :  { %v3256_v19 = vadd.f32 %v4262_v9, %v3255_v7 }
 0xb57   :  { %v4264_v44 = vpop.eup %4263 }
 0xb58   :  { %v3260_v39 = vsel %vm3259_vm3, %v4262_v9, %v3256_v19  ;;  %v3268_v52 = vmul.f32 %v4264_v44, %v3189_v21  ;;  %vm3273_vm5 = vweird.f32 %v4264_v44 }
 0xb59   :  { %v3265_v3 = vsel %vm3262_vm4, %v3264_v18, %v3260_v39  ;;  %vm3274_vm7 = vmor %vm3272_vm6, %vm3273_vm5 }
 0xb5a   :  { %3316 = vst [vmem:[#allocation12 + $0x20] sm:$0xff] %v3265_v3  ;;  %v3269_v20 = vsub.f32 1.0, %v3268_v52 }
 0xb5c   :  { %v3270_v38 = vmul.f32 %v4264_v44, %v3269_v20 }
 0xb5e   :  { %v3271_v58 = vadd.f32 %v4264_v44, %v3270_v38 }
 0xb60   :  { %v3275_v47 = vsel %vm3274_vm7, %v4264_v44, %v3271_v58 }
 0xb61   :  { %v3280_v48 = vsel %vm3277_vm8, %v3279_v32, %v3275_v47 }
 0xb62   :  { %3317 = vst [vmem:[#allocation12 + $0x28] sm:$0xff] %v3280_v48 }
 0xbb7   :  { %v3155_v14 = vpop.f32.mrf.mxu0 }
 0xbb8   :  { %v3156_v11 = vadd.f32 %v5696_v60, %v3155_v14 }
 0xbba   :  { %v3861_v55 = vmul.f32 -1.442695, %v3156_v11 }
 0xbbc   :  { %4265 = vpow2.f32 %v3861_v55 }
 0xbbf   :  { %v3157_v0 = vpop.f32.mrf.mxu0 }
 0xbc0   :  { %v3158_v34 = vadd.f32 %v5696_v60, %v3157_v0 }
 0xbc2   :  { %v4266_v6 = vpop.eup %4265  ;;  %v3862_v63 = vmul.f32 -1.442695, %v3158_v34 }
 0xbc3   :  { %v3190_v1 = vadd.f32 1.0, %v4266_v6 }
 0xbc4   :  { %4267 = vpow2.f32 %v3862_v63 }
 0xbc5   :  { %4269 = vrcp.f32 %v3190_v1  ;;  %v3293_v12 = vand.u32 2147483648, %v3190_v1  ;;  %v3291_v29 = vand.u32 2147483647, %v3190_v1  ;;  %vm3287_vm10 = vweird.f32 %v3190_v1 }
 0xbc7   :  { %v3294_v60 = vor.u32 1.1754944e-38, %v3293_v12  ;;  %vm3292_vm12 = vcmp.eq.f32.partialorder %v3291_v29, 8.507059e+37 }
 0xbca   :  { %v4268_v53 = vpop.eup %4267 }
 0xbcb   :  { %v4270_v33 = vpop.eup %4269  ;;  %v3191_v56 = vadd.f32 1.0, %v4268_v53 }
 0xbcc   :  { %v3283_v31 = vmul.f32 %v4270_v33, %v3190_v1  ;;  %vm3288_vm9 = vweird.f32 %v4270_v33 }
 0xbcd   :  { %4271 = vrcp.f32 %v3191_v56  ;;  %vm3289_vm11 = vmor %vm3287_vm10, %vm3288_vm9  ;;  %v3308_v5 = vand.u32 2147483648, %v3191_v56  ;;  %v3306_v41 = vand.u32 2147483647, %v3191_v56  ;;  %vm3302_vm14 = vweird.f32 %v3191_v56 }
 0xbce   :  { %v3284_v46 = vsub.f32 1.0, %v3283_v31 }
 0xbcf   :  { %v3309_v45 = vor.u32 1.1754944e-38, %v3308_v5  ;;  %vm3307_vm0 = vcmp.eq.f32.partialorder %v3306_v41, 8.507059e+37 }
 0xbd0   :  { %v3285_v25 = vmul.f32 %v4270_v33, %v3284_v46 }
 0xbd2   :  { %v3286_v42 = vadd.f32 %v4270_v33, %v3285_v25 }
 0xbd3   :  { %v4272_v4 = vpop.eup %4271 }
 0xbd4   :  { %v3290_v13 = vsel %vm3289_vm11, %v4270_v33, %v3286_v42  ;;  %v3298_v22 = vmul.f32 %v4272_v4, %v3191_v56  ;;  %vm3303_vm13 = vweird.f32 %v4272_v4 }
 0xbd5   :  { %v3295_v2 = vsel %vm3292_vm12, %v3294_v60, %v3290_v13  ;;  %vm3304_vm15 = vmor %vm3302_vm14, %vm3303_vm13 }
 0xbd6   :  { %3318 = vst [vmem:[#allocation12 + $0x30] sm:$0xff] %v3295_v2  ;;  %v3299_v30 = vsub.f32 1.0, %v3298_v22 }
 0xbd8   :  { %v3300_v35 = vmul.f32 %v4272_v4, %v3299_v30 }
 0xbda   :  { %v3301_v61 = vadd.f32 %v4272_v4, %v3300_v35 }
 0xbdc   :  { %v3305_v23 = vsel %vm3304_vm15, %v4272_v4, %v3301_v61 }
 0xbdd   :  { %v3310_v27 = vsel %vm3307_vm0, %v3309_v45, %v3305_v23 }
 0xbde   :  { %3319 = vst [vmem:[#allocation12 + $0x38] sm:$0xff] %v3310_v27 }
 0xbdf   :  { %3345 = dma.vmem_to_hbm [thread:$0]  %s3338_s0, 1024, %s3340_s2, [#allocation13], %s4435_s25, %s4435_s25, %s4436_s26  }
 0xbe0   :  { %4423 = dma.done.wait [#allocation5], 1024  }
 0xbe1   :  { %4424 = vsyncadd [#allocation5], 4294966272 }
 0xbe2   :  { %4425 = dma.done.wait [#allocation13], 1024  }
 0xbe3   :  { %4426 = vsyncadd [#allocation13], 4294966272 }
 0xbe4   :  { %3354 = vsyncpa [#allocation4], 1 }
 0xbe5   :  { %3355 = vsyncpa [#allocation7], 1 }
 0xbe6   :  { %3356 = vsyncpa [#allocation10], 1 }
 0xbe7   :  { %3357 = vsyncpa [#allocation5], 1 }
 0xbe8   :  { %3358 = vsyncpa [#allocation13], 1 }

</bundles_post_ra>
